<compile_context>
chip_gen: v6e
topology: v6e:2x2x1
jax: 0.10.0
libtpu: 0.0.40
codegen_flags: <defaults>
</compile_context>

<pallas_src>
import jax
import jax.numpy as jnp
from jax.experimental import pallas as pl
from jax.experimental.pallas import tpu as pltpu

H1, H2, H3 = 512, 256, 128
OUT_PAD = 128           # last layer padded to a full lane width


def _round_up(n, m):
    return ((n + m - 1) // m) * m


def _mlp_kernel(x_ref,
                w1_ref, b1_ref,
                w2_ref, b2_ref,
                w3_ref, b3_ref,
                w4_ref, b4_ref,
                o_ref):
    # x arrives f32; cast to bf16 in-kernel (cheap VPU pass, hidden under MXU).
    x = x_ref[...].astype(jnp.bfloat16)

    # Layer 1: Linear(in -> 512) + ReLU   (Dropout(0.2) is identity in eval)
    h = jnp.dot(x, w1_ref[...], preferred_element_type=jnp.float32) + b1_ref[...]
    h = jnp.maximum(h, 0.0).astype(jnp.bfloat16)

    # Layer 2: Linear(512 -> 256) + ReLU
    h = jnp.dot(h, w2_ref[...], preferred_element_type=jnp.float32) + b2_ref[...]
    h = jnp.maximum(h, 0.0).astype(jnp.bfloat16)

    # Layer 3: Linear(256 -> 128) + ReLU
    h = jnp.dot(h, w3_ref[...], preferred_element_type=jnp.float32) + b3_ref[...]
    h = jnp.maximum(h, 0.0).astype(jnp.bfloat16)

    # Layer 4: Linear(128 -> OUT_PAD) + Sigmoid (zero-padded cols sliced off
    # by the wrapper; sigmoid(0)=0.5 there, never observed).
    logits = jnp.dot(h, w4_ref[...],
                     preferred_element_type=jnp.float32) + b4_ref[...]
    o_ref[...] = jax.nn.sigmoid(logits).astype(o_ref.dtype)


def _choose_tm(B):
    """Batch tile: single full-batch tile up to 512 rows (no padding at all);
    otherwise the TM in {512, 256, 128} minimizing batch padding, ties
    preferring the larger TM (fewer grid steps)."""
    if B <= 512:
        return B
    return max((512, 256, 128), key=lambda tm: (-((-B) % tm), tm))


def geometry_predictor_forward(x, params, num_params=8):
    """x: [B, input_features] float32 -> [B, num_params] float32."""
    (w1, b1), (w2, b2), (w3, b3), (w4, b4) = params
    B, in_f = x.shape
    assert w1.shape[0] == in_f
    assert in_f % 128 == 0, "input_features must be lane-aligned (multiple of 128)"
    assert num_params <= OUT_PAD

    TM = _choose_tm(B)
    B_pad = _round_up(B, TM)
    grid = (B_pad // TM,)

    # Minimal (often zero) batch padding; x stays f32, cast happens in-kernel.
    x_in = x if B_pad == B else jnp.pad(x, ((0, B_pad - B), (0, 0)))

    const = lambda i: (0, 0)   # weights / biases: VMEM-resident across steps
    batch = lambda i: (i, 0)   # x / out: tiled along the batch axis

    # Only split across TensorCores (v7x megacore) when there are enough grid
    # steps to amortize the per-core resident-weight DMA.
    semantics = ("parallel",) if grid[0] > 2 else ("arbitrary",)

    # Traffic/flop model (bf16 weights, f32 biases, f32 x in, bf16 out).
    w_bytes = 2 * (in_f * H1 + H1 * H2 + H2 * H3 + H3 * OUT_PAD)
    b_bytes = 4 * (H1 + H2 + H3 + OUT_PAD)
    flops = 2 * B_pad * (in_f * H1 + H1 * H2 + H2 * H3 + H3 * OUT_PAD)
    bytes_accessed = 4 * B_pad * in_f + w_bytes + b_bytes + 2 * B_pad * OUT_PAD

    def run(single_buffer_weights):
        const_kw = (dict(pipeline_mode=pl.Buffered(buffer_count=1))
                    if single_buffer_weights else {})
        in_specs = [
            pl.BlockSpec((TM, in_f), batch),
            pl.BlockSpec((in_f, H1), const, **const_kw),
            pl.BlockSpec((1, H1), const, **const_kw),
            pl.BlockSpec((H1, H2), const, **const_kw),
            pl.BlockSpec((1, H2), const, **const_kw),
            pl.BlockSpec((H2, H3), const, **const_kw),
            pl.BlockSpec((1, H3), const, **const_kw),
            pl.BlockSpec((H3, OUT_PAD), const, **const_kw),
            pl.BlockSpec((1, OUT_PAD), const, **const_kw),
        ]
        out_specs = pl.BlockSpec((TM, OUT_PAD), batch)

        # VMEM budget: resident weights (single- or double-buffered), double-
        # buffered f32 x tiles + bf16 out tiles, in-kernel activations, plus
        # headroom for compiler scratch; capped under v7x's 64 MiB physical.
        weight_copies = 1 if single_buffer_weights else 2
        tile_bytes = 2 * (4 * TM * in_f) + 2 * (2 * TM * OUT_PAD)
        act_bytes = (4 * TM * (H1 + H2 + H3 + OUT_PAD)        # f32 accumulators
                     + 2 * TM * (in_f + H1 + H2 + H3))        # bf16 copies
        vmem_limit = (weight_copies * (w_bytes + b_bytes)
                      + tile_bytes + act_bytes + (8 << 20))
        vmem_limit = int(min(max(vmem_limit, 16 << 20), 56 << 20))

        return pl.pallas_call(
            _mlp_kernel,
            out_shape=jax.ShapeDtypeStruct((B_pad, OUT_PAD), jnp.bfloat16),
            grid_spec=pltpu.PrefetchScalarGridSpec(
                num_scalar_prefetch=0,
                grid=grid,
                in_specs=in_specs,
                out_specs=out_specs,
            ),
            compiler_params=pltpu.CompilerParams(
                dimension_semantics=semantics,
                vmem_limit_bytes=vmem_limit,
            ),
            cost_estimate=pl.CostEstimate(
                flops=flops,
                transcendentals=B_pad * OUT_PAD,
                bytes_accessed=bytes_accessed,
            ),
        )(x_in, w1, b1, w2, b2, w3, b3, w4, b4)

    try:
        out = run(single_buffer_weights=True)
    except Exception:
        # pl.Buffered(1) not accepted by this jax/Mosaic build: fall back to
        # default double-buffered resident weights (same math, more VMEM).
        out = run(single_buffer_weights=False)

    return out[:B, :num_params].astype(jnp.float32)


def _init_linear(key, fan_in, fan_out, pad_out=None):
    """PyTorch nn.Linear default init: U(-1/sqrt(fan_in), 1/sqrt(fan_in)).

    Weight is stored pre-transposed as [fan_in, fan_out] and cast to bf16 (MXU
    input); bias stays f32 and is kept 2-D [1, fan_out] for clean (sublane,
    lane) layout. Optionally zero-pads the output dim to `pad_out` columns.
    """
    kw, kb = jax.random.split(key)
    bound = 1.0 / (fan_in ** 0.5)
    w = jax.random.uniform(kw, (fan_in, fan_out), jnp.float32, -bound, bound)
    b = jax.random.uniform(kb, (1, fan_out), jnp.float32, -bound, bound)
    if pad_out is not None and pad_out > fan_out:
        w = jnp.pad(w, ((0, 0), (0, pad_out - fan_out)))
        b = jnp.pad(b, ((0, 0), (0, pad_out - fan_out)))
    return w.astype(jnp.bfloat16), b


def make_params(key, input_features=2048, num_params=8):
    k1, k2, k3, k4 = jax.random.split(key, 4)
    return (
        _init_linear(k1, input_features, H1),
        _init_linear(k2, H1, H2),
        _init_linear(k3, H2, H3),
        _init_linear(k4, H3, num_params, pad_out=OUT_PAD),
    )


if __name__ == "__main__":
    key = jax.random.PRNGKey(0)
    k_params, k_x = jax.random.split(key)

    input_features = 2048   # module default
    num_params = 8          # module default
    batch = 2

    params = make_params(k_params, input_features, num_params)
    x = jax.random.normal(k_x, (batch, input_features), jnp.float32)

    y = geometry_predictor_forward(x, params, num_params)
    y = jax.block_until_ready(y)

    assert y.shape == (batch, num_params), y.shape
    assert bool(jnp.all((y >= 0.0) & (y <= 1.0))), "sigmoid output out of range"

    # Plain-JAX reference of the same math (bf16 matmul inputs, f32 accumulate,
    # bf16 output quantization to match the kernel's out dtype).
    def ref(x, params, num_params):
        (w1, b1), (w2, b2), (w3, b3), (w4, b4) = params
        h = x.astype(jnp.bfloat16)
        h = jnp.maximum(jnp.dot(h, w1, preferred_element_type=jnp.float32) + b1,
                        0.0).astype(jnp.bfloat16)
        h = jnp.maximum(jnp.dot(h, w2, preferred_element_type=jnp.float32) + b2,
                        0.0).astype(jnp.bfloat16)
        h = jnp.maximum(jnp.dot(h, w3, preferred_element_type=jnp.float32) + b3,
                        0.0).astype(jnp.bfloat16)
        out = jax.nn.sigmoid(jnp.dot(h, w4, preferred_element_type=jnp.float32) + b4)
        out = out.astype(jnp.bfloat16).astype(jnp.float32)
        return out[:, :num_params]

    y_ref = ref(x, params, num_params)
    assert bool(jnp.allclose(y, y_ref, atol=5e-3, rtol=5e-3)), "mismatch vs reference"

    print("KERNEL_OK")
</pallas_src>

<mosaic_0001>
module attributes {stable_mosaic.version = 11 : i64} {
  func.func @_mlp_kernel(%arg0: i32, %arg1: memref<2x2048xf32, #tpu.memory_space<vmem>>, %arg2: memref<2048x512xbf16, #tpu.memory_space<vmem>>, %arg3: memref<1x512xf32, #tpu.memory_space<vmem>>, %arg4: memref<512x256xbf16, #tpu.memory_space<vmem>>, %arg5: memref<1x256xf32, #tpu.memory_space<vmem>>, %arg6: memref<256x128xbf16, #tpu.memory_space<vmem>>, %arg7: memref<1x128xf32, #tpu.memory_space<vmem>>, %arg8: memref<128x128xbf16, #tpu.memory_space<vmem>>, %arg9: memref<1x128xf32, #tpu.memory_space<vmem>>, %arg10: memref<2x128xbf16, #tpu.memory_space<vmem>>) attributes {dimension_semantics = [#tpu.dimension_semantics<arbitrary>], iteration_bounds = array<i64: 1>, scalar_prefetch = 0 : i64, scratch_operands = 0 : i64, tpu.core_type = #tpu.core_type<tc>, window_params = [{transform_indices = @transform_0, window_bounds = array<i64: 2, 2048>}, {pipeline_mode = #tpu.pipeline_mode<synchronous>, transform_indices = @transform_1, window_bounds = array<i64: 2048, 512>}, {pipeline_mode = #tpu.pipeline_mode<synchronous>, transform_indices = @transform_2, window_bounds = array<i64: 1, 512>}, {pipeline_mode = #tpu.pipeline_mode<synchronous>, transform_indices = @transform_3, window_bounds = array<i64: 512, 256>}, {pipeline_mode = #tpu.pipeline_mode<synchronous>, transform_indices = @transform_4, window_bounds = array<i64: 1, 256>}, {pipeline_mode = #tpu.pipeline_mode<synchronous>, transform_indices = @transform_5, window_bounds = array<i64: 256, 128>}, {pipeline_mode = #tpu.pipeline_mode<synchronous>, transform_indices = @transform_6, window_bounds = array<i64: 1, 128>}, {pipeline_mode = #tpu.pipeline_mode<synchronous>, transform_indices = @transform_7, window_bounds = array<i64: 128, 128>}, {pipeline_mode = #tpu.pipeline_mode<synchronous>, transform_indices = @transform_8, window_bounds = array<i64: 1, 128>}, {transform_indices = @transform_9, window_bounds = array<i64: 2, 128>}]} {
    %c0 = arith.constant 0 : index
    %c0_0 = arith.constant 0 : index
    %0 = vector.load %arg1[%c0, %c0_0] : memref<2x2048xf32, #tpu.memory_space<vmem>>, vector<2x2048xf32>
    %1 = arith.truncf %0 : vector<2x2048xf32> to vector<2x2048xbf16>
    %c0_1 = arith.constant 0 : index
    %c0_2 = arith.constant 0 : index
    %2 = vector.load %arg2[%c0_1, %c0_2] : memref<2048x512xbf16, #tpu.memory_space<vmem>>, vector<2048x512xbf16>
    %cst = arith.constant dense<0.000000e+00> : vector<2x512xf32>
    %3 = tpu.matmul %1, %2, %cst {dimension_numbers = #tpu.dot_dimension_numbers<[1], [0], [0], [1], [0, 0, 1, 1], [], []>} : vector<2x2048xbf16>, vector<2048x512xbf16>, vector<2x512xf32> -> vector<2x512xf32>
    %c0_3 = arith.constant 0 : index
    %c0_4 = arith.constant 0 : index
    %4 = vector.load %arg3[%c0_3, %c0_4] : memref<1x512xf32, #tpu.memory_space<vmem>>, vector<1x512xf32>
    %5 = vector.broadcast %4 : vector<1x512xf32> to vector<2x512xf32>
    %6 = arith.addf %3, %5 : vector<2x512xf32>
    %cst_5 = arith.constant 0.000000e+00 : f32
    %7 = vector.broadcast %cst_5 : f32 to vector<2x512xf32>
    %8 = arith.maximumf %6, %7 : vector<2x512xf32>
    %9 = arith.truncf %8 : vector<2x512xf32> to vector<2x512xbf16>
    %c0_6 = arith.constant 0 : index
    %c0_7 = arith.constant 0 : index
    %10 = vector.load %arg4[%c0_6, %c0_7] : memref<512x256xbf16, #tpu.memory_space<vmem>>, vector<512x256xbf16>
    %cst_8 = arith.constant dense<0.000000e+00> : vector<2x256xf32>
    %11 = tpu.matmul %9, %10, %cst_8 {dimension_numbers = #tpu.dot_dimension_numbers<[1], [0], [0], [1], [0, 0, 1, 1], [], []>} : vector<2x512xbf16>, vector<512x256xbf16>, vector<2x256xf32> -> vector<2x256xf32>
    %c0_9 = arith.constant 0 : index
    %c0_10 = arith.constant 0 : index
    %12 = vector.load %arg5[%c0_9, %c0_10] : memref<1x256xf32, #tpu.memory_space<vmem>>, vector<1x256xf32>
    %13 = vector.broadcast %12 : vector<1x256xf32> to vector<2x256xf32>
    %14 = arith.addf %11, %13 : vector<2x256xf32>
    %cst_11 = arith.constant 0.000000e+00 : f32
    %15 = vector.broadcast %cst_11 : f32 to vector<2x256xf32>
    %16 = arith.maximumf %14, %15 : vector<2x256xf32>
    %17 = arith.truncf %16 : vector<2x256xf32> to vector<2x256xbf16>
    %c0_12 = arith.constant 0 : index
    %c0_13 = arith.constant 0 : index
    %18 = vector.load %arg6[%c0_12, %c0_13] : memref<256x128xbf16, #tpu.memory_space<vmem>>, vector<256x128xbf16>
    %cst_14 = arith.constant dense<0.000000e+00> : vector<2x128xf32>
    %19 = tpu.matmul %17, %18, %cst_14 {dimension_numbers = #tpu.dot_dimension_numbers<[1], [0], [0], [1], [0, 0, 1, 1], [], []>} : vector<2x256xbf16>, vector<256x128xbf16>, vector<2x128xf32> -> vector<2x128xf32>
    %c0_15 = arith.constant 0 : index
    %c0_16 = arith.constant 0 : index
    %20 = vector.load %arg7[%c0_15, %c0_16] : memref<1x128xf32, #tpu.memory_space<vmem>>, vector<1x128xf32>
    %21 = vector.broadcast %20 : vector<1x128xf32> to vector<2x128xf32>
    %22 = arith.addf %19, %21 : vector<2x128xf32>
    %cst_17 = arith.constant 0.000000e+00 : f32
    %23 = vector.broadcast %cst_17 : f32 to vector<2x128xf32>
    %24 = arith.maximumf %22, %23 : vector<2x128xf32>
    %25 = arith.truncf %24 : vector<2x128xf32> to vector<2x128xbf16>
    %c0_18 = arith.constant 0 : index
    %c0_19 = arith.constant 0 : index
    %26 = vector.load %arg8[%c0_18, %c0_19] : memref<128x128xbf16, #tpu.memory_space<vmem>>, vector<128x128xbf16>
    %cst_20 = arith.constant dense<0.000000e+00> : vector<2x128xf32>
    %27 = tpu.matmul %25, %26, %cst_20 {dimension_numbers = #tpu.dot_dimension_numbers<[1], [0], [0], [1], [0, 0, 1, 1], [], []>} : vector<2x128xbf16>, vector<128x128xbf16>, vector<2x128xf32> -> vector<2x128xf32>
    %c0_21 = arith.constant 0 : index
    %c0_22 = arith.constant 0 : index
    %28 = vector.load %arg9[%c0_21, %c0_22] : memref<1x128xf32, #tpu.memory_space<vmem>>, vector<1x128xf32>
    %29 = vector.broadcast %28 : vector<1x128xf32> to vector<2x128xf32>
    %30 = arith.addf %27, %29 : vector<2x128xf32>
    %31 = arith.negf %30 : vector<2x128xf32>
    %32 = math.exp %31 : vector<2x128xf32>
    %cst_23 = arith.constant 1.000000e+00 : f32
    %33 = vector.broadcast %cst_23 : f32 to vector<2x128xf32>
    %34 = arith.addf %33, %32 : vector<2x128xf32>
    %35 = arith.divf %33, %34 : vector<2x128xf32>
    %36 = arith.truncf %35 : vector<2x128xf32> to vector<2x128xbf16>
    %c0_24 = arith.constant 0 : index
    %c0_25 = arith.constant 0 : index
    %37 = vector.load %arg10[%c0_24, %c0_25] : memref<2x128xbf16, #tpu.memory_space<vmem>>, vector<2x128xbf16>
    tpu.vector_store %arg10[%c0_24, %c0_25], %36 {strides = array<i32>} : memref<2x128xbf16, #tpu.memory_space<vmem>>, vector<2x128xbf16>,
    return
  }
  func.func @transform_0(%arg0: i32) -> (i32, i32) {
    %c0_i32 = arith.constant 0 : i32
    %c0_i32_0 = arith.constant 0 : i32
    return %arg0, %c0_i32 : i32, i32
  }
  func.func @transform_1(%arg0: i32) -> (i32, i32) {
    %c0_i32 = arith.constant 0 : i32
    %c0_i32_0 = arith.constant 0 : i32
    %c0_i32_1 = arith.constant 0 : i32
    return %c0_i32, %c0_i32_0 : i32, i32
  }
  func.func @transform_2(%arg0: i32) -> (i32, i32) {
    %c0_i32 = arith.constant 0 : i32
    %c0_i32_0 = arith.constant 0 : i32
    %c0_i32_1 = arith.constant 0 : i32
    return %c0_i32, %c0_i32_0 : i32, i32
  }
  func.func @transform_3(%arg0: i32) -> (i32, i32) {
    %c0_i32 = arith.constant 0 : i32
    %c0_i32_0 = arith.constant 0 : i32
    %c0_i32_1 = arith.constant 0 : i32
    return %c0_i32, %c0_i32_0 : i32, i32
  }
  func.func @transform_4(%arg0: i32) -> (i32, i32) {
    %c0_i32 = arith.constant 0 : i32
    %c0_i32_0 = arith.constant 0 : i32
    %c0_i32_1 = arith.constant 0 : i32
    return %c0_i32, %c0_i32_0 : i32, i32
  }
  func.func @transform_5(%arg0: i32) -> (i32, i32) {
    %c0_i32 = arith.constant 0 : i32
    %c0_i32_0 = arith.constant 0 : i32
    %c0_i32_1 = arith.constant 0 : i32
    return %c0_i32, %c0_i32_0 : i32, i32
  }
  func.func @transform_6(%arg0: i32) -> (i32, i32) {
    %c0_i32 = arith.constant 0 : i32
    %c0_i32_0 = arith.constant 0 : i32
    %c0_i32_1 = arith.constant 0 : i32
    return %c0_i32, %c0_i32_0 : i32, i32
  }
  func.func @transform_7(%arg0: i32) -> (i32, i32) {
    %c0_i32 = arith.constant 0 : i32
    %c0_i32_0 = arith.constant 0 : i32
    %c0_i32_1 = arith.constant 0 : i32
    return %c0_i32, %c0_i32_0 : i32, i32
  }
  func.func @transform_8(%arg0: i32) -> (i32, i32) {
    %c0_i32 = arith.constant 0 : i32
    %c0_i32_0 = arith.constant 0 : i32
    %c0_i32_1 = arith.constant 0 : i32
    return %c0_i32, %c0_i32_0 : i32, i32
  }
  func.func @transform_9(%arg0: i32) -> (i32, i32) {
    %c0_i32 = arith.constant 0 : i32
    %c0_i32_0 = arith.constant 0 : i32
    return %arg0, %c0_i32 : i32, i32
  }
}

module attributes {stable_mosaic.version = 11 : i64} {
  func.func @_mlp_kernel(%arg0: i32, %arg1: memref<2x2048xf32, #tpu.memory_space<vmem>>, %arg2: memref<2048x512xbf16, #tpu.memory_space<vmem>>, %arg3: memref<1x512xf32, #tpu.memory_space<vmem>>, %arg4: memref<512x256xbf16, #tpu.memory_space<vmem>>, %arg5: memref<1x256xf32, #tpu.memory_space<vmem>>, %arg6: memref<256x128xbf16, #tpu.memory_space<vmem>>, %arg7: memref<1x128xf32, #tpu.memory_space<vmem>>, %arg8: memref<128x128xbf16, #tpu.memory_space<vmem>>, %arg9: memref<1x128xf32, #tpu.memory_space<vmem>>, %arg10: memref<2x128xbf16, #tpu.memory_space<vmem>>) attributes {dimension_semantics = [#tpu.dimension_semantics<arbitrary>], iteration_bounds = array<i64: 1>, scalar_prefetch = 0 : i64, scratch_operands = 0 : i64, tpu.core_type = #tpu.core_type<tc>, window_params = [{transform_indices = @transform_0, window_bounds = array<i64: 2, 2048>}, {pipeline_mode = #tpu.pipeline_mode<synchronous>, transform_indices = @transform_1, window_bounds = array<i64: 2048, 512>}, {pipeline_mode = #tpu.pipeline_mode<synchronous>, transform_indices = @transform_2, window_bounds = array<i64: 1, 512>}, {pipeline_mode = #tpu.pipeline_mode<synchronous>, transform_indices = @transform_3, window_bounds = array<i64: 512, 256>}, {pipeline_mode = #tpu.pipeline_mode<synchronous>, transform_indices = @transform_4, window_bounds = array<i64: 1, 256>}, {pipeline_mode = #tpu.pipeline_mode<synchronous>, transform_indices = @transform_5, window_bounds = array<i64: 256, 128>}, {pipeline_mode = #tpu.pipeline_mode<synchronous>, transform_indices = @transform_6, window_bounds = array<i64: 1, 128>}, {pipeline_mode = #tpu.pipeline_mode<synchronous>, transform_indices = @transform_7, window_bounds = array<i64: 128, 128>}, {pipeline_mode = #tpu.pipeline_mode<synchronous>, transform_indices = @transform_8, window_bounds = array<i64: 1, 128>}, {transform_indices = @transform_9, window_bounds = array<i64: 2, 128>}]} {
    %c0 = arith.constant 0 : index
    %c0_0 = arith.constant 0 : index
    %0 = vector.load %arg1[%c0, %c0_0] : memref<2x2048xf32, #tpu.memory_space<vmem>>, vector<2x2048xf32>
    %1 = arith.truncf %0 : vector<2x2048xf32> to vector<2x2048xbf16>
    %c0_1 = arith.constant 0 : index
    %c0_2 = arith.constant 0 : index
    %2 = vector.load %arg2[%c0_1, %c0_2] : memref<2048x512xbf16, #tpu.memory_space<vmem>>, vector<2048x512xbf16>
    %cst = arith.constant dense<0.000000e+00> : vector<2x512xf32>
    %3 = tpu.matmul %1, %2, %cst {dimension_numbers = #tpu.dot_dimension_numbers<[1], [0], [0], [1], [0, 0, 1, 1], [], []>} : vector<2x2048xbf16>, vector<2048x512xbf16>, vector<2x512xf32> -> vector<2x512xf32>
    %c0_3 = arith.constant 0 : index
    %c0_4 = arith.constant 0 : index
    %4 = vector.load %arg3[%c0_3, %c0_4] : memref<1x512xf32, #tpu.memory_space<vmem>>, vector<1x512xf32>
    %5 = vector.broadcast %4 : vector<1x512xf32> to vector<2x512xf32>
    %6 = arith.addf %3, %5 : vector<2x512xf32>
    %cst_5 = arith.constant 0.000000e+00 : f32
    %7 = vector.broadcast %cst_5 : f32 to vector<2x512xf32>
    %8 = arith.maximumf %6, %7 : vector<2x512xf32>
    %9 = arith.truncf %8 : vector<2x512xf32> to vector<2x512xbf16>
    %c0_6 = arith.constant 0 : index
    %c0_7 = arith.constant 0 : index
    %10 = vector.load %arg4[%c0_6, %c0_7] : memref<512x256xbf16, #tpu.memory_space<vmem>>, vector<512x256xbf16>
    %cst_8 = arith.constant dense<0.000000e+00> : vector<2x256xf32>
    %11 = tpu.matmul %9, %10, %cst_8 {dimension_numbers = #tpu.dot_dimension_numbers<[1], [0], [0], [1], [0, 0, 1, 1], [], []>} : vector<2x512xbf16>, vector<512x256xbf16>, vector<2x256xf32> -> vector<2x256xf32>
    %c0_9 = arith.constant 0 : index
    %c0_10 = arith.constant 0 : index
    %12 = vector.load %arg5[%c0_9, %c0_10] : memref<1x256xf32, #tpu.memory_space<vmem>>, vector<1x256xf32>
    %13 = vector.broadcast %12 : vector<1x256xf32> to vector<2x256xf32>
    %14 = arith.addf %11, %13 : vector<2x256xf32>
    %cst_11 = arith.constant 0.000000e+00 : f32
    %15 = vector.broadcast %cst_11 : f32 to vector<2x256xf32>
    %16 = arith.maximumf %14, %15 : vector<2x256xf32>
    %17 = arith.truncf %16 : vector<2x256xf32> to vector<2x256xbf16>
    %c0_12 = arith.constant 0 : index
    %c0_13 = arith.constant 0 : index
    %18 = vector.load %arg6[%c0_12, %c0_13] : memref<256x128xbf16, #tpu.memory_space<vmem>>, vector<256x128xbf16>
    %cst_14 = arith.constant dense<0.000000e+00> : vector<2x128xf32>
    %19 = tpu.matmul %17, %18, %cst_14 {dimension_numbers = #tpu.dot_dimension_numbers<[1], [0], [0], [1], [0, 0, 1, 1], [], []>} : vector<2x256xbf16>, vector<256x128xbf16>, vector<2x128xf32> -> vector<2x128xf32>
    %c0_15 = arith.constant 0 : index
    %c0_16 = arith.constant 0 : index
    %20 = vector.load %arg7[%c0_15, %c0_16] : memref<1x128xf32, #tpu.memory_space<vmem>>, vector<1x128xf32>
    %21 = vector.broadcast %20 : vector<1x128xf32> to vector<2x128xf32>
    %22 = arith.addf %19, %21 : vector<2x128xf32>
    %cst_17 = arith.constant 0.000000e+00 : f32
    %23 = vector.broadcast %cst_17 : f32 to vector<2x128xf32>
    %24 = arith.maximumf %22, %23 : vector<2x128xf32>
    %25 = arith.truncf %24 : vector<2x128xf32> to vector<2x128xbf16>
    %c0_18 = arith.constant 0 : index
    %c0_19 = arith.constant 0 : index
    %26 = vector.load %arg8[%c0_18, %c0_19] : memref<128x128xbf16, #tpu.memory_space<vmem>>, vector<128x128xbf16>
    %cst_20 = arith.constant dense<0.000000e+00> : vector<2x128xf32>
    %27 = tpu.matmul %25, %26, %cst_20 {dimension_numbers = #tpu.dot_dimension_numbers<[1], [0], [0], [1], [0, 0, 1, 1], [], []>} : vector<2x128xbf16>, vector<128x128xbf16>, vector<2x128xf32> -> vector<2x128xf32>
    %c0_21 = arith.constant 0 : index
    %c0_22 = arith.constant 0 : index
    %28 = vector.load %arg9[%c0_21, %c0_22] : memref<1x128xf32, #tpu.memory_space<vmem>>, vector<1x128xf32>
    %29 = vector.broadcast %28 : vector<1x128xf32> to vector<2x128xf32>
    %30 = arith.addf %27, %29 : vector<2x128xf32>
    %31 = arith.negf %30 : vector<2x128xf32>
    %32 = math.exp %31 : vector<2x128xf32>
    %cst_23 = arith.constant 1.000000e+00 : f32
    %33 = vector.broadcast %cst_23 : f32 to vector<2x128xf32>
    %34 = arith.addf %33, %32 : vector<2x128xf32>
    %35 = arith.divf %33, %34 : vector<2x128xf32>
    %36 = arith.truncf %35 : vector<2x128xf32> to vector<2x128xbf16>
    %c0_24 = arith.constant 0 : index
    %c0_25 = arith.constant 0 : index
    %37 = vector.load %arg10[%c0_24, %c0_25] : memref<2x128xbf16, #tpu.memory_space<vmem>>, vector<2x128xbf16>
    tpu.vector_store %arg10[%c0_24, %c0_25], %36 {strides = array<i32>} : memref<2x128xbf16, #tpu.memory_space<vmem>>, vector<2x128xbf16>,
    return
  }
  func.func @transform_0(%arg0: i32) -> (i32, i32) {
    %c0_i32 = arith.constant 0 : i32
    %c0_i32_0 = arith.constant 0 : i32
    return %arg0, %c0_i32 : i32, i32
  }
  func.func @transform_1(%arg0: i32) -> (i32, i32) {
    %c0_i32 = arith.constant 0 : i32
    %c0_i32_0 = arith.constant 0 : i32
    %c0_i32_1 = arith.constant 0 : i32
    return %c0_i32, %c0_i32_0 : i32, i32
  }
  func.func @transform_2(%arg0: i32) -> (i32, i32) {
    %c0_i32 = arith.constant 0 : i32
    %c0_i32_0 = arith.constant 0 : i32
    %c0_i32_1 = arith.constant 0 : i32
    return %c0_i32, %c0_i32_0 : i32, i32
  }
  func.func @transform_3(%arg0: i32) -> (i32, i32) {
    %c0_i32 = arith.constant 0 : i32
    %c0_i32_0 = arith.constant 0 : i32
    %c0_i32_1 = arith.constant 0 : i32
    return %c0_i32, %c0_i32_0 : i32, i32
  }
  func.func @transform_4(%arg0: i32) -> (i32, i32) {
    %c0_i32 = arith.constant 0 : i32
    %c0_i32_0 = arith.constant 0 : i32
    %c0_i32_1 = arith.constant 0 : i32
    return %c0_i32, %c0_i32_0 : i32, i32
  }
  func.func @transform_5(%arg0: i32) -> (i32, i32) {
    %c0_i32 = arith.constant 0 : i32
    %c0_i32_0 = arith.constant 0 : i32
    %c0_i32_1 = arith.constant 0 : i32
    return %c0_i32, %c0_i32_0 : i32, i32
  }
  func.func @transform_6(%arg0: i32) -> (i32, i32) {
    %c0_i32 = arith.constant 0 : i32
    %c0_i32_0 = arith.constant 0 : i32
    %c0_i32_1 = arith.constant 0 : i32
    return %c0_i32, %c0_i32_0 : i32, i32
  }
  func.func @transform_7(%arg0: i32) -> (i32, i32) {
    %c0_i32 = arith.constant 0 : i32
    %c0_i32_0 = arith.constant 0 : i32
    %c0_i32_1 = arith.constant 0 : i32
    return %c0_i32, %c0_i32_0 : i32, i32
  }
  func.func @transform_8(%arg0: i32) -> (i32, i32) {
    %c0_i32 = arith.constant 0 : i32
    %c0_i32_0 = arith.constant 0 : i32
    %c0_i32_1 = arith.constant 0 : i32
    return %c0_i32, %c0_i32_0 : i32, i32
  }
  func.func @transform_9(%arg0: i32) -> (i32, i32) {
    %c0_i32 = arith.constant 0 : i32
    %c0_i32_0 = arith.constant 0 : i32
    return %arg0, %c0_i32 : i32, i32
  }
}

</mosaic_0001>

<bundles_post_ra>
// kernel: tpu_custom_call.1
= control target key start
LH: loop header
LB: loop body
LE: loop exit
PB: predicated region body
PF: predicated region fallthrough
CT: control target
= control target key end

     0   :  { %14 = vsyncpa [#allocation3], 0  ;;  %s6848_s0 = inlined_call_operand.hbm [shape: f32[2,2048], index: 0, kind: input, shape index: {}]   ;;  %s6849_s1 = inlined_call_operand.hbm [shape: bf16[2048,512], index: 1, kind: input, shape index: {}]   ;;  %s6850_s2 = inlined_call_operand.hbm [shape: f32[1,512], index: 2, kind: input, shape index: {}]   ;;  %s6851_s3 = inlined_call_operand.hbm [shape: bf16[512,256], index: 3, kind: input, shape index: {}]   ;;  %s6852_s4 = inlined_call_operand.hbm [shape: f32[1,256], index: 4, kind: input, shape index: {}]   ;;  %s6853_s5 = inlined_call_operand.hbm [shape: bf16[256,128], index: 5, kind: input, shape index: {}]   ;;  %s6854_s6 = inlined_call_operand.hbm [shape: f32[1,128], index: 6, kind: input, shape index: {}]   ;;  %s6855_s7 = inlined_call_operand.hbm [shape: bf16[128,128], index: 7, kind: input, shape index: {}]   ;;  %s6856_s8 = inlined_call_operand.hbm [shape: f32[1,128], index: 8, kind: input, shape index: {}]   ;;  %s6857_s9 = inlined_call_operand.hbm [shape: bf16[2,128], index: 9, kind: output, shape index: {}]  }
   0x1   :  { %15 = vsyncpa [#allocation6], 0 }
   0x2   :  { %16 = vsyncpa [#allocation9], 0 }
   0x3   :  { %17 = vsyncpa [#allocation12], 0 }
   0x4   :  { %18 = vsyncpa [#allocation15], 0 }
   0x5   :  { %19 = vsyncpa [#allocation4], 0  ;;  %s6591_s30 = smov [#allocation5]  }
   0x6   :  { %s35_s10 = sshll.u32 %s6591_s30, 4  ;;  %s36_s10 = int_to_ptr.vmem [resolvable:$true] %s35_s10 }
   0x7   :  { %s6387_s11 = scalar_lea.vmem %s36_s10, 65536  ;;  %p6392_p1 = scmp.lt.s32.totalorder %s36_s10, %s36_s10 }
   0x8   :  { %p6388_p0 = scmp.ne.s32.totalorder %s36_s10, %s6387_s11  ;;  %p6393_p2 = scmp.lt.s32.totalorder %s6387_s11, %s6387_s11 }
   0xa   :  { %p6394_p3 = por %p6393_p2, %p6392_p1 }
   0xc   :  { %p6395_p4 = pnand %p6394_p3, %p6388_p0 }
   0xe   :  { %6398 = shalt.err (!%p6395_p4)
}
   0xf   :  { %s6592_s12 = smov 256   ;;  %s6593_s13 = smov 16  }
  0x10   :  { %41 = dma.hbm_to_vmem [thread:$0]  %s6849_s1, 65536, %s36_s10, [#allocation6], %s6592_s12, %s6592_s12, %s6593_s13  }
  0x11   :  { %s6594_s16 = smov [#allocation8]  }
  0x12   :  { %s57_s17 = sshll.u32 %s6594_s16, 4  ;;  %s58_s17 = int_to_ptr.vmem [resolvable:$true] %s57_s17 }
  0x13   :  { %s6407_s18 = scalar_lea.vmem %s58_s17, 8192  ;;  %p6412_p6 = scmp.lt.s32.totalorder %s58_s17, %s58_s17 }
  0x14   :  { %p6408_p5 = scmp.ne.s32.totalorder %s58_s17, %s6407_s18  ;;  %p6413_p7 = scmp.lt.s32.totalorder %s6407_s18, %s6407_s18 }
  0x16   :  { %p6414_p8 = por %p6413_p7, %p6412_p6 }
  0x18   :  { %p6415_p9 = pnand %p6414_p8, %p6408_p5 }
  0x1a   :  { %6418 = shalt.err (!%p6415_p9)
}
  0x1b   :  { %s6595_s19 = smov 128   ;;  %s6596_s20 = smov 8  }
  0x1c   :  { %63 = dma.hbm_to_vmem [thread:$0]  %s6851_s3, 8192, %s58_s17, [#allocation9], %s6595_s19, %s6595_s19, %s6596_s20  }
  0x1d   :  { %s6597_s23 = smov [#allocation11]  }
  0x1e   :  { %s79_s24 = sshll.u32 %s6597_s23, 4  ;;  %s80_s24 = int_to_ptr.vmem [resolvable:$true] %s79_s24 }
  0x1f   :  { %s6427_s1 = scalar_lea.vmem %s80_s24, 2048  ;;  %p6432_p11 = scmp.lt.s32.totalorder %s80_s24, %s80_s24 }
  0x20   :  { %p6428_p10 = scmp.ne.s32.totalorder %s80_s24, %s6427_s1  ;;  %p6433_p12 = scmp.lt.s32.totalorder %s6427_s1, %s6427_s1 }
  0x22   :  { %p6434_p13 = por %p6433_p12, %p6432_p11 }
  0x24   :  { %p6435_p0 = pnand %p6434_p13, %p6428_p10 }
  0x26   :  { %6438 = shalt.err (!%p6435_p0)
}
  0x27   :  { %s6598_s25 = smov 64   ;;  %s6599_s26 = smov 4  }
  0x28   :  { %85 = dma.hbm_to_vmem [thread:$0]  %s6853_s5, 2048, %s80_s24, [#allocation12], %s6598_s25, %s6598_s25, %s6599_s26  }
  0x29   :  { %s6600_s29 = smov [#allocation14]   ;;  %s6601_s3 = smov [#allocation2]  }
  0x2a   :  { %s101_s30 = sshll.u32 %s6600_s29, 4  ;;  %s26_s10 = sshll.u32 %s6601_s3, 4  ;;  %s102_s30 = int_to_ptr.vmem [resolvable:$true] %s101_s30  ;;  %s27_s10 = int_to_ptr.vmem [resolvable:$true] %s26_s10 }
  0x2b   :  { %s6447_s11 = scalar_lea.vmem %s102_s30, 1024  ;;  %p6452_p2 = scmp.lt.s32.totalorder %s102_s30, %s102_s30 }
  0x2c   :  { %p6448_p1 = scmp.ne.s32.totalorder %s102_s30, %s6447_s11  ;;  %p6453_p3 = scmp.lt.s32.totalorder %s6447_s11, %s6447_s11 }
  0x2e   :  { %p6454_p4 = por %p6453_p3, %p6452_p2 }
  0x30   :  { %p6455_p5 = pnand %p6454_p4, %p6448_p1 }
  0x32   :  { %6458 = shalt.err (!%p6455_p5)
}
  0x33   :  { %107 = dma.hbm_to_vmem [thread:$0]  %s6855_s7, 1024, %s102_s30, [#allocation15], %s6598_s25, %s6598_s25, %s6599_s26  }
  0x34   :  { %s6467_s14 = scalar_lea.vmem %s27_s10, 512  ;;  %p6472_p7 = scmp.lt.s32.totalorder %s27_s10, %s27_s10 }
  0x35   :  { %p6468_p6 = scmp.ne.s32.totalorder %s27_s10, %s6467_s14  ;;  %p6473_p8 = scmp.lt.s32.totalorder %s6467_s14, %s6467_s14 }
  0x37   :  { %p6474_p9 = por %p6473_p8, %p6472_p7 }
  0x39   :  { %p6475_p10 = pnand %p6474_p9, %p6468_p6 }
  0x3b   :  { %6478 = shalt.err (!%p6475_p10)
}
  0x3c   :  { %29 = dma.hbm_to_vmem [thread:$0]  %s6848_s0, 512, %s27_s10, [#allocation3]  }
  0x3d   :  { %s6602_s16 = smov [#allocation7]   ;;  %s6603_s18 = smov [#allocation10]  }
  0x3e   :  { %s48_s17 = sshll.u32 %s6602_s16, 4  ;;  %s70_s19 = sshll.u32 %s6603_s18, 4  ;;  %s49_s17 = int_to_ptr.vmem [resolvable:$true] %s48_s17  ;;  %s71_s19 = int_to_ptr.vmem [resolvable:$true] %s70_s19 }
  0x3f   :  { %s6487_s20 = scalar_lea.vmem %s49_s17, 64  ;;  %p6492_p12 = scmp.lt.s32.totalorder %s49_s17, %s49_s17 }
  0x40   :  { %p6488_p11 = scmp.ne.s32.totalorder %s49_s17, %s6487_s20  ;;  %p6493_p13 = scmp.lt.s32.totalorder %s6487_s20, %s6487_s20 }
  0x42   :  { %p6494_p0 = por %p6493_p13, %p6492_p12 }
  0x44   :  { %p6495_p1 = pnand %p6494_p0, %p6488_p11 }
  0x46   :  { %6498 = shalt.err (!%p6495_p1)
}
  0x47   :  { %51 = dma.hbm_to_vmem [thread:$0]  %s6850_s2, 64, %s49_s17, [#allocation6]  }
  0x48   :  { %s6507_s22 = scalar_lea.vmem %s71_s19, 32  ;;  %p6512_p3 = scmp.lt.s32.totalorder %s71_s19, %s71_s19 }
  0x49   :  { %p6508_p2 = scmp.ne.s32.totalorder %s71_s19, %s6507_s22  ;;  %p6513_p4 = scmp.lt.s32.totalorder %s6507_s22, %s6507_s22 }
  0x4b   :  { %p6514_p5 = por %p6513_p4, %p6512_p3 }
  0x4d   :  { %p6515_p6 = pnand %p6514_p5, %p6508_p2 }
  0x4f   :  { %6518 = shalt.err (!%p6515_p6)
}
  0x50   :  { %73 = dma.hbm_to_vmem [thread:$0]  %s6852_s4, 32, %s71_s19, [#allocation9]  }
  0x51   :  { %s6604_s24 = smov [#allocation13]   ;;  %s6605_s25 = smov [#allocation16]  }
  0x52   :  { %s92_s1 = sshll.u32 %s6604_s24, 4  ;;  %s114_s26 = sshll.u32 %s6605_s25, 4  ;;  %s93_s1 = int_to_ptr.vmem [resolvable:$true] %s92_s1  ;;  %s115_s26 = int_to_ptr.vmem [resolvable:$true] %s114_s26 }
  0x53   :  { %s6527_s27 = scalar_lea.vmem %s93_s1, 16  ;;  %s6531_s2 = scalar_lea.vmem %s93_s1, 32 }
  0x54   :  { %p6528_p7 = scmp.ne.s32.totalorder %s93_s1, %s6527_s27  ;;  %p6532_p8 = scmp.lt.s32.totalorder %s93_s1, %s93_s1 }
  0x55   :  { %p6533_p9 = scmp.lt.s32.totalorder %s6531_s2, %s6527_s27 }
  0x57   :  { %p6534_p10 = por %p6533_p9, %p6532_p8 }
  0x59   :  { %p6535_p11 = pnand %p6534_p10, %p6528_p7 }
  0x5b   :  { %6538 = shalt.err (!%p6535_p11)
}
  0x5c   :  { %95 = dma.hbm_to_vmem [thread:$0]  %s6854_s6, 16, %s93_s1, [#allocation12]  }
  0x5d   :  { %s6547_s30 = scalar_lea.vmem %s115_s26, 16  ;;  %s6551_s4 = scalar_lea.vmem %s115_s26, 32 }
  0x5e   :  { %p6548_p12 = scmp.ne.s32.totalorder %s115_s26, %s6547_s30  ;;  %p6552_p13 = scmp.lt.s32.totalorder %s115_s26, %s115_s26 }
  0x5f   :  { %p6553_p0 = scmp.lt.s32.totalorder %s6551_s4, %s6547_s30 }
  0x61   :  { %p6554_p1 = por %p6553_p0, %p6552_p13 }
  0x63   :  { %p6555_p2 = pnand %p6554_p1, %p6548_p12 }
  0x65   :  { %6558 = shalt.err (!%p6555_p2)
}
  0x66   :  { %117 = dma.hbm_to_vmem [thread:$0]  %s6856_s8, 16, %s115_s26, [#allocation15]  }
  0x67   :  { %6579 = dma.done.wait [#allocation3], 512  }
  0x68   :  { %6580 = vsyncadd [#allocation3], 4294966784 }
  0x69   :  { %6581 = dma.done.wait [#allocation6], 65600  }
  0x6a   :  { %6582 = vsyncadd [#allocation6], 4294901696 }
  0x6b   :  { %6583 = dma.done.wait [#allocation9], 8224  }
  0x6c   :  { %6584 = vsyncadd [#allocation9], 4294959072 }
  0x6d   :  { %6585 = dma.done.wait [#allocation12], 2064  }
  0x6e   :  { %6586 = vsyncadd [#allocation12], 4294965232 }
  0x6f   :  { %6587 = dma.done.wait [#allocation15], 1040  }
  0x70   :  { %6588 = vsyncadd [#allocation15], 4294966256  ;;  %v5482_v0 = vld [vmem:[#allocation5 + $0xe4] ss:$16 sps:$4 sm:$0xff]   ;;  %v5486_v2 = vld [vmem:[#allocation5 + $0xe0] ss:$16 sps:$4 sm:$0xff]   ;;  %v158_v38 = vlaneseq }
  0x71   :  { %v5484_v1 = vld [vmem:[#allocation5 + $0x2e4] ss:$16 sps:$4 sm:$0xff]   ;;  %3348 = vmatprep.subr.bf16.mxu0 %v5482_v0  ;;  %v5487_v3 = vld [vmem:[#allocation5 + $0x2e0] ss:$16 sps:$4 sm:$0xff]   ;;  %v6606_v36 = vmov 1983009808  }
  0x72   :  { %3389 = vmatprep.subr.bf16.mxu1 %v5484_v1  ;;  %v5488_v4 = vld [vmem:[#allocation5 + $0xc4] ss:$16 sps:$4 sm:$0xff]   ;;  %3349 = vmatpush1.bf16.msra.mxu0 %v5486_v2  ;;  %v5492_v6 = vld [vmem:[#allocation5 + $0xc0] ss:$16 sps:$4 sm:$0xff]   ;;  %v156_v37 = vunpack.c.l.s4 %v6606_v36  ;;  %v6687_v43 = vshrl.u32 %v158_v38, 7  ;;  %vm6608_vm0 = vmmov 0  }
  0x73   :  { %3390 = vmatpush1.bf16.msra.mxu1 %v5487_v3  ;;  %v5490_v5 = vld [vmem:[#allocation5 + $0x2c4] ss:$16 sps:$4 sm:$0xff]   ;;  %3350 = vmatprep.subr.bf16.mxu0 %v5488_v4  ;;  %v5493_v7 = vld [vmem:[#allocation5 + $0x2c0] ss:$16 sps:$4 sm:$0xff]   ;;  %s6609_s6 = smov [#allocation17]  }
  0x74   :  { %3391 = vmatprep.subr.bf16.mxu1 %v5490_v5  ;;  %v5494_v8 = vld [vmem:[#allocation5 + $0xa4] ss:$16 sps:$4 sm:$0xff]   ;;  %v5498_v10 = vld [vmem:[#allocation5 + $0xa0] ss:$16 sps:$4 sm:$0xff]   ;;  %v157_v42 = vunpack.c.0.s8 %v156_v37  ;;  %s4796_s8 = sshll.u32 %s6609_s6, 4  ;;  %s4797_s8 = int_to_ptr.vmem [resolvable:$true] %s4796_s8 }
  0x75   :  { %v5496_v9 = vld [vmem:[#allocation5 + $0x2a4] ss:$16 sps:$4 sm:$0xff]   ;;  %v5499_v11 = vld [vmem:[#allocation5 + $0x2a0] ss:$16 sps:$4 sm:$0xff]   ;;  %s6559_s11 = scalar_lea.vmem %s4797_s8, 16  ;;  %s6563_s12 = scalar_lea.vmem %s4797_s8, 32 }
  0x76   :  { %3351 = vmatpush1.bf16.msra.mxu0 %v5492_v6  ;;  %v5500_v12 = vld [vmem:[#allocation5 + $0x84] ss:$16 sps:$4 sm:$0xff]   ;;  %v5504_v14 = vld [vmem:[#allocation5 + $0x80] ss:$16 sps:$4 sm:$0xff]   ;;  %v6690_v49 = vsub.s32 %v157_v42, %v6687_v43  ;;  %v147_v42 = vld [vmem:[#allocation2 + $0x8] sm:$0xff]  ;;  %p6560_p3 = scmp.ne.s32.totalorder %s4797_s8, %s6559_s11  ;;  %p6564_p4 = scmp.lt.s32.totalorder %s4797_s8, %s4797_s8 }
  0x77   :  { %3392 = vmatpush1.bf16.msra.mxu1 %v5493_v7  ;;  %3352 = vmatprep.subr.bf16.mxu0 %v5494_v8  ;;  %v5502_v13 = vld [vmem:[#allocation5 + $0x284] ss:$16 sps:$4 sm:$0xff]   ;;  %v5505_v15 = vld [vmem:[#allocation5 + $0x280] ss:$16 sps:$4 sm:$0xff]   ;;  %p6565_p5 = scmp.lt.s32.totalorder %s6563_s12, %s6559_s11 }
  0x78   :  { %3393 = vmatprep.subr.bf16.mxu1 %v5496_v9  ;;  %v5506_v16 = vld [vmem:[#allocation5 + $0x64] ss:$16 sps:$4 sm:$0xff]   ;;  %v5510_v18 = vld [vmem:[#allocation5 + $0x60] ss:$16 sps:$4 sm:$0xff]  }
  0x79   :  { %v5508_v17 = vld [vmem:[#allocation5 + $0x264] ss:$16 sps:$4 sm:$0xff]   ;;  %v5511_v19 = vld [vmem:[#allocation5 + $0x260] ss:$16 sps:$4 sm:$0xff]   ;;  %p6566_p6 = por %p6565_p5, %p6564_p4 }
  0x7a   :  { %3353 = vmatpush1.bf16.msra.mxu0 %v5498_v10  ;;  %v5512_v20 = vld [vmem:[#allocation5 + $0x44] ss:$16 sps:$4 sm:$0xff]   ;;  %v5516_v22 = vld [vmem:[#allocation5 + $0x40] ss:$16 sps:$4 sm:$0xff]  }
  0x7b   :  { %3394 = vmatpush1.bf16.msra.mxu1 %v5499_v11  ;;  %3354 = vmatprep.subr.bf16.mxu0 %v5500_v12  ;;  %v5514_v21 = vld [vmem:[#allocation5 + $0x244] ss:$16 sps:$4 sm:$0xff]   ;;  %v5517_v23 = vld [vmem:[#allocation5 + $0x240] ss:$16 sps:$4 sm:$0xff]   ;;  %p6567_p7 = pnand %p6566_p6, %p6560_p3 }
  0x7c   :  { %3395 = vmatprep.subr.bf16.mxu1 %v5502_v13  ;;  %v5518_v24 = vld [vmem:[#allocation5 + $0x24] ss:$16 sps:$4 sm:$0xff]   ;;  %v5522_v26 = vld [vmem:[#allocation5 + $0x20] ss:$16 sps:$4 sm:$0xff]  }
  0x7d   :  { %v5520_v25 = vld [vmem:[#allocation5 + $0x224] ss:$16 sps:$4 sm:$0xff]   ;;  %v5523_v27 = vld [vmem:[#allocation5 + $0x220] ss:$16 sps:$4 sm:$0xff]  }
  0x7e   :  { %3355 = vmatpush1.bf16.msra.mxu0 %v5504_v14  ;;  %v5524_v28 = vld [vmem:[#allocation5 + $0x4] ss:$16 sps:$4 sm:$0xff]   ;;  %v5528_v30 = vld [vmem:[#allocation5] ss:$16 sps:$4 sm:$0xff]  }
  0x7f   :  { %3396 = vmatpush1.bf16.msra.mxu1 %v5505_v15  ;;  %3356 = vmatprep.subr.bf16.mxu0 %v5506_v16  ;;  %v5526_v29 = vld [vmem:[#allocation5 + $0x204] ss:$16 sps:$4 sm:$0xff]   ;;  %v5529_v31 = vld [vmem:[#allocation5 + $0x200] ss:$16 sps:$4 sm:$0xff]  }
  0x80   :  { %3397 = vmatprep.subr.bf16.mxu1 %v5508_v17  ;;  %v5530_v32 = vld [vmem:[#allocation5 + $0x1e4] ss:$16 sps:$4 sm:$0xff]   ;;  %v5534_v34 = vld [vmem:[#allocation5 + $0x1e0] ss:$16 sps:$4 sm:$0xff]  }
  0x81   :  { %v5532_v33 = vld [vmem:[#allocation5 + $0x3e4] ss:$16 sps:$4 sm:$0xff]   ;;  %v5535_v35 = vld [vmem:[#allocation5 + $0x3e0] ss:$16 sps:$4 sm:$0xff]  }
  0x82   :  { %3357 = vmatpush1.bf16.msra.mxu0 %v5510_v18  ;;  %v5536_v39 = vld [vmem:[#allocation5 + $0x1c4] ss:$16 sps:$4 sm:$0xff]   ;;  %v5540_v41 = vld [vmem:[#allocation5 + $0x1c0] ss:$16 sps:$4 sm:$0xff]  }
  0x83   :  { %3398 = vmatpush1.bf16.msra.mxu1 %v5511_v19  ;;  %3358 = vmatprep.subr.bf16.mxu0 %v5512_v20  ;;  %v5538_v40 = vld [vmem:[#allocation5 + $0x3c4] ss:$16 sps:$4 sm:$0xff]   ;;  %v5541_v44 = vld [vmem:[#allocation5 + $0x3c0] ss:$16 sps:$4 sm:$0xff]  }
  0x84   :  { %3399 = vmatprep.subr.bf16.mxu1 %v5514_v21  ;;  %v5542_v45 = vld [vmem:[#allocation5 + $0x1a4] ss:$16 sps:$4 sm:$0xff]   ;;  %v5546_v47 = vld [vmem:[#allocation5 + $0x1a0] ss:$16 sps:$4 sm:$0xff]  }
  0x85   :  { %v5544_v46 = vld [vmem:[#allocation5 + $0x3a4] ss:$16 sps:$4 sm:$0xff]   ;;  %v5547_v48 = vld [vmem:[#allocation5 + $0x3a0] ss:$16 sps:$4 sm:$0xff]  }
  0x86   :  { %3359 = vmatpush1.bf16.msra.mxu0 %v5516_v22  ;;  %v5548_v50 = vld [vmem:[#allocation5 + $0x184] ss:$16 sps:$4 sm:$0xff]   ;;  %v5552_v53 = vld [vmem:[#allocation5 + $0x180] ss:$16 sps:$4 sm:$0xff]  }
  0x87   :  { %3400 = vmatpush1.bf16.msra.mxu1 %v5517_v23  ;;  %3360 = vmatprep.subr.bf16.mxu0 %v5518_v24  ;;  %v5550_v51 = vld [vmem:[#allocation5 + $0x384] ss:$16 sps:$4 sm:$0xff]   ;;  %v5553_v56 = vld [vmem:[#allocation5 + $0x380] ss:$16 sps:$4 sm:$0xff]  }
  0x88   :  { %3401 = vmatprep.subr.bf16.mxu1 %v5520_v25  ;;  %v146_v52 = vld [vmem:[#allocation2] sm:$0xff] }
  0x89   :  { %v161_v54 = vrot.slane %v146_v52, %v6690_v49  ;;  %v154_v55 = vcombine.high %v146_v52, %v146_v52  ;;  %v5554_v57 = vld [vmem:[#allocation5 + $0x164] ss:$16 sps:$4 sm:$0xff]   ;;  %v5558_v61 = vld [vmem:[#allocation5 + $0x160] ss:$16 sps:$4 sm:$0xff]  }
  0x8a   :  { %3361 = vmatpush1.bf16.msra.mxu0 %v5522_v26  ;;  %v5556_v58 = vld [vmem:[#allocation5 + $0x364] ss:$16 sps:$4 sm:$0xff]   ;;  %v5559_v0 = vld [vmem:[#allocation5 + $0x360] ss:$16 sps:$4 sm:$0xff]  }
  0x8b   :  { %3402 = vmatpush1.bf16.msra.mxu1 %v5523_v27  ;;  %3362 = vmatprep.subr.bf16.mxu0 %v5524_v28  ;;  %v169_v59 = vcombine.high %v161_v54, %v161_v54  ;;  %v168_v60 = vrot.slane %v154_v55, %v6690_v49  ;;  %v5560_v1 = vld [vmem:[#allocation5 + $0x144] ss:$16 sps:$4 sm:$0xff]   ;;  %v5564_v4 = vld [vmem:[#allocation5 + $0x140] ss:$16 sps:$4 sm:$0xff]   ;;  %v6700_v16 = vpack.c.bf16 %v161_v54, %v161_v54 }
  0x8c   :  { %3403 = vmatprep.subr.bf16.mxu1 %v5526_v29  ;;  %v5562_v2 = vld [vmem:[#allocation5 + $0x344] ss:$16 sps:$4 sm:$0xff]   ;;  %v5565_v5 = vld [vmem:[#allocation5 + $0x340] ss:$16 sps:$4 sm:$0xff]  }
  0x8d   :  { %v6694_v62 = vpack.c.bf16 %v169_v59, %v169_v59  ;;  %v170_v63 = vcombine.high %v168_v60, %v168_v60  ;;  %v5566_v6 = vld [vmem:[#allocation5 + $0x124] ss:$16 sps:$4 sm:$0xff]   ;;  %v5570_v8 = vld [vmem:[#allocation5 + $0x120] ss:$16 sps:$4 sm:$0xff]   ;;  %v6702_v17 = vpack.c.bf16 %v168_v60, %v168_v60 }
  0x8e   :  { %3363 = vmatpush1.bf16.msra.mxu0 %v5528_v30  ;;  %v5568_v7 = vld [vmem:[#allocation5 + $0x324] ss:$16 sps:$4 sm:$0xff]   ;;  %v5571_v9 = vld [vmem:[#allocation5 + $0x320] ss:$16 sps:$4 sm:$0xff]  }
  0x8f   :  { %3404 = vmatpush1.bf16.msra.mxu1 %v5529_v31  ;;  %3364 = vmatprep.subr.bf16.mxu0 %v5530_v32  ;;  %v6696_v3 = vpack.c.bf16 %v170_v63, %v170_v63  ;;  %v5572_v10 = vld [vmem:[#allocation5 + $0x104] ss:$16 sps:$4 sm:$0xff]   ;;  %v5576_v12 = vld [vmem:[#allocation5 + $0x100] ss:$16 sps:$4 sm:$0xff]  }
  0x90   :  { %3405 = vmatprep.subr.bf16.mxu1 %v5532_v33  ;;  %3380 = vmatprep.mubr.bf16.mxu0 %v6694_v62  ;;  %v5574_v11 = vld [vmem:[#allocation5 + $0x304] ss:$16 sps:$4 sm:$0xff]   ;;  %v5577_v13 = vld [vmem:[#allocation5 + $0x300] ss:$16 sps:$4 sm:$0xff]  }
  0x91   :  { %3421 = vmatprep.mubr.bf16.mxu1 %v6696_v3  ;;  %v5581_v14 = vld [vmem:[#allocation5 + $0x4e4] ss:$16 sps:$4 sm:$0xff]   ;;  %v5579_v18 = vld [vmem:[#allocation5 + $0x4e0] ss:$16 sps:$4 sm:$0xff]  }
  0x92   :  { %3365 = vmatpush2.bf16.msra.mxu0 %v5534_v34  ;;  %v5584_v15 = vld [vmem:[#allocation5 + $0x6e4] ss:$16 sps:$4 sm:$0xff]   ;;  %v5582_v19 = vld [vmem:[#allocation5 + $0x6e0] ss:$16 sps:$4 sm:$0xff]  }
  0x93   :  { %3406 = vmatpush2.bf16.msra.mxu1 %v5535_v35  ;;  %3366 = vmatprep.subr.bf16.mxu0 %v5536_v39  ;;  %v5587_v20 = vld [vmem:[#allocation5 + $0x4c4] ss:$16 sps:$4 sm:$0xff]   ;;  %v5585_v22 = vld [vmem:[#allocation5 + $0x4c0] ss:$16 sps:$4 sm:$0xff]  }
  0x94   :  { %3407 = vmatprep.subr.bf16.mxu1 %v5538_v40  ;;  %v5590_v21 = vld [vmem:[#allocation5 + $0x6c4] ss:$16 sps:$4 sm:$0xff]   ;;  %v5588_v23 = vld [vmem:[#allocation5 + $0x6c0] ss:$16 sps:$4 sm:$0xff]  }
  0x95   :  { %v5593_v24 = vld [vmem:[#allocation5 + $0x4a4] ss:$16 sps:$4 sm:$0xff]   ;;  %v5591_v26 = vld [vmem:[#allocation5 + $0x4a0] ss:$16 sps:$4 sm:$0xff]  }
  0x96   :  { %3367 = vmatpush2.bf16.msra.mxu0 %v5540_v41  ;;  %v5596_v25 = vld [vmem:[#allocation5 + $0x6a4] ss:$16 sps:$4 sm:$0xff]   ;;  %v5594_v27 = vld [vmem:[#allocation5 + $0x6a0] ss:$16 sps:$4 sm:$0xff]  }
  0x97   :  { %3408 = vmatpush2.bf16.msra.mxu1 %v5541_v44  ;;  %3368 = vmatprep.subr.bf16.mxu0 %v5542_v45  ;;  %v5599_v28 = vld [vmem:[#allocation5 + $0x484] ss:$16 sps:$4 sm:$0xff]   ;;  %v5597_v30 = vld [vmem:[#allocation5 + $0x480] ss:$16 sps:$4 sm:$0xff]   ;;  %v6707_v44 = vrot.slane %v147_v42, %v6690_v49  ;;  %v171_v45 = vcombine.high %v147_v42, %v147_v42 }
  0x98   :  { %3409 = vmatprep.subr.bf16.mxu1 %v5544_v46  ;;  %v5602_v29 = vld [vmem:[#allocation5 + $0x684] ss:$16 sps:$4 sm:$0xff]   ;;  %v5600_v31 = vld [vmem:[#allocation5 + $0x680] ss:$16 sps:$4 sm:$0xff]  }
  0x99   :  { %v5605_v32 = vld [vmem:[#allocation5 + $0x464] ss:$16 sps:$4 sm:$0xff]   ;;  %v5603_v34 = vld [vmem:[#allocation5 + $0x460] ss:$16 sps:$4 sm:$0xff]  }
  0x9a   :  { %3369 = vmatpush2.bf16.msra.mxu0 %v5546_v47  ;;  %v5608_v33 = vld [vmem:[#allocation5 + $0x664] ss:$16 sps:$4 sm:$0xff]   ;;  %v5606_v35 = vld [vmem:[#allocation5 + $0x660] ss:$16 sps:$4 sm:$0xff]  }
  0x9b   :  { %3410 = vmatpush2.bf16.msra.mxu1 %v5547_v48  ;;  %3370 = vmatprep.subr.bf16.mxu0 %v5548_v50  ;;  %v5611_v36 = vld [vmem:[#allocation5 + $0x444] ss:$16 sps:$4 sm:$0xff]   ;;  %v5609_v38 = vld [vmem:[#allocation5 + $0x440] ss:$16 sps:$4 sm:$0xff]   ;;  %v186_v48 = vcombine.high %v6707_v44, %v6707_v44  ;;  %v6712_v50 = vrot.slane %v171_v45, %v6690_v49 }
  0x9c   :  { %3411 = vmatprep.subr.bf16.mxu1 %v5550_v51  ;;  %v5614_v37 = vld [vmem:[#allocation5 + $0x644] ss:$16 sps:$4 sm:$0xff]   ;;  %v5612_v39 = vld [vmem:[#allocation5 + $0x640] ss:$16 sps:$4 sm:$0xff]  }
  0x9d   :  { %v5617_v40 = vld [vmem:[#allocation5 + $0x424] ss:$16 sps:$4 sm:$0xff]   ;;  %v5615_v46 = vld [vmem:[#allocation5 + $0x420] ss:$16 sps:$4 sm:$0xff]   ;;  %v187_v54 = vcombine.high %v6712_v50, %v6712_v50 }
  0x9e   :  { %3371 = vmatpush2.bf16.msra.mxu0 %v5552_v53  ;;  %v5620_v41 = vld [vmem:[#allocation5 + $0x624] ss:$16 sps:$4 sm:$0xff]   ;;  %v5618_v47 = vld [vmem:[#allocation5 + $0x620] ss:$16 sps:$4 sm:$0xff]   ;;  %v6714_v53 = vpack.c.bf16 %v186_v48, %v186_v48 }
  0x9f   :  { %3412 = vmatpush2.bf16.msra.mxu1 %v5553_v56  ;;  %3372 = vmatprep.subr.bf16.mxu0 %v5554_v57  ;;  %v5623_v51 = vld [vmem:[#allocation5 + $0x404] ss:$16 sps:$4 sm:$0xff]   ;;  %v5621_v55 = vld [vmem:[#allocation5 + $0x400] ss:$16 sps:$4 sm:$0xff]   ;;  %v6718_v57 = vpack.c.bf16 %v187_v54, %v187_v54 }
  0xa0   :  { %3413 = vmatprep.subr.bf16.mxu1 %v5556_v58  ;;  %v5626_v52 = vld [vmem:[#allocation5 + $0x604] ss:$16 sps:$4 sm:$0xff]   ;;  %v5624_v56 = vld [vmem:[#allocation5 + $0x600] ss:$16 sps:$4 sm:$0xff]  }
  0xa1   :  { %v5629_v58 = vld [vmem:[#allocation5 + $0x5e4] ss:$16 sps:$4 sm:$0xff]   ;;  %v5627_v60 = vld [vmem:[#allocation5 + $0x5e0] ss:$16 sps:$4 sm:$0xff]  }
  0xa2   :  { %3373 = vmatpush2.bf16.msra.mxu0 %v5558_v61  ;;  %v5632_v59 = vld [vmem:[#allocation5 + $0x7e4] ss:$16 sps:$4 sm:$0xff]   ;;  %v5630_v61 = vld [vmem:[#allocation5 + $0x7e0] ss:$16 sps:$4 sm:$0xff]  }
  0xa3   :  { %3414 = vmatpush2.bf16.msra.mxu1 %v5559_v0  ;;  %3374 = vmatprep.subr.bf16.mxu0 %v5560_v1  ;;  %v5635_v63 = vld [vmem:[#allocation5 + $0x5c4] ss:$16 sps:$4 sm:$0xff]   ;;  %v5633_v1 = vld [vmem:[#allocation5 + $0x5c0] ss:$16 sps:$4 sm:$0xff]  }
  0xa4   :  { %3415 = vmatprep.subr.bf16.mxu1 %v5562_v2  ;;  %v5638_v0 = vld [vmem:[#allocation5 + $0x7c4] ss:$16 sps:$4 sm:$0xff]   ;;  %v5636_v2 = vld [vmem:[#allocation5 + $0x7c0] ss:$16 sps:$4 sm:$0xff]  }
  0xa5   :  { %v5685_v45 = vld [vmem:[#allocation5 + $0xac0] ss:$16 sps:$4 sm:$0xff]  }
  0xa6   :  { %3375 = vmatpush2.bf16.msra.mxu0 %v5564_v4  ;;  %v5641_v4 = vld [vmem:[#allocation5 + $0x5a4] ss:$16 sps:$4 sm:$0xff]   ;;  %v5691_v54 = vld [vmem:[#allocation5 + $0xaa0] ss:$16 sps:$4 sm:$0xff]  }
  0xa7   :  { %3416 = vmatpush2.bf16.msra.mxu1 %v5565_v5  ;;  %3376 = vmatprep.subr.bf16.mxu0 %v5566_v6  ;;  %v5644_v5 = vld [vmem:[#allocation5 + $0x7a4] ss:$16 sps:$4 sm:$0xff]   ;;  %v5639_v6 = vld [vmem:[#allocation5 + $0x5a0] ss:$16 sps:$4 sm:$0xff]  }
  0xa8   :  { %3417 = vmatprep.subr.bf16.mxu1 %v5568_v7  ;;  %v5642_v7 = vld [vmem:[#allocation5 + $0x7a0] ss:$16 sps:$4 sm:$0xff]  }
  0xaa   :  { %3377 = vmatpush2.bf16.msra.mxu0 %v5570_v8  ;;  %v5647_v8 = vld [vmem:[#allocation5 + $0x584] ss:$16 sps:$4 sm:$0xff]  }
  0xab   :  { %3418 = vmatpush2.bf16.msra.mxu1 %v5571_v9  ;;  %3378 = vmatprep.subr.bf16.mxu0 %v5572_v10  ;;  %v5650_v9 = vld [vmem:[#allocation5 + $0x784] ss:$16 sps:$4 sm:$0xff]   ;;  %v5645_v10 = vld [vmem:[#allocation5 + $0x580] ss:$16 sps:$4 sm:$0xff]  }
  0xac   :  { %3419 = vmatprep.subr.bf16.mxu1 %v5574_v11  ;;  %v5648_v11 = vld [vmem:[#allocation5 + $0x780] ss:$16 sps:$4 sm:$0xff]  }
  0xae   :  { %3379 = vmatpush2.bf16.msra.mxu0 %v5576_v12  ;;  %v5653_v12 = vld [vmem:[#allocation5 + $0x564] ss:$16 sps:$4 sm:$0xff]  }
  0xaf   :  { %3420 = vmatpush2.bf16.msra.mxu1 %v5577_v13  ;;  %3430 = vmatprep.subr.bf16.mxu0 %v5581_v14  ;;  %v5656_v13 = vld [vmem:[#allocation5 + $0x764] ss:$16 sps:$4 sm:$0xff]   ;;  %v5651_v14 = vld [vmem:[#allocation5 + $0x560] ss:$16 sps:$4 sm:$0xff]  }
  0xb0   :  { %3471 = vmatprep.subr.bf16.mxu1 %v5584_v15  ;;  %v5654_v15 = vld [vmem:[#allocation5 + $0x760] ss:$16 sps:$4 sm:$0xff]  }
  0xb1   :  { %3381 = vmatmul.mubr.bf16.vlgmr.msra.gmra.mxu0 %v6700_v16 }
  0xb2   :  { %3422 = vmatmul.mubr.bf16.vlgmr.msra.gmra.mxu1 %v6702_v17  ;;  %3431 = vmatpush1.bf16.msra.mxu0 %v5579_v18  ;;  %v5659_v18 = vld [vmem:[#allocation5 + $0x544] ss:$16 sps:$4 sm:$0xff]  }
  0xb3   :  { %3472 = vmatpush1.bf16.msra.mxu1 %v5582_v19  ;;  %3432 = vmatprep.subr.bf16.mxu0 %v5587_v20  ;;  %v5662_v19 = vld [vmem:[#allocation5 + $0x744] ss:$16 sps:$4 sm:$0xff]   ;;  %v5657_v20 = vld [vmem:[#allocation5 + $0x540] ss:$16 sps:$4 sm:$0xff]  }
  0xb4   :  { %3473 = vmatprep.subr.bf16.mxu1 %v5590_v21  ;;  %3462 = vmatprep.mubr.bf16.mxu0 %v6714_v53  ;;  %v5660_v21 = vld [vmem:[#allocation5 + $0x740] ss:$16 sps:$4 sm:$0xff]  }
  0xb5   :  { %3503 = vmatprep.mubr.bf16.mxu1 %v6718_v57 }
  0xb6   :  { %3433 = vmatpush1.bf16.msra.mxu0 %v5585_v22  ;;  %v5665_v22 = vld [vmem:[#allocation5 + $0x524] ss:$16 sps:$4 sm:$0xff]  }
  0xb7   :  { %3474 = vmatpush1.bf16.msra.mxu1 %v5588_v23  ;;  %3434 = vmatprep.subr.bf16.mxu0 %v5593_v24  ;;  %v5668_v23 = vld [vmem:[#allocation5 + $0x724] ss:$16 sps:$4 sm:$0xff]   ;;  %v5663_v24 = vld [vmem:[#allocation5 + $0x520] ss:$16 sps:$4 sm:$0xff]  }
  0xb8   :  { %3475 = vmatprep.subr.bf16.mxu1 %v5596_v25  ;;  %v5666_v25 = vld [vmem:[#allocation5 + $0x720] ss:$16 sps:$4 sm:$0xff]  }
  0xba   :  { %3435 = vmatpush1.bf16.msra.mxu0 %v5591_v26  ;;  %v5671_v26 = vld [vmem:[#allocation5 + $0x504] ss:$16 sps:$4 sm:$0xff]  }
  0xbb   :  { %3476 = vmatpush1.bf16.msra.mxu1 %v5594_v27  ;;  %3436 = vmatprep.subr.bf16.mxu0 %v5599_v28  ;;  %v5674_v27 = vld [vmem:[#allocation5 + $0x704] ss:$16 sps:$4 sm:$0xff]   ;;  %v5669_v28 = vld [vmem:[#allocation5 + $0x500] ss:$16 sps:$4 sm:$0xff]  }
  0xbc   :  { %3477 = vmatprep.subr.bf16.mxu1 %v5602_v29  ;;  %v5672_v29 = vld [vmem:[#allocation5 + $0x700] ss:$16 sps:$4 sm:$0xff]  }
  0xbe   :  { %3437 = vmatpush1.bf16.msra.mxu0 %v5597_v30  ;;  %v5678_v30 = vld [vmem:[#allocation5 + $0x8e4] ss:$16 sps:$4 sm:$0xff]  }
  0xbf   :  { %3478 = vmatpush1.bf16.msra.mxu1 %v5600_v31  ;;  %3438 = vmatprep.subr.bf16.mxu0 %v5605_v32  ;;  %v5681_v31 = vld [vmem:[#allocation5 + $0xae4] ss:$16 sps:$4 sm:$0xff]   ;;  %v6724_v32 = vpack.c.bf16 %v6707_v44, %v6707_v44 }
  0xc0   :  { %3479 = vmatprep.subr.bf16.mxu1 %v5608_v33  ;;  %v6728_v33 = vpack.c.bf16 %v6712_v50, %v6712_v50 }
  0xc2   :  { %3439 = vmatpush1.bf16.msra.mxu0 %v5603_v34  ;;  %v5676_v34 = vld [vmem:[#allocation5 + $0x8e0] ss:$16 sps:$4 sm:$0xff]  }
  0xc3   :  { %3480 = vmatpush1.bf16.msra.mxu1 %v5606_v35  ;;  %3440 = vmatprep.subr.bf16.mxu0 %v5611_v36  ;;  %v5679_v35 = vld [vmem:[#allocation5 + $0xae0] ss:$16 sps:$4 sm:$0xff]   ;;  %v5684_v36 = vld [vmem:[#allocation5 + $0x8c4] ss:$16 sps:$4 sm:$0xff]  }
  0xc4   :  { %3481 = vmatprep.subr.bf16.mxu1 %v5614_v37  ;;  %v148_v37 = vld [vmem:[#allocation2 + $0x10] sm:$0xff] }
  0xc6   :  { %3441 = vmatpush1.bf16.msra.mxu0 %v5609_v38  ;;  %v5687_v38 = vld [vmem:[#allocation5 + $0xac4] ss:$16 sps:$4 sm:$0xff]  }
  0xc7   :  { %3482 = vmatpush1.bf16.msra.mxu1 %v5612_v39  ;;  %3442 = vmatprep.subr.bf16.mxu0 %v5617_v40  ;;  %v6731_v39 = vrot.slane %v148_v37, %v6690_v49  ;;  %v188_v40 = vcombine.high %v148_v37, %v148_v37  ;;  %v5751_v37 = vld [vmem:[#allocation5 + $0xb60] ss:$16 sps:$4 sm:$0xff]  }
  0xc8   :  { %3483 = vmatprep.subr.bf16.mxu1 %v5620_v41  ;;  %v5682_v41 = vld [vmem:[#allocation5 + $0x8c0] ss:$16 sps:$4 sm:$0xff]  }
  0xc9   :  { %v203_v42 = vcombine.high %v6731_v39, %v6731_v39  ;;  %v6738_v44 = vrot.slane %v188_v40, %v6690_v49  ;;  %v5759_v40 = vld [vmem:[#allocation5 + $0xb44] ss:$16 sps:$4 sm:$0xff]  }
  0xca   :  { %3443 = vmatpush1.bf16.msra.mxu0 %v5615_v46  ;;  %v5690_v46 = vld [vmem:[#allocation5 + $0x8a4] ss:$16 sps:$4 sm:$0xff]  }
  0xcb   :  { %3484 = vmatpush1.bf16.msra.mxu1 %v5618_v47  ;;  %3444 = vmatprep.subr.bf16.mxu0 %v5623_v51  ;;  %v5693_v47 = vld [vmem:[#allocation5 + $0xaa4] ss:$16 sps:$4 sm:$0xff]   ;;  %v6740_v48 = vpack.c.bf16 %v203_v42, %v203_v42  ;;  %v204_v50 = vcombine.high %v6738_v44, %v6738_v44  ;;  %v5688_v51 = vld [vmem:[#allocation5 + $0x8a0] ss:$16 sps:$4 sm:$0xff]   ;;  %v149_v42 = vld [vmem:[#allocation2 + $0x18] sm:$0xff] }
  0xcc   :  { %3485 = vmatprep.subr.bf16.mxu1 %v5626_v52 }
  0xcd   :  { %v6745_v52 = vpack.c.bf16 %v204_v50, %v204_v50  ;;  %v205_v50 = vcombine.high %v149_v42, %v149_v42 }
  0xce   :  { %3445 = vmatpush1.bf16.msra.mxu0 %v5621_v55  ;;  %v5696_v55 = vld [vmem:[#allocation5 + $0x884] ss:$16 sps:$4 sm:$0xff]  }
  0xcf   :  { %3486 = vmatpush1.bf16.msra.mxu1 %v5624_v56  ;;  %3446 = vmatprep.subr.bf16.mxu0 %v5629_v58  ;;  %v5699_v56 = vld [vmem:[#allocation5 + $0xa84] ss:$16 sps:$4 sm:$0xff]   ;;  %v5694_v58 = vld [vmem:[#allocation5 + $0x880] ss:$16 sps:$4 sm:$0xff]  }
  0xd0   :  { %3487 = vmatprep.subr.bf16.mxu1 %v5632_v59  ;;  %v5697_v59 = vld [vmem:[#allocation5 + $0xa80] ss:$16 sps:$4 sm:$0xff]  }
  0xd2   :  { %3447 = vmatpush2.bf16.msra.mxu0 %v5627_v60  ;;  %v5702_v60 = vld [vmem:[#allocation5 + $0x864] ss:$16 sps:$4 sm:$0xff]  }
  0xd3   :  { %3488 = vmatpush2.bf16.msra.mxu1 %v5630_v61  ;;  %3448 = vmatprep.subr.bf16.mxu0 %v5635_v63  ;;  %v5705_v61 = vld [vmem:[#allocation5 + $0xa64] ss:$16 sps:$4 sm:$0xff]   ;;  %v5700_v63 = vld [vmem:[#allocation5 + $0x860] ss:$16 sps:$4 sm:$0xff]  }
  0xd4   :  { %3489 = vmatprep.subr.bf16.mxu1 %v5638_v0  ;;  %v5703_v0 = vld [vmem:[#allocation5 + $0xa60] ss:$16 sps:$4 sm:$0xff]  }
  0xd6   :  { %3449 = vmatpush2.bf16.msra.mxu0 %v5633_v1  ;;  %v5708_v1 = vld [vmem:[#allocation5 + $0x844] ss:$16 sps:$4 sm:$0xff]  }
  0xd7   :  { %3490 = vmatpush2.bf16.msra.mxu1 %v5636_v2  ;;  %3450 = vmatprep.subr.bf16.mxu0 %v5641_v4  ;;  %v5711_v2 = vld [vmem:[#allocation5 + $0xa44] ss:$16 sps:$4 sm:$0xff]   ;;  %v5706_v4 = vld [vmem:[#allocation5 + $0x840] ss:$16 sps:$4 sm:$0xff]  }
  0xd8   :  { %3491 = vmatprep.subr.bf16.mxu1 %v5644_v5  ;;  %v5709_v5 = vld [vmem:[#allocation5 + $0xa40] ss:$16 sps:$4 sm:$0xff]  }
  0xda   :  { %3451 = vmatpush2.bf16.msra.mxu0 %v5639_v6  ;;  %v5714_v6 = vld [vmem:[#allocation5 + $0x824] ss:$16 sps:$4 sm:$0xff]  }
  0xdb   :  { %3492 = vmatpush2.bf16.msra.mxu1 %v5642_v7  ;;  %3452 = vmatprep.subr.bf16.mxu0 %v5647_v8  ;;  %v5717_v7 = vld [vmem:[#allocation5 + $0xa24] ss:$16 sps:$4 sm:$0xff]   ;;  %v5712_v8 = vld [vmem:[#allocation5 + $0x820] ss:$16 sps:$4 sm:$0xff]  }
  0xdc   :  { %3493 = vmatprep.subr.bf16.mxu1 %v5650_v9  ;;  %v5715_v9 = vld [vmem:[#allocation5 + $0xa20] ss:$16 sps:$4 sm:$0xff]  }
  0xde   :  { %3453 = vmatpush2.bf16.msra.mxu0 %v5645_v10  ;;  %v5720_v10 = vld [vmem:[#allocation5 + $0x804] ss:$16 sps:$4 sm:$0xff]  }
  0xdf   :  { %3494 = vmatpush2.bf16.msra.mxu1 %v5648_v11  ;;  %3454 = vmatprep.subr.bf16.mxu0 %v5653_v12  ;;  %v5723_v11 = vld [vmem:[#allocation5 + $0xa04] ss:$16 sps:$4 sm:$0xff]   ;;  %v5718_v12 = vld [vmem:[#allocation5 + $0x800] ss:$16 sps:$4 sm:$0xff]  }
  0xe0   :  { %3495 = vmatprep.subr.bf16.mxu1 %v5656_v13  ;;  %v5721_v13 = vld [vmem:[#allocation5 + $0xa00] ss:$16 sps:$4 sm:$0xff]  }
  0xe2   :  { %3455 = vmatpush2.bf16.msra.mxu0 %v5651_v14  ;;  %v5726_v14 = vld [vmem:[#allocation5 + $0x9e4] ss:$16 sps:$4 sm:$0xff]  }
  0xe3   :  { %3496 = vmatpush2.bf16.msra.mxu1 %v5654_v15  ;;  %3456 = vmatprep.subr.bf16.mxu0 %v5659_v18  ;;  %v5729_v15 = vld [vmem:[#allocation5 + $0xbe4] ss:$16 sps:$4 sm:$0xff]   ;;  %v5724_v18 = vld [vmem:[#allocation5 + $0x9e0] ss:$16 sps:$4 sm:$0xff]  }
  0xe4   :  { %3497 = vmatprep.subr.bf16.mxu1 %v5662_v19  ;;  %v5727_v19 = vld [vmem:[#allocation5 + $0xbe0] ss:$16 sps:$4 sm:$0xff]  }
  0xe6   :  { %3457 = vmatpush2.bf16.msra.mxu0 %v5657_v20  ;;  %v5732_v20 = vld [vmem:[#allocation5 + $0x9c4] ss:$16 sps:$4 sm:$0xff]  }
  0xe7   :  { %3498 = vmatpush2.bf16.msra.mxu1 %v5660_v21  ;;  %3458 = vmatprep.subr.bf16.mxu0 %v5665_v22  ;;  %v5735_v21 = vld [vmem:[#allocation5 + $0xbc4] ss:$16 sps:$4 sm:$0xff]   ;;  %v5730_v22 = vld [vmem:[#allocation5 + $0x9c0] ss:$16 sps:$4 sm:$0xff]  }
  0xe8   :  { %3499 = vmatprep.subr.bf16.mxu1 %v5668_v23  ;;  %v5733_v23 = vld [vmem:[#allocation5 + $0xbc0] ss:$16 sps:$4 sm:$0xff]  }
  0xea   :  { %3459 = vmatpush2.bf16.msra.mxu0 %v5663_v24  ;;  %v5738_v24 = vld [vmem:[#allocation5 + $0x9a4] ss:$16 sps:$4 sm:$0xff]  }
  0xeb   :  { %3500 = vmatpush2.bf16.msra.mxu1 %v5666_v25  ;;  %3460 = vmatprep.subr.bf16.mxu0 %v5671_v26  ;;  %v5741_v25 = vld [vmem:[#allocation5 + $0xba4] ss:$16 sps:$4 sm:$0xff]   ;;  %v5736_v26 = vld [vmem:[#allocation5 + $0x9a0] ss:$16 sps:$4 sm:$0xff]  }
  0xec   :  { %3501 = vmatprep.subr.bf16.mxu1 %v5674_v27  ;;  %v5739_v27 = vld [vmem:[#allocation5 + $0xba0] ss:$16 sps:$4 sm:$0xff]  }
  0xee   :  { %3461 = vmatpush2.bf16.msra.mxu0 %v5669_v28  ;;  %v5744_v28 = vld [vmem:[#allocation5 + $0x984] ss:$16 sps:$4 sm:$0xff]  }
  0xef   :  { %3502 = vmatpush2.bf16.msra.mxu1 %v5672_v29  ;;  %3512 = vmatprep.subr.bf16.mxu0 %v5678_v30  ;;  %v5747_v29 = vld [vmem:[#allocation5 + $0xb84] ss:$16 sps:$4 sm:$0xff]   ;;  %v5742_v30 = vld [vmem:[#allocation5 + $0x980] ss:$16 sps:$4 sm:$0xff]  }
  0xf0   :  { %3553 = vmatprep.subr.bf16.mxu1 %v5681_v31  ;;  %v5745_v31 = vld [vmem:[#allocation5 + $0xb80] ss:$16 sps:$4 sm:$0xff]  }
  0xf1   :  { %3463 = vmatmul.mubr.bf16.vlgmr.msra.gmra.mxu0 %v6724_v32 }
  0xf2   :  { %3504 = vmatmul.mubr.bf16.vlgmr.msra.gmra.mxu1 %v6728_v33  ;;  %3513 = vmatpush1.bf16.msra.mxu0 %v5676_v34  ;;  %v5750_v34 = vld [vmem:[#allocation5 + $0x964] ss:$16 sps:$4 sm:$0xff]  }
  0xf3   :  { %3554 = vmatpush1.bf16.msra.mxu1 %v5679_v35  ;;  %3514 = vmatprep.subr.bf16.mxu0 %v5684_v36  ;;  %v5753_v35 = vld [vmem:[#allocation5 + $0xb64] ss:$16 sps:$4 sm:$0xff]   ;;  %v5748_v36 = vld [vmem:[#allocation5 + $0x960] ss:$16 sps:$4 sm:$0xff]  }
  0xf4   :  { %3555 = vmatprep.subr.bf16.mxu1 %v5687_v38  ;;  %3544 = vmatprep.mubr.bf16.mxu0 %v6740_v48  ;;  %v5756_v38 = vld [vmem:[#allocation5 + $0x944] ss:$16 sps:$4 sm:$0xff]  }
  0xf5   :  { %3585 = vmatprep.mubr.bf16.mxu1 %v6745_v52 }
  0xf6   :  { %3515 = vmatpush1.bf16.msra.mxu0 %v5682_v41  ;;  %v5754_v41 = vld [vmem:[#allocation5 + $0x940] ss:$16 sps:$4 sm:$0xff]  }
  0xf7   :  { %3556 = vmatpush1.bf16.msra.mxu1 %v5685_v45  ;;  %3516 = vmatprep.subr.bf16.mxu0 %v5690_v46  ;;  %v5757_v45 = vld [vmem:[#allocation5 + $0xb40] ss:$16 sps:$4 sm:$0xff]   ;;  %v5762_v46 = vld [vmem:[#allocation5 + $0x924] ss:$16 sps:$4 sm:$0xff]  }
  0xf8   :  { %3557 = vmatprep.subr.bf16.mxu1 %v5693_v47  ;;  %v5765_v47 = vld [vmem:[#allocation5 + $0xb24] ss:$16 sps:$4 sm:$0xff]  }
  0xfa   :  { %3517 = vmatpush1.bf16.msra.mxu0 %v5688_v51  ;;  %v5760_v51 = vld [vmem:[#allocation5 + $0x920] ss:$16 sps:$4 sm:$0xff]  }
  0xfb   :  { %3558 = vmatpush1.bf16.msra.mxu1 %v5691_v54  ;;  %3518 = vmatprep.subr.bf16.mxu0 %v5696_v55  ;;  %v5763_v54 = vld [vmem:[#allocation5 + $0xb20] ss:$16 sps:$4 sm:$0xff]   ;;  %v5768_v55 = vld [vmem:[#allocation5 + $0x904] ss:$16 sps:$4 sm:$0xff]  }
  0xfc   :  { %3559 = vmatprep.subr.bf16.mxu1 %v5699_v56  ;;  %v5771_v56 = vld [vmem:[#allocation5 + $0xb04] ss:$16 sps:$4 sm:$0xff]  }
  0xfe   :  { %3519 = vmatpush1.bf16.msra.mxu0 %v5694_v58  ;;  %v6749_v58 = vrot.slane %v149_v42, %v6690_v49  ;;  %v5821_v42 = vld [vmem:[#allocation5 + $0xde0] ss:$16 sps:$4 sm:$0xff]  }
  0xff   :  { %3560 = vmatpush1.bf16.msra.mxu1 %v5697_v59  ;;  %3520 = vmatprep.subr.bf16.mxu0 %v5702_v60  ;;  %v6752_v59 = vrot.slane %v205_v50, %v6690_v49  ;;  %v5766_v60 = vld [vmem:[#allocation5 + $0x900] ss:$16 sps:$4 sm:$0xff]   ;;  %v6764_v49 = vpack.c.bf16 %v6738_v44, %v6738_v44 }
 0x100   :  { %3561 = vmatprep.subr.bf16.mxu1 %v5705_v61  ;;  %v5769_v61 = vld [vmem:[#allocation5 + $0xb00] ss:$16 sps:$4 sm:$0xff]  }
 0x101   :  { %v5782_v44 = vld [vmem:[#allocation5 + $0xec0] ss:$16 sps:$4 sm:$0xff]  }
 0x102   :  { %3521 = vmatpush1.bf16.msra.mxu0 %v5700_v63  ;;  %v5775_v63 = vld [vmem:[#allocation5 + $0xce4] ss:$16 sps:$4 sm:$0xff]   ;;  %v5827_v50 = vld [vmem:[#allocation5 + $0xdc0] ss:$16 sps:$4 sm:$0xff]  }
 0x103   :  { %3562 = vmatpush1.bf16.msra.mxu1 %v5703_v0  ;;  %3522 = vmatprep.subr.bf16.mxu0 %v5708_v1  ;;  %v5778_v0 = vld [vmem:[#allocation5 + $0xee4] ss:$16 sps:$4 sm:$0xff]   ;;  %v220_v1 = vcombine.high %v6749_v58, %v6749_v58 }
 0x104   :  { %3563 = vmatprep.subr.bf16.mxu1 %v5711_v2  ;;  %v221_v2 = vcombine.high %v6752_v59, %v6752_v59 }
 0x106   :  { %3523 = vmatpush1.bf16.msra.mxu0 %v5706_v4  ;;  %v6760_v4 = vpack.c.bf16 %v6731_v39, %v6731_v39  ;;  %v5779_v39 = vld [vmem:[#allocation5 + $0xcc0] ss:$16 sps:$4 sm:$0xff]  }
 0x107   :  { %3564 = vmatpush1.bf16.msra.mxu1 %v5709_v5  ;;  %3524 = vmatprep.subr.bf16.mxu0 %v5714_v6  ;;  %v5773_v5 = vld [vmem:[#allocation5 + $0xce0] ss:$16 sps:$4 sm:$0xff]  }
 0x108   :  { %3565 = vmatprep.subr.bf16.mxu1 %v5717_v7  ;;  %v5776_v6 = vld [vmem:[#allocation5 + $0xee0] ss:$16 sps:$4 sm:$0xff]   ;;  %v5781_v7 = vld [vmem:[#allocation5 + $0xcc4] ss:$16 sps:$4 sm:$0xff]  }
 0x10a   :  { %3525 = vmatpush1.bf16.msra.mxu0 %v5712_v8  ;;  %v5784_v8 = vld [vmem:[#allocation5 + $0xec4] ss:$16 sps:$4 sm:$0xff]  }
 0x10b   :  { %3566 = vmatpush1.bf16.msra.mxu1 %v5715_v9  ;;  %3526 = vmatprep.subr.bf16.mxu0 %v5720_v10  ;;  %v6766_v9 = vpack.c.bf16 %v220_v1, %v220_v1  ;;  %v6768_v10 = vpack.c.bf16 %v221_v2, %v221_v2  ;;  %v5842_v1 = vld [vmem:[#allocation5 + $0xf80] ss:$16 sps:$4 sm:$0xff]   ;;  %v5847_v2 = vld [vmem:[#allocation5 + $0xd64] ss:$16 sps:$4 sm:$0xff]  }
 0x10c   :  { %3567 = vmatprep.subr.bf16.mxu1 %v5723_v11  ;;  %v5787_v11 = vld [vmem:[#allocation5 + $0xca4] ss:$16 sps:$4 sm:$0xff]  }
 0x10e   :  { %3527 = vmatpush1.bf16.msra.mxu0 %v5718_v12  ;;  %v5790_v12 = vld [vmem:[#allocation5 + $0xea4] ss:$16 sps:$4 sm:$0xff]  }
 0x10f   :  { %3568 = vmatpush1.bf16.msra.mxu1 %v5721_v13  ;;  %3528 = vmatprep.subr.bf16.mxu0 %v5726_v14  ;;  %v5785_v13 = vld [vmem:[#allocation5 + $0xca0] ss:$16 sps:$4 sm:$0xff]  }
 0x110   :  { %3569 = vmatprep.subr.bf16.mxu1 %v5729_v15  ;;  %v5788_v14 = vld [vmem:[#allocation5 + $0xea0] ss:$16 sps:$4 sm:$0xff]   ;;  %v5793_v15 = vld [vmem:[#allocation5 + $0xc84] ss:$16 sps:$4 sm:$0xff]  }
 0x112   :  { %3529 = vmatpush2.bf16.msra.mxu0 %v5724_v18  ;;  %v5796_v18 = vld [vmem:[#allocation5 + $0xe84] ss:$16 sps:$4 sm:$0xff]  }
 0x113   :  { %3570 = vmatpush2.bf16.msra.mxu1 %v5727_v19  ;;  %3530 = vmatprep.subr.bf16.mxu0 %v5732_v20  ;;  %v5791_v19 = vld [vmem:[#allocation5 + $0xc80] ss:$16 sps:$4 sm:$0xff]  }
 0x114   :  { %3571 = vmatprep.subr.bf16.mxu1 %v5735_v21  ;;  %v5794_v20 = vld [vmem:[#allocation5 + $0xe80] ss:$16 sps:$4 sm:$0xff]   ;;  %v5799_v21 = vld [vmem:[#allocation5 + $0xc64] ss:$16 sps:$4 sm:$0xff]  }
 0x116   :  { %3531 = vmatpush2.bf16.msra.mxu0 %v5730_v22  ;;  %v5802_v22 = vld [vmem:[#allocation5 + $0xe64] ss:$16 sps:$4 sm:$0xff]  }
 0x117   :  { %3572 = vmatpush2.bf16.msra.mxu1 %v5733_v23  ;;  %3532 = vmatprep.subr.bf16.mxu0 %v5738_v24  ;;  %v5797_v23 = vld [vmem:[#allocation5 + $0xc60] ss:$16 sps:$4 sm:$0xff]  }
 0x118   :  { %3573 = vmatprep.subr.bf16.mxu1 %v5741_v25  ;;  %v5800_v24 = vld [vmem:[#allocation5 + $0xe60] ss:$16 sps:$4 sm:$0xff]   ;;  %v5805_v25 = vld [vmem:[#allocation5 + $0xc44] ss:$16 sps:$4 sm:$0xff]  }
 0x11a   :  { %3533 = vmatpush2.bf16.msra.mxu0 %v5736_v26  ;;  %v5808_v26 = vld [vmem:[#allocation5 + $0xe44] ss:$16 sps:$4 sm:$0xff]  }
 0x11b   :  { %3574 = vmatpush2.bf16.msra.mxu1 %v5739_v27  ;;  %3534 = vmatprep.subr.bf16.mxu0 %v5744_v28  ;;  %v5803_v27 = vld [vmem:[#allocation5 + $0xc40] ss:$16 sps:$4 sm:$0xff]  }
 0x11c   :  { %3575 = vmatprep.subr.bf16.mxu1 %v5747_v29  ;;  %v5806_v28 = vld [vmem:[#allocation5 + $0xe40] ss:$16 sps:$4 sm:$0xff]   ;;  %v5811_v29 = vld [vmem:[#allocation5 + $0xc24] ss:$16 sps:$4 sm:$0xff]  }
 0x11e   :  { %3535 = vmatpush2.bf16.msra.mxu0 %v5742_v30  ;;  %v5814_v30 = vld [vmem:[#allocation5 + $0xe24] ss:$16 sps:$4 sm:$0xff]  }
 0x11f   :  { %3576 = vmatpush2.bf16.msra.mxu1 %v5745_v31  ;;  %3536 = vmatprep.subr.bf16.mxu0 %v5750_v34  ;;  %v5809_v31 = vld [vmem:[#allocation5 + $0xc20] ss:$16 sps:$4 sm:$0xff]  }
 0x120   :  { %3577 = vmatprep.subr.bf16.mxu1 %v5753_v35  ;;  %v5812_v34 = vld [vmem:[#allocation5 + $0xe20] ss:$16 sps:$4 sm:$0xff]   ;;  %v5817_v35 = vld [vmem:[#allocation5 + $0xc04] ss:$16 sps:$4 sm:$0xff]  }
 0x122   :  { %3537 = vmatpush2.bf16.msra.mxu0 %v5748_v36  ;;  %v5820_v36 = vld [vmem:[#allocation5 + $0xe04] ss:$16 sps:$4 sm:$0xff]  }
 0x123   :  { %3578 = vmatpush2.bf16.msra.mxu1 %v5751_v37  ;;  %3538 = vmatprep.subr.bf16.mxu0 %v5756_v38  ;;  %v5815_v37 = vld [vmem:[#allocation5 + $0xc00] ss:$16 sps:$4 sm:$0xff]  }
 0x124   :  { %3579 = vmatprep.subr.bf16.mxu1 %v5759_v40  ;;  %v5818_v38 = vld [vmem:[#allocation5 + $0xe00] ss:$16 sps:$4 sm:$0xff]   ;;  %v5823_v40 = vld [vmem:[#allocation5 + $0xde4] ss:$16 sps:$4 sm:$0xff]  }
 0x126   :  { %3539 = vmatpush2.bf16.msra.mxu0 %v5754_v41  ;;  %v5826_v41 = vld [vmem:[#allocation5 + $0xfe4] ss:$16 sps:$4 sm:$0xff]  }
 0x127   :  { %3580 = vmatpush2.bf16.msra.mxu1 %v5757_v45  ;;  %3540 = vmatprep.subr.bf16.mxu0 %v5762_v46  ;;  %v5824_v45 = vld [vmem:[#allocation5 + $0xfe0] ss:$16 sps:$4 sm:$0xff]   ;;  %v5829_v46 = vld [vmem:[#allocation5 + $0xdc4] ss:$16 sps:$4 sm:$0xff]  }
 0x128   :  { %3581 = vmatprep.subr.bf16.mxu1 %v5765_v47  ;;  %v5832_v47 = vld [vmem:[#allocation5 + $0xfc4] ss:$16 sps:$4 sm:$0xff]  }
 0x12a   :  { %3541 = vmatpush2.bf16.msra.mxu0 %v5760_v51  ;;  %v5830_v51 = vld [vmem:[#allocation5 + $0xfc0] ss:$16 sps:$4 sm:$0xff]  }
 0x12b   :  { %3582 = vmatpush2.bf16.msra.mxu1 %v5763_v54  ;;  %3542 = vmatprep.subr.bf16.mxu0 %v5768_v55  ;;  %v5835_v54 = vld [vmem:[#allocation5 + $0xda4] ss:$16 sps:$4 sm:$0xff]  }
 0x12c   :  { %3583 = vmatprep.subr.bf16.mxu1 %v5771_v56  ;;  %v5838_v55 = vld [vmem:[#allocation5 + $0xfa4] ss:$16 sps:$4 sm:$0xff]   ;;  %v5833_v56 = vld [vmem:[#allocation5 + $0xda0] ss:$16 sps:$4 sm:$0xff]  }
 0x12e   :  { %3543 = vmatpush2.bf16.msra.mxu0 %v5766_v60  ;;  %v5836_v60 = vld [vmem:[#allocation5 + $0xfa0] ss:$16 sps:$4 sm:$0xff]  }
 0x12f   :  { %3584 = vmatpush2.bf16.msra.mxu1 %v5769_v61  ;;  %3594 = vmatprep.subr.bf16.mxu0 %v5775_v63  ;;  %v5841_v61 = vld [vmem:[#allocation5 + $0xd84] ss:$16 sps:$4 sm:$0xff]  }
 0x130   :  { %3635 = vmatprep.subr.bf16.mxu1 %v5778_v0  ;;  %v5844_v63 = vld [vmem:[#allocation5 + $0xf84] ss:$16 sps:$4 sm:$0xff]   ;;  %v5839_v0 = vld [vmem:[#allocation5 + $0xd80] ss:$16 sps:$4 sm:$0xff]  }
 0x131   :  { %3545 = vmatmul.mubr.bf16.vlgmr.msra.gmra.mxu0 %v6760_v4 }
 0x132   :  { %3586 = vmatmul.mubr.bf16.vlgmr.msra.gmra.mxu1 %v6764_v49  ;;  %3595 = vmatpush1.bf16.msra.mxu0 %v5773_v5  ;;  %v5850_v5 = vld [vmem:[#allocation5 + $0xf64] ss:$16 sps:$4 sm:$0xff]  }
 0x133   :  { %3636 = vmatpush1.bf16.msra.mxu1 %v5776_v6  ;;  %3596 = vmatprep.subr.bf16.mxu0 %v5781_v7  ;;  %v5845_v6 = vld [vmem:[#allocation5 + $0xd60] ss:$16 sps:$4 sm:$0xff]  }
 0x134   :  { %3637 = vmatprep.subr.bf16.mxu1 %v5784_v8  ;;  %3626 = vmatprep.mubr.bf16.mxu0 %v6766_v9  ;;  %v5848_v7 = vld [vmem:[#allocation5 + $0xf60] ss:$16 sps:$4 sm:$0xff]   ;;  %v5853_v8 = vld [vmem:[#allocation5 + $0xd44] ss:$16 sps:$4 sm:$0xff]  }
 0x135   :  { %3667 = vmatprep.mubr.bf16.mxu1 %v6768_v10 }
 0x136   :  { %3597 = vmatpush1.bf16.msra.mxu0 %v5779_v39  ;;  %v5856_v39 = vld [vmem:[#allocation5 + $0xf44] ss:$16 sps:$4 sm:$0xff]  }
 0x137   :  { %3638 = vmatpush1.bf16.msra.mxu1 %v5782_v44  ;;  %3598 = vmatprep.subr.bf16.mxu0 %v5787_v11  ;;  %v5851_v44 = vld [vmem:[#allocation5 + $0xd40] ss:$16 sps:$4 sm:$0xff]  }
 0x138   :  { %3639 = vmatprep.subr.bf16.mxu1 %v5790_v12  ;;  %v5854_v11 = vld [vmem:[#allocation5 + $0xf40] ss:$16 sps:$4 sm:$0xff]   ;;  %v5859_v12 = vld [vmem:[#allocation5 + $0xd24] ss:$16 sps:$4 sm:$0xff]  }
 0x13a   :  { %3599 = vmatpush1.bf16.msra.mxu0 %v5785_v13  ;;  %v5862_v13 = vld [vmem:[#allocation5 + $0xf24] ss:$16 sps:$4 sm:$0xff]  }
 0x13b   :  { %3640 = vmatpush1.bf16.msra.mxu1 %v5788_v14  ;;  %3600 = vmatprep.subr.bf16.mxu0 %v5793_v15  ;;  %v5857_v14 = vld [vmem:[#allocation5 + $0xd20] ss:$16 sps:$4 sm:$0xff]  }
 0x13c   :  { %3641 = vmatprep.subr.bf16.mxu1 %v5796_v18  ;;  %v5860_v15 = vld [vmem:[#allocation5 + $0xf20] ss:$16 sps:$4 sm:$0xff]   ;;  %v5865_v18 = vld [vmem:[#allocation5 + $0xd04] ss:$16 sps:$4 sm:$0xff]  }
 0x13e   :  { %3601 = vmatpush1.bf16.msra.mxu0 %v5791_v19  ;;  %v5868_v19 = vld [vmem:[#allocation5 + $0xf04] ss:$16 sps:$4 sm:$0xff]  }
 0x13f   :  { %3642 = vmatpush1.bf16.msra.mxu1 %v5794_v20  ;;  %3602 = vmatprep.subr.bf16.mxu0 %v5799_v21  ;;  %v5863_v20 = vld [vmem:[#allocation5 + $0xd00] ss:$16 sps:$4 sm:$0xff]  }
 0x140   :  { %3643 = vmatprep.subr.bf16.mxu1 %v5802_v22  ;;  %v5866_v21 = vld [vmem:[#allocation5 + $0xf00] ss:$16 sps:$4 sm:$0xff]  }
 0x141   :  { %v766_v22 = vld [vmem:[#allocation7] sm:$0xf] }
 0x142   :  { %3603 = vmatpush1.bf16.msra.mxu0 %v5797_v23  ;;  %v770_v23 = vsub.s32 0, %v6687_v43 }
 0x143   :  { %3644 = vmatpush1.bf16.msra.mxu1 %v5800_v24  ;;  %3604 = vmatprep.subr.bf16.mxu0 %v5805_v25  ;;  %v5872_v24 = vld [vmem:[#allocation5 + $0xec] ss:$16 sps:$4 sm:$0xff]  }
 0x144   :  { %3645 = vmatprep.subr.bf16.mxu1 %v5808_v26  ;;  %v5875_v25 = vld [vmem:[#allocation5 + $0x2ec] ss:$16 sps:$4 sm:$0xff]   ;;  %v774_v26 = vsub.s32 1, %v6687_v43 }
 0x146   :  { %3605 = vmatpush1.bf16.msra.mxu0 %v5803_v27  ;;  %v6778_v27 = vpack.c.bf16 %v6749_v58, %v6749_v58  ;;  %v5876_v58 = vld [vmem:[#allocation5 + $0xc8] ss:$16 sps:$4 sm:$0xff]  }
 0x147   :  { %3646 = vmatpush1.bf16.msra.mxu1 %v5806_v28  ;;  %3606 = vmatprep.subr.bf16.mxu0 %v5811_v29  ;;  %v6782_v28 = vpack.c.bf16 %v6752_v59, %v6752_v59  ;;  %v5870_v29 = vld [vmem:[#allocation5 + $0xe8] ss:$16 sps:$4 sm:$0xff]  }
 0x148   :  { %3647 = vmatprep.subr.bf16.mxu1 %v5814_v30  ;;  %v771_v30 = vrot.slane %v766_v22, %v770_v23  ;;  %v5879_v59 = vld [vmem:[#allocation5 + $0x2c8] ss:$16 sps:$4 sm:$0xff]  }
 0x14a   :  { %3607 = vmatpush1.bf16.msra.mxu0 %v5809_v31  ;;  %v5873_v31 = vld [vmem:[#allocation5 + $0x2e8] ss:$16 sps:$4 sm:$0xff]  }
 0x14b   :  { %3648 = vmatpush1.bf16.msra.mxu1 %v5812_v34  ;;  %3608 = vmatprep.subr.bf16.mxu0 %v5817_v35  ;;  %v5878_v34 = vld [vmem:[#allocation5 + $0xcc] ss:$16 sps:$4 sm:$0xff]  }
 0x14c   :  { %3649 = vmatprep.subr.bf16.mxu1 %v5820_v36  ;;  %v5881_v35 = vld [vmem:[#allocation5 + $0x2cc] ss:$16 sps:$4 sm:$0xff]   ;;  %v775_v36 = vrot.slane %v766_v22, %v774_v26 }
 0x14d   :  { %v5920_v22 = vld [vmem:[#allocation5 + $0x1ec] ss:$16 sps:$4 sm:$0xff]  }
 0x14e   :  { %3609 = vmatpush1.bf16.msra.mxu0 %v5815_v37 }
 0x14f   :  { %3650 = vmatpush1.bf16.msra.mxu1 %v5818_v38  ;;  %3610 = vmatprep.subr.bf16.mxu0 %v5823_v40 }
 0x150   :  { %3651 = vmatprep.subr.bf16.mxu1 %v5826_v41  ;;  %v5884_v41 = vld [vmem:[#allocation5 + $0xac] ss:$16 sps:$4 sm:$0xff]  }
 0x152   :  { %3611 = vmatpush2.bf16.msra.mxu0 %v5821_v42 }
 0x153   :  { %3652 = vmatpush2.bf16.msra.mxu1 %v5824_v45  ;;  %3612 = vmatprep.subr.bf16.mxu0 %v5829_v46  ;;  %v5887_v46 = vld [vmem:[#allocation5 + $0x2ac] ss:$16 sps:$4 sm:$0xff]  }
 0x154   :  { %3653 = vmatprep.subr.bf16.mxu1 %v5832_v47 }
 0x156   :  { %3613 = vmatpush2.bf16.msra.mxu0 %v5827_v50 }
 0x157   :  { %3654 = vmatpush2.bf16.msra.mxu1 %v5830_v51  ;;  %3614 = vmatprep.subr.bf16.mxu0 %v5835_v54  ;;  %v5882_v51 = vld [vmem:[#allocation5 + $0xa8] ss:$16 sps:$4 sm:$0xff]  }
 0x158   :  { %3655 = vmatprep.subr.bf16.mxu1 %v5838_v55  ;;  %v5885_v54 = vld [vmem:[#allocation5 + $0x2a8] ss:$16 sps:$4 sm:$0xff]  }
 0x15a   :  { %3615 = vmatpush2.bf16.msra.mxu0 %v5833_v56 }
 0x15b   :  { %3656 = vmatpush2.bf16.msra.mxu1 %v5836_v60  ;;  %3616 = vmatprep.subr.bf16.mxu0 %v5841_v61 }
 0x15c   :  { %3657 = vmatprep.subr.bf16.mxu1 %v5844_v63 }
 0x15e   :  { %3617 = vmatpush2.bf16.msra.mxu0 %v5839_v0  ;;  %v5890_v0 = vld [vmem:[#allocation5 + $0x8c] ss:$16 sps:$4 sm:$0xff]  }
 0x15f   :  { %3658 = vmatpush2.bf16.msra.mxu1 %v5842_v1  ;;  %3618 = vmatprep.subr.bf16.mxu0 %v5847_v2  ;;  %v5893_v1 = vld [vmem:[#allocation5 + $0x28c] ss:$16 sps:$4 sm:$0xff]   ;;  %v5888_v2 = vld [vmem:[#allocation5 + $0x88] ss:$16 sps:$4 sm:$0xff]  }
 0x160   :  { %3659 = vmatprep.subr.bf16.mxu1 %v5850_v5  ;;  %v5891_v5 = vld [vmem:[#allocation5 + $0x288] ss:$16 sps:$4 sm:$0xff]  }
 0x162   :  { %3619 = vmatpush2.bf16.msra.mxu0 %v5845_v6  ;;  %v5894_v6 = vld [vmem:[#allocation5 + $0x68] ss:$16 sps:$4 sm:$0xff]  }
 0x163   :  { %3660 = vmatpush2.bf16.msra.mxu1 %v5848_v7  ;;  %3620 = vmatprep.subr.bf16.mxu0 %v5853_v8  ;;  %v5897_v7 = vld [vmem:[#allocation5 + $0x268] ss:$16 sps:$4 sm:$0xff]   ;;  %v5902_v8 = vld [vmem:[#allocation5 + $0x4c] ss:$16 sps:$4 sm:$0xff]  }
 0x164   :  { %3661 = vmatprep.subr.bf16.mxu1 %v5856_v39  ;;  %v5905_v39 = vld [vmem:[#allocation5 + $0x24c] ss:$16 sps:$4 sm:$0xff]  }
 0x166   :  { %3621 = vmatpush2.bf16.msra.mxu0 %v5851_v44  ;;  %v5900_v44 = vld [vmem:[#allocation5 + $0x48] ss:$16 sps:$4 sm:$0xff]  }
 0x167   :  { %3662 = vmatpush2.bf16.msra.mxu1 %v5854_v11  ;;  %3622 = vmatprep.subr.bf16.mxu0 %v5859_v12  ;;  %v5903_v11 = vld [vmem:[#allocation5 + $0x248] ss:$16 sps:$4 sm:$0xff]   ;;  %v5908_v12 = vld [vmem:[#allocation5 + $0x2c] ss:$16 sps:$4 sm:$0xff]  }
 0x168   :  { %3663 = vmatprep.subr.bf16.mxu1 %v5862_v13  ;;  %v5911_v13 = vld [vmem:[#allocation5 + $0x22c] ss:$16 sps:$4 sm:$0xff]  }
 0x16a   :  { %3623 = vmatpush2.bf16.msra.mxu0 %v5857_v14  ;;  %v5906_v14 = vld [vmem:[#allocation5 + $0x28] ss:$16 sps:$4 sm:$0xff]  }
 0x16b   :  { %3664 = vmatpush2.bf16.msra.mxu1 %v5860_v15  ;;  %3624 = vmatprep.subr.bf16.mxu0 %v5865_v18  ;;  %v5909_v15 = vld [vmem:[#allocation5 + $0x228] ss:$16 sps:$4 sm:$0xff]   ;;  %v5914_v18 = vld [vmem:[#allocation5 + $0xc] ss:$16 sps:$4 sm:$0xff]  }
 0x16c   :  { %3665 = vmatprep.subr.bf16.mxu1 %v5868_v19  ;;  %v5917_v19 = vld [vmem:[#allocation5 + $0x20c] ss:$16 sps:$4 sm:$0xff]  }
 0x16e   :  { %3625 = vmatpush2.bf16.msra.mxu0 %v5863_v20  ;;  %v5912_v20 = vld [vmem:[#allocation5 + $0x8] ss:$16 sps:$4 sm:$0xff]  }
 0x16f   :  { %3666 = vmatpush2.bf16.msra.mxu1 %v5866_v21  ;;  %3676 = vmatprep.subr.bf16.mxu0 %v5872_v24  ;;  %v5915_v21 = vld [vmem:[#allocation5 + $0x208] ss:$16 sps:$4 sm:$0xff]   ;;  %v5923_v24 = vld [vmem:[#allocation5 + $0x3ec] ss:$16 sps:$4 sm:$0xff]  }
 0x170   :  { %3717 = vmatprep.subr.bf16.mxu1 %v5875_v25  ;;  %v5918_v25 = vld [vmem:[#allocation5 + $0x1e8] ss:$16 sps:$4 sm:$0xff]  }
 0x171   :  { %v3382_v37 = vpop.f32.mrf.mxu0  ;;  %3627 = vmatmul.mubr.bf16.vlgmr.msra.gmra.mxu0 %v6778_v27 }
 0x172   :  { %v3423_v38 = vpop.f32.mrf.mxu1  ;;  %3668 = vmatmul.mubr.bf16.vlgmr.msra.gmra.mxu1 %v6782_v28  ;;  %v3383_v40 = vadd.f32 %v3382_v37, %v771_v30  ;;  %3677 = vmatpush1.bf16.msra.mxu0 %v5870_v29  ;;  %v5921_v29 = vld [vmem:[#allocation5 + $0x3e8] ss:$16 sps:$4 sm:$0xff]   ;;  %v5926_v30 = vld [vmem:[#allocation5 + $0x1cc] ss:$16 sps:$4 sm:$0xff]  }
 0x173   :  { %3718 = vmatpush1.bf16.msra.mxu1 %v5873_v31  ;;  %v3384_v42 = vpop.f32.mrf.mxu0  ;;  %3678 = vmatprep.subr.bf16.mxu0 %v5878_v34  ;;  %v5929_v31 = vld [vmem:[#allocation5 + $0x3cc] ss:$16 sps:$4 sm:$0xff]   ;;  %v5924_v34 = vld [vmem:[#allocation5 + $0x1c8] ss:$16 sps:$4 sm:$0xff]  }
 0x174   :  { %v3425_v45 = vpop.f32.mrf.mxu1  ;;  %3719 = vmatprep.subr.bf16.mxu1 %v5881_v35  ;;  %v6790_v47 = vadd.f32 %v3423_v38, %v3383_v40  ;;  %v3385_v50 = vadd.f32 %v3384_v42, %v775_v36  ;;  %3708 = vmatprep.mubr.bf16.mxu0 %v6694_v62  ;;  %v5896_v62 = vld [vmem:[#allocation5 + $0x6c] ss:$16 sps:$4 sm:$0xff]   ;;  %v5927_v35 = vld [vmem:[#allocation5 + $0x3c8] ss:$16 sps:$4 sm:$0xff]  }
 0x175   :  { %3749 = vmatprep.mubr.bf16.mxu1 %v6696_v3  ;;  %v3386_v55 = vpop.f32.mrf.mxu0  ;;  %v5899_v3 = vld [vmem:[#allocation5 + $0x26c] ss:$16 sps:$4 sm:$0xff]   ;;  %v5930_v37 = vld [vmem:[#allocation5 + $0x1a8] ss:$16 sps:$4 sm:$0xff]  }
 0x176   :  { %v3427_v56 = vpop.f32.mrf.mxu1  ;;  %v6794_v60 = vadd.f32 %v3425_v45, %v3385_v50  ;;  %3679 = vmatpush1.bf16.msra.mxu0 %v5876_v58  ;;  %v5932_v36 = vld [vmem:[#allocation5 + $0x1ac] ss:$16 sps:$4 sm:$0xff]   ;;  %v5933_v38 = vld [vmem:[#allocation5 + $0x3a8] ss:$16 sps:$4 sm:$0xff]  }
 0x177   :  { %3720 = vmatpush1.bf16.msra.mxu1 %v5879_v59  ;;  %v3387_v61 = vpop.f32.mrf.mxu0  ;;  %3680 = vmatprep.subr.bf16.mxu0 %v5884_v41  ;;  %v5935_v58 = vld [vmem:[#allocation5 + $0x3ac] ss:$16 sps:$4 sm:$0xff]   ;;  %v5936_v41 = vld [vmem:[#allocation5 + $0x188] ss:$16 sps:$4 sm:$0xff]  }
 0x178   :  { %v3428_v63 = vpop.f32.mrf.mxu1  ;;  %3721 = vmatprep.subr.bf16.mxu1 %v5887_v46  ;;  %v5938_v59 = vld [vmem:[#allocation5 + $0x18c] ss:$16 sps:$4 sm:$0xff]   ;;  %v5939_v42 = vld [vmem:[#allocation5 + $0x388] ss:$16 sps:$4 sm:$0xff]  }
 0x179   :  { %v5941_v40 = vld [vmem:[#allocation5 + $0x38c] ss:$16 sps:$4 sm:$0xff]   ;;  %v5942_v50 = vld [vmem:[#allocation5 + $0x168] ss:$16 sps:$4 sm:$0xff]  }
 0x17a   :  { %3681 = vmatpush1.bf16.msra.mxu0 %v5882_v51  ;;  %v5944_v45 = vld [vmem:[#allocation5 + $0x16c] ss:$16 sps:$4 sm:$0xff]   ;;  %v5945_v51 = vld [vmem:[#allocation5 + $0x368] ss:$16 sps:$4 sm:$0xff]  }
 0x17b   :  { %3722 = vmatpush1.bf16.msra.mxu1 %v5885_v54  ;;  %3682 = vmatprep.subr.bf16.mxu0 %v5890_v0  ;;  %v5947_v46 = vld [vmem:[#allocation5 + $0x36c] ss:$16 sps:$4 sm:$0xff]   ;;  %v5948_v56 = vld [vmem:[#allocation5 + $0x148] ss:$16 sps:$4 sm:$0xff]  }
 0x17c   :  { %3723 = vmatprep.subr.bf16.mxu1 %v5893_v1  ;;  %v5950_v54 = vld [vmem:[#allocation5 + $0x14c] ss:$16 sps:$4 sm:$0xff]   ;;  %v5951_v61 = vld [vmem:[#allocation5 + $0x348] ss:$16 sps:$4 sm:$0xff]  }
 0x17d   :  { %v5953_v55 = vld [vmem:[#allocation5 + $0x34c] ss:$16 sps:$4 sm:$0xff]   ;;  %v5954_v1 = vld [vmem:[#allocation5 + $0x128] ss:$16 sps:$4 sm:$0xff]  }
 0x17e   :  { %3683 = vmatpush1.bf16.msra.mxu0 %v5888_v2  ;;  %v5956_v63 = vld [vmem:[#allocation5 + $0x12c] ss:$16 sps:$4 sm:$0xff]   ;;  %v5957_v2 = vld [vmem:[#allocation5 + $0x328] ss:$16 sps:$4 sm:$0xff]  }
 0x17f   :  { %3724 = vmatpush1.bf16.msra.mxu1 %v5891_v5  ;;  %3684 = vmatprep.subr.bf16.mxu0 %v5896_v62  ;;  %v5959_v0 = vld [vmem:[#allocation5 + $0x32c] ss:$16 sps:$4 sm:$0xff]  }
 0x180   :  { %3725 = vmatprep.subr.bf16.mxu1 %v5899_v3  ;;  %v5962_v5 = vld [vmem:[#allocation5 + $0x10c] ss:$16 sps:$4 sm:$0xff]   ;;  %v5960_v3 = vld [vmem:[#allocation5 + $0x108] ss:$16 sps:$4 sm:$0xff]  }
 0x181   :  { %v5965_v62 = vld [vmem:[#allocation5 + $0x30c] ss:$16 sps:$4 sm:$0xff]  }
 0x182   :  { %3685 = vmatpush1.bf16.msra.mxu0 %v5894_v6  ;;  %v5963_v6 = vld [vmem:[#allocation5 + $0x308] ss:$16 sps:$4 sm:$0xff]  }
 0x183   :  { %3726 = vmatpush1.bf16.msra.mxu1 %v5897_v7  ;;  %3686 = vmatprep.subr.bf16.mxu0 %v5902_v8  ;;  %v5968_v7 = vld [vmem:[#allocation5 + $0x4ec] ss:$16 sps:$4 sm:$0xff]  }
 0x184   :  { %3727 = vmatprep.subr.bf16.mxu1 %v5905_v39  ;;  %v5971_v8 = vld [vmem:[#allocation5 + $0x6ec] ss:$16 sps:$4 sm:$0xff]   ;;  %v5966_v39 = vld [vmem:[#allocation5 + $0x4e8] ss:$16 sps:$4 sm:$0xff]  }
 0x186   :  { %3687 = vmatpush1.bf16.msra.mxu0 %v5900_v44  ;;  %v5969_v44 = vld [vmem:[#allocation5 + $0x6e8] ss:$16 sps:$4 sm:$0xff]  }
 0x187   :  { %3728 = vmatpush1.bf16.msra.mxu1 %v5903_v11  ;;  %3688 = vmatprep.subr.bf16.mxu0 %v5908_v12  ;;  %v5974_v11 = vld [vmem:[#allocation5 + $0x4cc] ss:$16 sps:$4 sm:$0xff]  }
 0x188   :  { %3729 = vmatprep.subr.bf16.mxu1 %v5911_v13  ;;  %v5977_v12 = vld [vmem:[#allocation5 + $0x6cc] ss:$16 sps:$4 sm:$0xff]   ;;  %v5972_v13 = vld [vmem:[#allocation5 + $0x4c8] ss:$16 sps:$4 sm:$0xff]  }
 0x18a   :  { %3689 = vmatpush1.bf16.msra.mxu0 %v5906_v14  ;;  %v5975_v14 = vld [vmem:[#allocation5 + $0x6c8] ss:$16 sps:$4 sm:$0xff]  }
 0x18b   :  { %3730 = vmatpush1.bf16.msra.mxu1 %v5909_v15  ;;  %3690 = vmatprep.subr.bf16.mxu0 %v5914_v18 }
 0x18c   :  { %3731 = vmatprep.subr.bf16.mxu1 %v5917_v19 }
 0x18e   :  { %3691 = vmatpush1.bf16.msra.mxu0 %v5912_v20 }
 0x18f   :  { %3732 = vmatpush1.bf16.msra.mxu1 %v5915_v21  ;;  %3692 = vmatprep.subr.bf16.mxu0 %v5920_v22  ;;  %v5980_v22 = vld [vmem:[#allocation5 + $0x4ac] ss:$16 sps:$4 sm:$0xff]  }
 0x190   :  { %3733 = vmatprep.subr.bf16.mxu1 %v5923_v24  ;;  %v5983_v24 = vld [vmem:[#allocation5 + $0x6ac] ss:$16 sps:$4 sm:$0xff]  }
 0x192   :  { %3693 = vmatpush2.bf16.msra.mxu0 %v5918_v25 }
 0x193   :  { %3734 = vmatpush2.bf16.msra.mxu1 %v5921_v29  ;;  %3694 = vmatprep.subr.bf16.mxu0 %v5926_v30  ;;  %v5978_v30 = vld [vmem:[#allocation5 + $0x4a8] ss:$16 sps:$4 sm:$0xff]  }
 0x194   :  { %3735 = vmatprep.subr.bf16.mxu1 %v5929_v31  ;;  %v5981_v31 = vld [vmem:[#allocation5 + $0x6a8] ss:$16 sps:$4 sm:$0xff]  }
 0x196   :  { %3695 = vmatpush2.bf16.msra.mxu0 %v5924_v34 }
 0x197   :  { %3736 = vmatpush2.bf16.msra.mxu1 %v5927_v35  ;;  %3696 = vmatprep.subr.bf16.mxu0 %v5932_v36  ;;  %v5986_v36 = vld [vmem:[#allocation5 + $0x48c] ss:$16 sps:$4 sm:$0xff]  }
 0x198   :  { %3737 = vmatprep.subr.bf16.mxu1 %v5935_v58  ;;  %v5989_v58 = vld [vmem:[#allocation5 + $0x68c] ss:$16 sps:$4 sm:$0xff]  }
 0x19a   :  { %3697 = vmatpush2.bf16.msra.mxu0 %v5930_v37  ;;  %v5987_v37 = vld [vmem:[#allocation5 + $0x688] ss:$16 sps:$4 sm:$0xff]  }
 0x19b   :  { %3738 = vmatpush2.bf16.msra.mxu1 %v5933_v38  ;;  %3698 = vmatprep.subr.bf16.mxu0 %v5938_v59  ;;  %v5990_v38 = vld [vmem:[#allocation5 + $0x468] ss:$16 sps:$4 sm:$0xff]  }
 0x19c   :  { %3739 = vmatprep.subr.bf16.mxu1 %v5941_v40  ;;  %v5993_v59 = vld [vmem:[#allocation5 + $0x668] ss:$16 sps:$4 sm:$0xff]   ;;  %v5998_v40 = vld [vmem:[#allocation5 + $0x44c] ss:$16 sps:$4 sm:$0xff]  }
 0x19e   :  { %3699 = vmatpush2.bf16.msra.mxu0 %v5936_v41  ;;  %v6001_v41 = vld [vmem:[#allocation5 + $0x64c] ss:$16 sps:$4 sm:$0xff]  }
 0x19f   :  { %3740 = vmatpush2.bf16.msra.mxu1 %v5939_v42  ;;  %3700 = vmatprep.subr.bf16.mxu0 %v5944_v45  ;;  %v5996_v42 = vld [vmem:[#allocation5 + $0x448] ss:$16 sps:$4 sm:$0xff]  }
 0x1a0   :  { %3741 = vmatprep.subr.bf16.mxu1 %v5947_v46  ;;  %v5999_v45 = vld [vmem:[#allocation5 + $0x648] ss:$16 sps:$4 sm:$0xff]   ;;  %v6004_v46 = vld [vmem:[#allocation5 + $0x42c] ss:$16 sps:$4 sm:$0xff]  }
 0x1a2   :  { %3701 = vmatpush2.bf16.msra.mxu0 %v5942_v50  ;;  %v6007_v50 = vld [vmem:[#allocation5 + $0x62c] ss:$16 sps:$4 sm:$0xff]  }
 0x1a3   :  { %3742 = vmatpush2.bf16.msra.mxu1 %v5945_v51  ;;  %3702 = vmatprep.subr.bf16.mxu0 %v5950_v54  ;;  %v6002_v51 = vld [vmem:[#allocation5 + $0x428] ss:$16 sps:$4 sm:$0xff]  }
 0x1a4   :  { %3743 = vmatprep.subr.bf16.mxu1 %v5953_v55  ;;  %v6005_v54 = vld [vmem:[#allocation5 + $0x628] ss:$16 sps:$4 sm:$0xff]   ;;  %v6010_v55 = vld [vmem:[#allocation5 + $0x40c] ss:$16 sps:$4 sm:$0xff]  }
 0x1a6   :  { %3703 = vmatpush2.bf16.msra.mxu0 %v5948_v56  ;;  %v6013_v56 = vld [vmem:[#allocation5 + $0x60c] ss:$16 sps:$4 sm:$0xff]  }
 0x1a7   :  { %3744 = vmatpush2.bf16.msra.mxu1 %v5951_v61  ;;  %3704 = vmatprep.subr.bf16.mxu0 %v5956_v63  ;;  %v6008_v61 = vld [vmem:[#allocation5 + $0x408] ss:$16 sps:$4 sm:$0xff]  }
 0x1a8   :  { %3745 = vmatprep.subr.bf16.mxu1 %v5959_v0  ;;  %v6011_v63 = vld [vmem:[#allocation5 + $0x608] ss:$16 sps:$4 sm:$0xff]   ;;  %v6016_v0 = vld [vmem:[#allocation5 + $0x5ec] ss:$16 sps:$4 sm:$0xff]  }
 0x1aa   :  { %3705 = vmatpush2.bf16.msra.mxu0 %v5954_v1  ;;  %v6019_v1 = vld [vmem:[#allocation5 + $0x7ec] ss:$16 sps:$4 sm:$0xff]  }
 0x1ab   :  { %3746 = vmatpush2.bf16.msra.mxu1 %v5957_v2  ;;  %3706 = vmatprep.subr.bf16.mxu0 %v5962_v5  ;;  %v6014_v2 = vld [vmem:[#allocation5 + $0x5e8] ss:$16 sps:$4 sm:$0xff]  }
 0x1ac   :  { %3747 = vmatprep.subr.bf16.mxu1 %v5965_v62  ;;  %v6017_v5 = vld [vmem:[#allocation5 + $0x7e8] ss:$16 sps:$4 sm:$0xff]   ;;  %v6022_v62 = vld [vmem:[#allocation5 + $0x5cc] ss:$16 sps:$4 sm:$0xff]  }
 0x1ae   :  { %3707 = vmatpush2.bf16.msra.mxu0 %v5960_v3  ;;  %v6025_v3 = vld [vmem:[#allocation5 + $0x7cc] ss:$16 sps:$4 sm:$0xff]  }
 0x1af   :  { %3748 = vmatpush2.bf16.msra.mxu1 %v5963_v6  ;;  %3758 = vmatprep.subr.bf16.mxu0 %v5968_v7  ;;  %v6020_v6 = vld [vmem:[#allocation5 + $0x5c8] ss:$16 sps:$4 sm:$0xff]  }
 0x1b0   :  { %3799 = vmatprep.subr.bf16.mxu1 %v5971_v8  ;;  %v6023_v7 = vld [vmem:[#allocation5 + $0x7c8] ss:$16 sps:$4 sm:$0xff]   ;;  %v6028_v8 = vld [vmem:[#allocation5 + $0x5ac] ss:$16 sps:$4 sm:$0xff]  }
 0x1b1   :  { %v3464_v15 = vpop.f32.mrf.mxu0  ;;  %3709 = vmatmul.mubr.bf16.vlgmr.msra.gmra.mxu0 %v6700_v16 }
 0x1b2   :  { %v3505_v18 = vpop.f32.mrf.mxu1  ;;  %3750 = vmatmul.mubr.bf16.vlgmr.msra.gmra.mxu1 %v6702_v17  ;;  %v3465_v19 = vadd.f32 %v3464_v15, %v6790_v47  ;;  %3759 = vmatpush1.bf16.msra.mxu0 %v5966_v39  ;;  %v6031_v39 = vld [vmem:[#allocation5 + $0x7ac] ss:$16 sps:$4 sm:$0xff]   ;;  %v6035_v15 = vld [vmem:[#allocation5 + $0x788] ss:$16 sps:$4 sm:$0xff]  }
 0x1b3   :  { %3800 = vmatpush1.bf16.msra.mxu1 %v5969_v44  ;;  %v3466_v20 = vpop.f32.mrf.mxu0  ;;  %3760 = vmatprep.subr.bf16.mxu0 %v5974_v11  ;;  %v6026_v44 = vld [vmem:[#allocation5 + $0x5a8] ss:$16 sps:$4 sm:$0xff]  }
 0x1b4   :  { %v3507_v21 = vpop.f32.mrf.mxu1  ;;  %3801 = vmatprep.subr.bf16.mxu1 %v5977_v12  ;;  %v6799_v25 = vadd.f32 %v3505_v18, %v3465_v19  ;;  %v3467_v29 = vadd.f32 %v3466_v20, %v6794_v60  ;;  %3790 = vmatprep.mubr.bf16.mxu0 %v6714_v53  ;;  %v5984_v60 = vld [vmem:[#allocation5 + $0x488] ss:$16 sps:$4 sm:$0xff]   ;;  %v5992_v53 = vld [vmem:[#allocation5 + $0x46c] ss:$16 sps:$4 sm:$0xff]  }
 0x1b5   :  { %3831 = vmatprep.mubr.bf16.mxu1 %v6718_v57  ;;  %v3468_v16 = vpop.f32.mrf.mxu0  ;;  %v5995_v57 = vld [vmem:[#allocation5 + $0x66c] ss:$16 sps:$4 sm:$0xff]   ;;  %v6029_v11 = vld [vmem:[#allocation5 + $0x7a8] ss:$16 sps:$4 sm:$0xff]  }
 0x1b6   :  { %v3509_v17 = vpop.f32.mrf.mxu1  ;;  %v6804_v47 = vadd.f32 %v3507_v21, %v3467_v29  ;;  %3761 = vmatpush1.bf16.msra.mxu0 %v5972_v13  ;;  %v6034_v12 = vld [vmem:[#allocation5 + $0x58c] ss:$16 sps:$4 sm:$0xff]   ;;  %v6038_v20 = vld [vmem:[#allocation5 + $0x568] ss:$16 sps:$4 sm:$0xff]  }
 0x1b7   :  { %3802 = vmatpush1.bf16.msra.mxu1 %v5975_v14  ;;  %v3469_v34 = vpop.f32.mrf.mxu0  ;;  %3762 = vmatprep.subr.bf16.mxu0 %v5980_v22  ;;  %v6037_v13 = vld [vmem:[#allocation5 + $0x78c] ss:$16 sps:$4 sm:$0xff]   ;;  %v6032_v14 = vld [vmem:[#allocation5 + $0x588] ss:$16 sps:$4 sm:$0xff]  }
 0x1b8   :  { %v3510_v35 = vpop.f32.mrf.mxu1  ;;  %3803 = vmatprep.subr.bf16.mxu1 %v5983_v24  ;;  %v6040_v18 = vld [vmem:[#allocation5 + $0x56c] ss:$16 sps:$4 sm:$0xff]   ;;  %v6041_v21 = vld [vmem:[#allocation5 + $0x768] ss:$16 sps:$4 sm:$0xff]  }
 0x1b9   :  { %v6043_v19 = vld [vmem:[#allocation5 + $0x76c] ss:$16 sps:$4 sm:$0xff]   ;;  %v6044_v29 = vld [vmem:[#allocation5 + $0x548] ss:$16 sps:$4 sm:$0xff]  }
 0x1ba   :  { %3763 = vmatpush1.bf16.msra.mxu0 %v5978_v30  ;;  %v6046_v22 = vld [vmem:[#allocation5 + $0x54c] ss:$16 sps:$4 sm:$0xff]   ;;  %v6047_v30 = vld [vmem:[#allocation5 + $0x748] ss:$16 sps:$4 sm:$0xff]  }
 0x1bb   :  { %3804 = vmatpush1.bf16.msra.mxu1 %v5981_v31  ;;  %3764 = vmatprep.subr.bf16.mxu0 %v5986_v36  ;;  %v6049_v24 = vld [vmem:[#allocation5 + $0x74c] ss:$16 sps:$4 sm:$0xff]   ;;  %v6050_v17 = vld [vmem:[#allocation5 + $0x528] ss:$16 sps:$4 sm:$0xff]  }
 0x1bc   :  { %3805 = vmatprep.subr.bf16.mxu1 %v5989_v58  ;;  %v6052_v31 = vld [vmem:[#allocation5 + $0x52c] ss:$16 sps:$4 sm:$0xff]   ;;  %v6053_v34 = vld [vmem:[#allocation5 + $0x728] ss:$16 sps:$4 sm:$0xff]  }
 0x1bd   :  { %v6055_v16 = vld [vmem:[#allocation5 + $0x72c] ss:$16 sps:$4 sm:$0xff]   ;;  %v6056_v58 = vld [vmem:[#allocation5 + $0x508] ss:$16 sps:$4 sm:$0xff]  }
 0x1be   :  { %3765 = vmatpush1.bf16.msra.mxu0 %v5984_v60  ;;  %v6058_v35 = vld [vmem:[#allocation5 + $0x50c] ss:$16 sps:$4 sm:$0xff]   ;;  %v6059_v60 = vld [vmem:[#allocation5 + $0x708] ss:$16 sps:$4 sm:$0xff]  }
 0x1bf   :  { %3806 = vmatpush1.bf16.msra.mxu1 %v5987_v37  ;;  %3766 = vmatprep.subr.bf16.mxu0 %v5992_v53  ;;  %v6061_v36 = vld [vmem:[#allocation5 + $0x70c] ss:$16 sps:$4 sm:$0xff]  }
 0x1c0   :  { %3807 = vmatprep.subr.bf16.mxu1 %v5995_v57  ;;  %v6064_v37 = vld [vmem:[#allocation5 + $0x8ec] ss:$16 sps:$4 sm:$0xff]   ;;  %v6062_v57 = vld [vmem:[#allocation5 + $0x8e8] ss:$16 sps:$4 sm:$0xff]  }
 0x1c1   :  { %v6067_v53 = vld [vmem:[#allocation5 + $0xaec] ss:$16 sps:$4 sm:$0xff]  }
 0x1c2   :  { %3767 = vmatpush1.bf16.msra.mxu0 %v5990_v38  ;;  %v6065_v38 = vld [vmem:[#allocation5 + $0xae8] ss:$16 sps:$4 sm:$0xff]  }
 0x1c3   :  { %3808 = vmatpush1.bf16.msra.mxu1 %v5993_v59  ;;  %3768 = vmatprep.subr.bf16.mxu0 %v5998_v40  ;;  %v6070_v59 = vld [vmem:[#allocation5 + $0x8cc] ss:$16 sps:$4 sm:$0xff]  }
 0x1c4   :  { %3809 = vmatprep.subr.bf16.mxu1 %v6001_v41  ;;  %v6073_v40 = vld [vmem:[#allocation5 + $0xacc] ss:$16 sps:$4 sm:$0xff]  }
 0x1c6   :  { %3769 = vmatpush1.bf16.msra.mxu0 %v5996_v42 }
 0x1c7   :  { %3810 = vmatpush1.bf16.msra.mxu1 %v5999_v45  ;;  %3770 = vmatprep.subr.bf16.mxu0 %v6004_v46  ;;  %v6068_v46 = vld [vmem:[#allocation5 + $0x8c8] ss:$16 sps:$4 sm:$0xff]  }
 0x1c8   :  { %3811 = vmatprep.subr.bf16.mxu1 %v6007_v50  ;;  %v6071_v50 = vld [vmem:[#allocation5 + $0xac8] ss:$16 sps:$4 sm:$0xff]  }
 0x1ca   :  { %3771 = vmatpush1.bf16.msra.mxu0 %v6002_v51 }
 0x1cb   :  { %3812 = vmatpush1.bf16.msra.mxu1 %v6005_v54  ;;  %3772 = vmatprep.subr.bf16.mxu0 %v6010_v55  ;;  %v6076_v55 = vld [vmem:[#allocation5 + $0x8ac] ss:$16 sps:$4 sm:$0xff]  }
 0x1cc   :  { %3813 = vmatprep.subr.bf16.mxu1 %v6013_v56  ;;  %v6079_v56 = vld [vmem:[#allocation5 + $0xaac] ss:$16 sps:$4 sm:$0xff]  }
 0x1ce   :  { %3773 = vmatpush1.bf16.msra.mxu0 %v6008_v61 }
 0x1cf   :  { %3814 = vmatpush1.bf16.msra.mxu1 %v6011_v63  ;;  %3774 = vmatprep.subr.bf16.mxu0 %v6016_v0  ;;  %v6074_v0 = vld [vmem:[#allocation5 + $0x8a8] ss:$16 sps:$4 sm:$0xff]  }
 0x1d0   :  { %3815 = vmatprep.subr.bf16.mxu1 %v6019_v1  ;;  %v6077_v1 = vld [vmem:[#allocation5 + $0xaa8] ss:$16 sps:$4 sm:$0xff]  }
 0x1d2   :  { %3775 = vmatpush2.bf16.msra.mxu0 %v6014_v2 }
 0x1d3   :  { %3816 = vmatpush2.bf16.msra.mxu1 %v6017_v5  ;;  %3776 = vmatprep.subr.bf16.mxu0 %v6022_v62  ;;  %v6082_v62 = vld [vmem:[#allocation5 + $0x88c] ss:$16 sps:$4 sm:$0xff]  }
 0x1d4   :  { %3817 = vmatprep.subr.bf16.mxu1 %v6025_v3  ;;  %v6085_v3 = vld [vmem:[#allocation5 + $0xa8c] ss:$16 sps:$4 sm:$0xff]  }
 0x1d6   :  { %3777 = vmatpush2.bf16.msra.mxu0 %v6020_v6  ;;  %v6091_v6 = vld [vmem:[#allocation5 + $0xa6c] ss:$16 sps:$4 sm:$0xff]  }
 0x1d7   :  { %3818 = vmatpush2.bf16.msra.mxu1 %v6023_v7  ;;  %3778 = vmatprep.subr.bf16.mxu0 %v6028_v8  ;;  %v6086_v7 = vld [vmem:[#allocation5 + $0x868] ss:$16 sps:$4 sm:$0xff]  }
 0x1d8   :  { %3819 = vmatprep.subr.bf16.mxu1 %v6031_v39  ;;  %v6089_v8 = vld [vmem:[#allocation5 + $0xa68] ss:$16 sps:$4 sm:$0xff]   ;;  %v6094_v39 = vld [vmem:[#allocation5 + $0x84c] ss:$16 sps:$4 sm:$0xff]  }
 0x1da   :  { %3779 = vmatpush2.bf16.msra.mxu0 %v6026_v44  ;;  %v6097_v44 = vld [vmem:[#allocation5 + $0xa4c] ss:$16 sps:$4 sm:$0xff]  }
 0x1db   :  { %3820 = vmatpush2.bf16.msra.mxu1 %v6029_v11  ;;  %3780 = vmatprep.subr.bf16.mxu0 %v6034_v12  ;;  %v6092_v11 = vld [vmem:[#allocation5 + $0x848] ss:$16 sps:$4 sm:$0xff]  }
 0x1dc   :  { %3821 = vmatprep.subr.bf16.mxu1 %v6037_v13  ;;  %v6095_v12 = vld [vmem:[#allocation5 + $0xa48] ss:$16 sps:$4 sm:$0xff]   ;;  %v6100_v13 = vld [vmem:[#allocation5 + $0x82c] ss:$16 sps:$4 sm:$0xff]  }
 0x1de   :  { %3781 = vmatpush2.bf16.msra.mxu0 %v6032_v14  ;;  %v6103_v14 = vld [vmem:[#allocation5 + $0xa2c] ss:$16 sps:$4 sm:$0xff]  }
 0x1df   :  { %3822 = vmatpush2.bf16.msra.mxu1 %v6035_v15  ;;  %3782 = vmatprep.subr.bf16.mxu0 %v6040_v18  ;;  %v6098_v15 = vld [vmem:[#allocation5 + $0x828] ss:$16 sps:$4 sm:$0xff]  }
 0x1e0   :  { %3823 = vmatprep.subr.bf16.mxu1 %v6043_v19  ;;  %v6101_v18 = vld [vmem:[#allocation5 + $0xa28] ss:$16 sps:$4 sm:$0xff]   ;;  %v6106_v19 = vld [vmem:[#allocation5 + $0x80c] ss:$16 sps:$4 sm:$0xff]  }
 0x1e2   :  { %3783 = vmatpush2.bf16.msra.mxu0 %v6038_v20  ;;  %v6109_v20 = vld [vmem:[#allocation5 + $0xa0c] ss:$16 sps:$4 sm:$0xff]  }
 0x1e3   :  { %3824 = vmatpush2.bf16.msra.mxu1 %v6041_v21  ;;  %3784 = vmatprep.subr.bf16.mxu0 %v6046_v22  ;;  %v6104_v21 = vld [vmem:[#allocation5 + $0x808] ss:$16 sps:$4 sm:$0xff]  }
 0x1e4   :  { %3825 = vmatprep.subr.bf16.mxu1 %v6049_v24  ;;  %v6107_v22 = vld [vmem:[#allocation5 + $0xa08] ss:$16 sps:$4 sm:$0xff]   ;;  %v6112_v24 = vld [vmem:[#allocation5 + $0x9ec] ss:$16 sps:$4 sm:$0xff]  }
 0x1e6   :  { %3785 = vmatpush2.bf16.msra.mxu0 %v6044_v29  ;;  %v6115_v29 = vld [vmem:[#allocation5 + $0xbec] ss:$16 sps:$4 sm:$0xff]  }
 0x1e7   :  { %3826 = vmatpush2.bf16.msra.mxu1 %v6047_v30  ;;  %3786 = vmatprep.subr.bf16.mxu0 %v6052_v31  ;;  %v6110_v30 = vld [vmem:[#allocation5 + $0x9e8] ss:$16 sps:$4 sm:$0xff]  }
 0x1e8   :  { %3827 = vmatprep.subr.bf16.mxu1 %v6055_v16  ;;  %v6113_v31 = vld [vmem:[#allocation5 + $0xbe8] ss:$16 sps:$4 sm:$0xff]   ;;  %v6118_v16 = vld [vmem:[#allocation5 + $0x9cc] ss:$16 sps:$4 sm:$0xff]  }
 0x1ea   :  { %3787 = vmatpush2.bf16.msra.mxu0 %v6050_v17  ;;  %v6121_v17 = vld [vmem:[#allocation5 + $0xbcc] ss:$16 sps:$4 sm:$0xff]  }
 0x1eb   :  { %3828 = vmatpush2.bf16.msra.mxu1 %v6053_v34  ;;  %3788 = vmatprep.subr.bf16.mxu0 %v6058_v35  ;;  %v6116_v34 = vld [vmem:[#allocation5 + $0x9c8] ss:$16 sps:$4 sm:$0xff]  }
 0x1ec   :  { %3829 = vmatprep.subr.bf16.mxu1 %v6061_v36  ;;  %v6119_v35 = vld [vmem:[#allocation5 + $0xbc8] ss:$16 sps:$4 sm:$0xff]   ;;  %v6124_v36 = vld [vmem:[#allocation5 + $0x9ac] ss:$16 sps:$4 sm:$0xff]  }
 0x1ee   :  { %3789 = vmatpush2.bf16.msra.mxu0 %v6056_v58  ;;  %v6127_v58 = vld [vmem:[#allocation5 + $0xbac] ss:$16 sps:$4 sm:$0xff]  }
 0x1ef   :  { %3830 = vmatpush2.bf16.msra.mxu1 %v6059_v60  ;;  %3840 = vmatprep.subr.bf16.mxu0 %v6064_v37  ;;  %v6122_v60 = vld [vmem:[#allocation5 + $0x9a8] ss:$16 sps:$4 sm:$0xff]  }
 0x1f0   :  { %3881 = vmatprep.subr.bf16.mxu1 %v6067_v53  ;;  %v6125_v37 = vld [vmem:[#allocation5 + $0xba8] ss:$16 sps:$4 sm:$0xff]   ;;  %v6130_v53 = vld [vmem:[#allocation5 + $0x98c] ss:$16 sps:$4 sm:$0xff]  }
 0x1f1   :  { %v3546_v41 = vpop.f32.mrf.mxu0  ;;  %3791 = vmatmul.mubr.bf16.vlgmr.msra.gmra.mxu0 %v6724_v32 }
 0x1f2   :  { %v3587_v42 = vpop.f32.mrf.mxu1  ;;  %3832 = vmatmul.mubr.bf16.vlgmr.msra.gmra.mxu1 %v6728_v33  ;;  %v3547_v45 = vadd.f32 %v3546_v41, %v6799_v25  ;;  %3841 = vmatpush1.bf16.msra.mxu0 %v6062_v57  ;;  %v6133_v57 = vld [vmem:[#allocation5 + $0xb8c] ss:$16 sps:$4 sm:$0xff]  }
 0x1f3   :  { %3882 = vmatpush1.bf16.msra.mxu1 %v6065_v38  ;;  %v3548_v51 = vpop.f32.mrf.mxu0  ;;  %3842 = vmatprep.subr.bf16.mxu0 %v6070_v59  ;;  %v6128_v38 = vld [vmem:[#allocation5 + $0x988] ss:$16 sps:$4 sm:$0xff]   ;;  %v6139_v41 = vld [vmem:[#allocation5 + $0xb6c] ss:$16 sps:$4 sm:$0xff]  }
 0x1f4   :  { %v3589_v54 = vpop.f32.mrf.mxu1  ;;  %3883 = vmatprep.subr.bf16.mxu1 %v6073_v40  ;;  %v6809_v61 = vadd.f32 %v3587_v42, %v3547_v45  ;;  %v3549_v63 = vadd.f32 %v3548_v51, %v6804_v47  ;;  %3872 = vmatprep.mubr.bf16.mxu0 %v6740_v48  ;;  %v6080_v47 = vld [vmem:[#allocation5 + $0x888] ss:$16 sps:$4 sm:$0xff]   ;;  %v6136_v40 = vld [vmem:[#allocation5 + $0x96c] ss:$16 sps:$4 sm:$0xff]  }
 0x1f5   :  { %3913 = vmatprep.mubr.bf16.mxu1 %v6745_v52  ;;  %v3550_v32 = vpop.f32.mrf.mxu0  ;;  %v6083_v48 = vld [vmem:[#allocation5 + $0xa88] ss:$16 sps:$4 sm:$0xff]   ;;  %v6088_v52 = vld [vmem:[#allocation5 + $0x86c] ss:$16 sps:$4 sm:$0xff]  }
 0x1f6   :  { %v3591_v33 = vpop.f32.mrf.mxu1  ;;  %v6814_v25 = vadd.f32 %v3589_v54, %v3549_v63  ;;  %3843 = vmatpush1.bf16.msra.mxu0 %v6068_v46  ;;  %v6131_v59 = vld [vmem:[#allocation5 + $0xb88] ss:$16 sps:$4 sm:$0xff]   ;;  %v6142_v46 = vld [vmem:[#allocation5 + $0x94c] ss:$16 sps:$4 sm:$0xff]  }
 0x1f7   :  { %3884 = vmatpush1.bf16.msra.mxu1 %v6071_v50  ;;  %v3551_v2 = vpop.f32.mrf.mxu0  ;;  %3844 = vmatprep.subr.bf16.mxu0 %v6076_v55  ;;  %v6134_v42 = vld [vmem:[#allocation5 + $0x968] ss:$16 sps:$4 sm:$0xff]   ;;  %v6145_v50 = vld [vmem:[#allocation5 + $0xb4c] ss:$16 sps:$4 sm:$0xff]  }
 0x1f8   :  { %v3592_v5 = vpop.f32.mrf.mxu1  ;;  %3885 = vmatprep.subr.bf16.mxu1 %v6079_v56  ;;  %v6137_v45 = vld [vmem:[#allocation5 + $0xb68] ss:$16 sps:$4 sm:$0xff]   ;;  %v6148_v55 = vld [vmem:[#allocation5 + $0x92c] ss:$16 sps:$4 sm:$0xff]  }
 0x1f9   :  { %v6140_v51 = vld [vmem:[#allocation5 + $0x948] ss:$16 sps:$4 sm:$0xff]   ;;  %v6151_v56 = vld [vmem:[#allocation5 + $0xb2c] ss:$16 sps:$4 sm:$0xff]  }
 0x1fa   :  { %3845 = vmatpush1.bf16.msra.mxu0 %v6074_v0  ;;  %v6143_v54 = vld [vmem:[#allocation5 + $0xb48] ss:$16 sps:$4 sm:$0xff]   ;;  %v6154_v33 = vld [vmem:[#allocation5 + $0x90c] ss:$16 sps:$4 sm:$0xff]  }
 0x1fb   :  { %3886 = vmatpush1.bf16.msra.mxu1 %v6077_v1  ;;  %3846 = vmatprep.subr.bf16.mxu0 %v6082_v62  ;;  %v6146_v63 = vld [vmem:[#allocation5 + $0x928] ss:$16 sps:$4 sm:$0xff]   ;;  %v6157_v0 = vld [vmem:[#allocation5 + $0xb0c] ss:$16 sps:$4 sm:$0xff]  }
 0x1fc   :  { %3887 = vmatprep.subr.bf16.mxu1 %v6085_v3  ;;  %v6149_v32 = vld [vmem:[#allocation5 + $0xb28] ss:$16 sps:$4 sm:$0xff]   ;;  %v6160_v5 = vld [vmem:[#allocation5 + $0xcec] ss:$16 sps:$4 sm:$0xff]  }
 0x1fd   :  { %v6152_v1 = vld [vmem:[#allocation5 + $0x908] ss:$16 sps:$4 sm:$0xff]   ;;  %v6163_v62 = vld [vmem:[#allocation5 + $0xeec] ss:$16 sps:$4 sm:$0xff]  }
 0x1fe   :  { %3847 = vmatpush1.bf16.msra.mxu0 %v6080_v47  ;;  %v6155_v2 = vld [vmem:[#allocation5 + $0xb08] ss:$16 sps:$4 sm:$0xff]  }
 0x1ff   :  { %3888 = vmatpush1.bf16.msra.mxu1 %v6083_v48  ;;  %3848 = vmatprep.subr.bf16.mxu0 %v6088_v52  ;;  %v6158_v3 = vld [vmem:[#allocation5 + $0xce8] ss:$16 sps:$4 sm:$0xff]   ;;  %v6166_v48 = vld [vmem:[#allocation5 + $0xccc] ss:$16 sps:$4 sm:$0xff]  }
 0x200   :  { %3889 = vmatprep.subr.bf16.mxu1 %v6091_v6  ;;  %v6161_v47 = vld [vmem:[#allocation5 + $0xee8] ss:$16 sps:$4 sm:$0xff]   ;;  %v6169_v52 = vld [vmem:[#allocation5 + $0xecc] ss:$16 sps:$4 sm:$0xff]  }
 0x202   :  { %3849 = vmatpush1.bf16.msra.mxu0 %v6086_v7 }
 0x203   :  { %3890 = vmatpush1.bf16.msra.mxu1 %v6089_v8  ;;  %3850 = vmatprep.subr.bf16.mxu0 %v6094_v39  ;;  %v6164_v39 = vld [vmem:[#allocation5 + $0xcc8] ss:$16 sps:$4 sm:$0xff]  }
 0x204   :  { %3891 = vmatprep.subr.bf16.mxu1 %v6097_v44  ;;  %v6167_v44 = vld [vmem:[#allocation5 + $0xec8] ss:$16 sps:$4 sm:$0xff]  }
 0x206   :  { %3851 = vmatpush1.bf16.msra.mxu0 %v6092_v11 }
 0x207   :  { %3892 = vmatpush1.bf16.msra.mxu1 %v6095_v12  ;;  %3852 = vmatprep.subr.bf16.mxu0 %v6100_v13  ;;  %v6172_v13 = vld [vmem:[#allocation5 + $0xcac] ss:$16 sps:$4 sm:$0xff]  }
 0x208   :  { %3893 = vmatprep.subr.bf16.mxu1 %v6103_v14  ;;  %v6175_v14 = vld [vmem:[#allocation5 + $0xeac] ss:$16 sps:$4 sm:$0xff]  }
 0x20a   :  { %3853 = vmatpush1.bf16.msra.mxu0 %v6098_v15 }
 0x20b   :  { %3894 = vmatpush1.bf16.msra.mxu1 %v6101_v18  ;;  %3854 = vmatprep.subr.bf16.mxu0 %v6106_v19  ;;  %v6173_v18 = vld [vmem:[#allocation5 + $0xea8] ss:$16 sps:$4 sm:$0xff]  }
 0x20c   :  { %3895 = vmatprep.subr.bf16.mxu1 %v6109_v20 }
 0x20e   :  { %3855 = vmatpush1.bf16.msra.mxu0 %v6104_v21  ;;  %v6178_v21 = vld [vmem:[#allocation5 + $0xc8c] ss:$16 sps:$4 sm:$0xff]  }
 0x20f   :  { %3896 = vmatpush1.bf16.msra.mxu1 %v6107_v22  ;;  %3856 = vmatprep.subr.bf16.mxu0 %v6112_v24  ;;  %v6181_v22 = vld [vmem:[#allocation5 + $0xe8c] ss:$16 sps:$4 sm:$0xff]   ;;  %v6176_v24 = vld [vmem:[#allocation5 + $0xc88] ss:$16 sps:$4 sm:$0xff]  }
 0x210   :  { %3897 = vmatprep.subr.bf16.mxu1 %v6115_v29  ;;  %v6179_v29 = vld [vmem:[#allocation5 + $0xe88] ss:$16 sps:$4 sm:$0xff]  }
 0x212   :  { %3857 = vmatpush2.bf16.msra.mxu0 %v6110_v30  ;;  %v6182_v30 = vld [vmem:[#allocation5 + $0xc68] ss:$16 sps:$4 sm:$0xff]  }
 0x213   :  { %3898 = vmatpush2.bf16.msra.mxu1 %v6113_v31  ;;  %3858 = vmatprep.subr.bf16.mxu0 %v6118_v16  ;;  %v6185_v31 = vld [vmem:[#allocation5 + $0xe68] ss:$16 sps:$4 sm:$0xff]   ;;  %v6190_v16 = vld [vmem:[#allocation5 + $0xc4c] ss:$16 sps:$4 sm:$0xff]  }
 0x214   :  { %3899 = vmatprep.subr.bf16.mxu1 %v6121_v17  ;;  %v6193_v17 = vld [vmem:[#allocation5 + $0xe4c] ss:$16 sps:$4 sm:$0xff]  }
 0x216   :  { %3859 = vmatpush2.bf16.msra.mxu0 %v6116_v34  ;;  %v6188_v34 = vld [vmem:[#allocation5 + $0xc48] ss:$16 sps:$4 sm:$0xff]  }
 0x217   :  { %3900 = vmatpush2.bf16.msra.mxu1 %v6119_v35  ;;  %3860 = vmatprep.subr.bf16.mxu0 %v6124_v36  ;;  %v6191_v35 = vld [vmem:[#allocation5 + $0xe48] ss:$16 sps:$4 sm:$0xff]   ;;  %v6196_v36 = vld [vmem:[#allocation5 + $0xc2c] ss:$16 sps:$4 sm:$0xff]  }
 0x218   :  { %3901 = vmatprep.subr.bf16.mxu1 %v6127_v58  ;;  %v6199_v58 = vld [vmem:[#allocation5 + $0xe2c] ss:$16 sps:$4 sm:$0xff]  }
 0x21a   :  { %3861 = vmatpush2.bf16.msra.mxu0 %v6122_v60  ;;  %v6194_v60 = vld [vmem:[#allocation5 + $0xc28] ss:$16 sps:$4 sm:$0xff]  }
 0x21b   :  { %3902 = vmatpush2.bf16.msra.mxu1 %v6125_v37  ;;  %3862 = vmatprep.subr.bf16.mxu0 %v6130_v53  ;;  %v6197_v37 = vld [vmem:[#allocation5 + $0xe28] ss:$16 sps:$4 sm:$0xff]   ;;  %v6202_v53 = vld [vmem:[#allocation5 + $0xc0c] ss:$16 sps:$4 sm:$0xff]  }
 0x21c   :  { %3903 = vmatprep.subr.bf16.mxu1 %v6133_v57  ;;  %v6205_v57 = vld [vmem:[#allocation5 + $0xe0c] ss:$16 sps:$4 sm:$0xff]  }
 0x21e   :  { %3863 = vmatpush2.bf16.msra.mxu0 %v6128_v38  ;;  %v6200_v38 = vld [vmem:[#allocation5 + $0xc08] ss:$16 sps:$4 sm:$0xff]  }
 0x21f   :  { %3904 = vmatpush2.bf16.msra.mxu1 %v6131_v59  ;;  %3864 = vmatprep.subr.bf16.mxu0 %v6136_v40  ;;  %v6203_v59 = vld [vmem:[#allocation5 + $0xe08] ss:$16 sps:$4 sm:$0xff]   ;;  %v6208_v40 = vld [vmem:[#allocation5 + $0xdec] ss:$16 sps:$4 sm:$0xff]  }
 0x220   :  { %3905 = vmatprep.subr.bf16.mxu1 %v6139_v41  ;;  %v6211_v41 = vld [vmem:[#allocation5 + $0xfec] ss:$16 sps:$4 sm:$0xff]  }
 0x222   :  { %3865 = vmatpush2.bf16.msra.mxu0 %v6134_v42  ;;  %v6206_v42 = vld [vmem:[#allocation5 + $0xde8] ss:$16 sps:$4 sm:$0xff]  }
 0x223   :  { %3906 = vmatpush2.bf16.msra.mxu1 %v6137_v45  ;;  %3866 = vmatprep.subr.bf16.mxu0 %v6142_v46  ;;  %v6209_v45 = vld [vmem:[#allocation5 + $0xfe8] ss:$16 sps:$4 sm:$0xff]   ;;  %v6214_v46 = vld [vmem:[#allocation5 + $0xdcc] ss:$16 sps:$4 sm:$0xff]  }
 0x224   :  { %3907 = vmatprep.subr.bf16.mxu1 %v6145_v50  ;;  %v6217_v50 = vld [vmem:[#allocation5 + $0xfcc] ss:$16 sps:$4 sm:$0xff]  }
 0x226   :  { %3867 = vmatpush2.bf16.msra.mxu0 %v6140_v51  ;;  %v6212_v51 = vld [vmem:[#allocation5 + $0xdc8] ss:$16 sps:$4 sm:$0xff]  }
 0x227   :  { %3908 = vmatpush2.bf16.msra.mxu1 %v6143_v54  ;;  %3868 = vmatprep.subr.bf16.mxu0 %v6148_v55  ;;  %v6215_v54 = vld [vmem:[#allocation5 + $0xfc8] ss:$16 sps:$4 sm:$0xff]   ;;  %v6220_v55 = vld [vmem:[#allocation5 + $0xdac] ss:$16 sps:$4 sm:$0xff]  }
 0x228   :  { %3909 = vmatprep.subr.bf16.mxu1 %v6151_v56  ;;  %v6223_v56 = vld [vmem:[#allocation5 + $0xfac] ss:$16 sps:$4 sm:$0xff]  }
 0x22a   :  { %3869 = vmatpush2.bf16.msra.mxu0 %v6146_v63  ;;  %v6218_v63 = vld [vmem:[#allocation5 + $0xda8] ss:$16 sps:$4 sm:$0xff]  }
 0x22b   :  { %3910 = vmatpush2.bf16.msra.mxu1 %v6149_v32  ;;  %3870 = vmatprep.subr.bf16.mxu0 %v6154_v33  ;;  %v6221_v32 = vld [vmem:[#allocation5 + $0xfa8] ss:$16 sps:$4 sm:$0xff]   ;;  %v6226_v33 = vld [vmem:[#allocation5 + $0xd8c] ss:$16 sps:$4 sm:$0xff]  }
 0x22c   :  { %3911 = vmatprep.subr.bf16.mxu1 %v6157_v0  ;;  %v6229_v0 = vld [vmem:[#allocation5 + $0xf8c] ss:$16 sps:$4 sm:$0xff]  }
 0x22e   :  { %3871 = vmatpush2.bf16.msra.mxu0 %v6152_v1  ;;  %v6224_v1 = vld [vmem:[#allocation5 + $0xd88] ss:$16 sps:$4 sm:$0xff]  }
 0x22f   :  { %3912 = vmatpush2.bf16.msra.mxu1 %v6155_v2  ;;  %3922 = vmatprep.subr.bf16.mxu0 %v6160_v5  ;;  %v6227_v2 = vld [vmem:[#allocation5 + $0xf88] ss:$16 sps:$4 sm:$0xff]   ;;  %v6232_v5 = vld [vmem:[#allocation5 + $0xd6c] ss:$16 sps:$4 sm:$0xff]  }
 0x230   :  { %3963 = vmatprep.subr.bf16.mxu1 %v6163_v62  ;;  %v6235_v62 = vld [vmem:[#allocation5 + $0xf6c] ss:$16 sps:$4 sm:$0xff]  }
 0x231   :  { %v3628_v6 = vpop.f32.mrf.mxu0  ;;  %3873 = vmatmul.mubr.bf16.vlgmr.msra.gmra.mxu0 %v6760_v4 }
 0x232   :  { %v3669_v7 = vpop.f32.mrf.mxu1  ;;  %3914 = vmatmul.mubr.bf16.vlgmr.msra.gmra.mxu1 %v6764_v49  ;;  %v3629_v8 = vadd.f32 %v3628_v6, %v6809_v61  ;;  %3923 = vmatpush1.bf16.msra.mxu0 %v6158_v3  ;;  %v6170_v61 = vld [vmem:[#allocation5 + $0xca8] ss:$16 sps:$4 sm:$0xff]  }
 0x233   :  { %3964 = vmatpush1.bf16.msra.mxu1 %v6161_v47  ;;  %v6819_v11 = vpop.f32.mrf.mxu0  ;;  %3924 = vmatprep.subr.bf16.mxu0 %v6166_v48  ;;  %v6230_v3 = vld [vmem:[#allocation5 + $0xd68] ss:$16 sps:$4 sm:$0xff]   ;;  %v6238_v48 = vld [vmem:[#allocation5 + $0xd4c] ss:$16 sps:$4 sm:$0xff]  }
 0x234   :  { %v6821_v12 = vpop.f32.mrf.mxu1  ;;  %3965 = vmatprep.subr.bf16.mxu1 %v6169_v52  ;;  %v6823_v15 = vadd.f32 %v3669_v7, %v3629_v8  ;;  %3954 = vmatprep.mubr.bf16.mxu0 %v6766_v9  ;;  %v6184_v9 = vld [vmem:[#allocation5 + $0xc6c] ss:$16 sps:$4 sm:$0xff]   ;;  %v6233_v47 = vld [vmem:[#allocation5 + $0xf68] ss:$16 sps:$4 sm:$0xff]  }
 0x235   :  { %3995 = vmatprep.mubr.bf16.mxu1 %v6768_v10  ;;  %v3632_v4 = vpop.f32.mrf.mxu0  ;;  %v6187_v10 = vld [vmem:[#allocation5 + $0xe6c] ss:$16 sps:$4 sm:$0xff]   ;;  %v6236_v6 = vld [vmem:[#allocation5 + $0xd48] ss:$16 sps:$4 sm:$0xff]  }
 0x236   :  { %v3673_v49 = vpop.f32.mrf.mxu1  ;;  %3925 = vmatpush1.bf16.msra.mxu0 %v6164_v39  ;;  %v6241_v52 = vld [vmem:[#allocation5 + $0xf4c] ss:$16 sps:$4 sm:$0xff]   ;;  %v6239_v7 = vld [vmem:[#allocation5 + $0xf48] ss:$16 sps:$4 sm:$0xff]  }
 0x237   :  { %3966 = vmatpush1.bf16.msra.mxu1 %v6167_v44  ;;  %v3633_v19 = vpop.f32.mrf.mxu0  ;;  %3926 = vmatprep.subr.bf16.mxu0 %v6172_v13  ;;  %v6244_v8 = vld [vmem:[#allocation5 + $0xd2c] ss:$16 sps:$4 sm:$0xff]   ;;  %v3631_v44 = vadd.f32 %v6819_v11, %v6814_v25  ;;  %v6242_v13 = vld [vmem:[#allocation5 + $0xd28] ss:$16 sps:$4 sm:$0xff]   ;;  %v782_v11 = vsub.s32 3, %v6687_v43 }
 0x238   :  { %v3674_v20 = vpop.f32.mrf.mxu1  ;;  %3967 = vmatprep.subr.bf16.mxu1 %v6175_v14  ;;  %v6247_v39 = vld [vmem:[#allocation5 + $0xf2c] ss:$16 sps:$4 sm:$0xff]   ;;  %v6245_v14 = vld [vmem:[#allocation5 + $0xf28] ss:$16 sps:$4 sm:$0xff]  }
 0x239   :  { %v6250_v4 = vld [vmem:[#allocation5 + $0xd0c] ss:$16 sps:$4 sm:$0xff]   ;;  %v6251_v19 = vld [vmem:[#allocation5 + $0xf08] ss:$16 sps:$4 sm:$0xff]   ;;  %v778_v20 = vsub.s32 2, %v6687_v43 }
 0x23a   :  { %3927 = vmatpush1.bf16.msra.mxu0 %v6170_v61  ;;  %v6253_v49 = vld [vmem:[#allocation5 + $0xf0c] ss:$16 sps:$4 sm:$0xff]   ;;  %v3672_v61 = vadd.f32 %v6821_v12, %v3631_v44  ;;  %v6325_v44 = vld [vmem:[#allocation8 + $0x104] ss:$8 sps:$4 sm:$0xff]  }
 0x23b   :  { %3968 = vmatpush1.bf16.msra.mxu1 %v6173_v18  ;;  %3928 = vmatprep.subr.bf16.mxu0 %v6178_v21  ;;  %v6248_v18 = vld [vmem:[#allocation5 + $0xd08] ss:$16 sps:$4 sm:$0xff]  }
 0x23c   :  { %3969 = vmatprep.subr.bf16.mxu1 %v6181_v22  ;;  %v6256_v21 = vld [vmem:[#allocation8 + $0x74] ss:$8 sps:$4 sm:$0xff]   ;;  %v4005_v25 = vmax.f32 %v3672_v61, 0.0  ;;  %v6284_v61 = vld [vmem:[#allocation8 + $0xd0] ss:$8 sps:$4 sm:$0xff]   ;;  %v6373_v43 = vld [vmem:[#allocation14] sm:$0xff]  }
 0x23d   :  { %v6378_v22 = vld [vmem:[#allocation7] sm:$0xf] }
 0x23e   :  { %3929 = vmatpush1.bf16.msra.mxu0 %v6176_v24  ;;  %v779_v24 = vrot.slane %v6378_v22, %v778_v20  ;;  %v4009_v12 = vpack.c.bf16 %v4005_v25, %v4005_v25  ;;  %v6331_v20 = vld [vmem:[#allocation8 + $0x1e4] ss:$8 sps:$4 sm:$0xff]   ;;  %v6329_v25 = vld [vmem:[#allocation8 + $0x1e0] ss:$8 sps:$4 sm:$0xff]  }
 0x23f   :  { %3970 = vmatpush1.bf16.msra.mxu1 %v6179_v29  ;;  %3930 = vmatprep.subr.bf16.mxu0 %v6184_v9  ;;  %v6254_v29 = vld [vmem:[#allocation8 + $0x70] ss:$8 sps:$4 sm:$0xff]   ;;  %v6259_v9 = vld [vmem:[#allocation8 + $0x64] ss:$8 sps:$4 sm:$0xff]  }
 0x240   :  { %3971 = vmatprep.subr.bf16.mxu1 %v6187_v10  ;;  %v783_v10 = vrot.slane %v6378_v22, %v782_v11  ;;  %v6292_v11 = vld [vmem:[#allocation8 + $0xb4] ss:$8 sps:$4 sm:$0xff]  }
 0x241   :  { %v6334_v22 = vld [vmem:[#allocation8 + $0x1d4] ss:$8 sps:$4 sm:$0xff]  }
 0x242   :  { %3931 = vmatpush1.bf16.msra.mxu0 %v6182_v30 }
 0x243   :  { %3972 = vmatpush1.bf16.msra.mxu1 %v6185_v31  ;;  %3932 = vmatprep.subr.bf16.mxu0 %v6190_v16 }
 0x244   :  { %3973 = vmatprep.subr.bf16.mxu1 %v6193_v17  ;;  %v6257_v17 = vld [vmem:[#allocation8 + $0x60] ss:$8 sps:$4 sm:$0xff]  }
 0x246   :  { %3933 = vmatpush1.bf16.msra.mxu0 %v6188_v34 }
 0x247   :  { %3974 = vmatpush1.bf16.msra.mxu1 %v6191_v35  ;;  %3934 = vmatprep.subr.bf16.mxu0 %v6196_v36  ;;  %v6262_v36 = vld [vmem:[#allocation8 + $0x54] ss:$8 sps:$4 sm:$0xff]  }
 0x248   :  { %3975 = vmatprep.subr.bf16.mxu1 %v6199_v58 }
 0x24a   :  { %3935 = vmatpush1.bf16.msra.mxu0 %v6194_v60 }
 0x24b   :  { %3976 = vmatpush1.bf16.msra.mxu1 %v6197_v37  ;;  %3936 = vmatprep.subr.bf16.mxu0 %v6202_v53 }
 0x24c   :  { %3977 = vmatprep.subr.bf16.mxu1 %v6205_v57 }
 0x24e   :  { %3937 = vmatpush1.bf16.msra.mxu0 %v6200_v38  ;;  %v6260_v38 = vld [vmem:[#allocation8 + $0x50] ss:$8 sps:$4 sm:$0xff]  }
 0x24f   :  { %3978 = vmatpush1.bf16.msra.mxu1 %v6203_v59  ;;  %3938 = vmatprep.subr.bf16.mxu0 %v6208_v40  ;;  %v6302_v40 = vld [vmem:[#allocation8 + $0x170] ss:$8 sps:$4 sm:$0xff]  }
 0x250   :  { %3979 = vmatprep.subr.bf16.mxu1 %v6211_v41  ;;  %v6304_v41 = vld [vmem:[#allocation8 + $0x174] ss:$8 sps:$4 sm:$0xff]  }
 0x252   :  { %3939 = vmatpush2.bf16.msra.mxu0 %v6206_v42  ;;  %v6307_v42 = vld [vmem:[#allocation8 + $0x164] ss:$8 sps:$4 sm:$0xff]  }
 0x253   :  { %3980 = vmatpush2.bf16.msra.mxu1 %v6209_v45  ;;  %3940 = vmatprep.subr.bf16.mxu0 %v6214_v46  ;;  %v6263_v45 = vld [vmem:[#allocation8 + $0x40] ss:$8 sps:$4 sm:$0xff]  }
 0x254   :  { %3981 = vmatprep.subr.bf16.mxu1 %v6217_v50  ;;  %v6305_v46 = vld [vmem:[#allocation8 + $0x160] ss:$8 sps:$4 sm:$0xff]   ;;  %v6268_v50 = vld [vmem:[#allocation8 + $0x34] ss:$8 sps:$4 sm:$0xff]  }
 0x256   :  { %3941 = vmatpush2.bf16.msra.mxu0 %v6212_v51  ;;  %v6310_v51 = vld [vmem:[#allocation8 + $0x154] ss:$8 sps:$4 sm:$0xff]  }
 0x257   :  { %3982 = vmatpush2.bf16.msra.mxu1 %v6215_v54  ;;  %3942 = vmatprep.subr.bf16.mxu0 %v6220_v55  ;;  %v6266_v54 = vld [vmem:[#allocation8 + $0x30] ss:$8 sps:$4 sm:$0xff]  }
 0x258   :  { %3983 = vmatprep.subr.bf16.mxu1 %v6223_v56  ;;  %v6308_v55 = vld [vmem:[#allocation8 + $0x150] ss:$8 sps:$4 sm:$0xff]   ;;  %v6271_v56 = vld [vmem:[#allocation8 + $0x24] ss:$8 sps:$4 sm:$0xff]  }
 0x25a   :  { %3943 = vmatpush2.bf16.msra.mxu0 %v6218_v63  ;;  %v6313_v63 = vld [vmem:[#allocation8 + $0x144] ss:$8 sps:$4 sm:$0xff]  }
 0x25b   :  { %3984 = vmatpush2.bf16.msra.mxu1 %v6221_v32  ;;  %3944 = vmatprep.subr.bf16.mxu0 %v6226_v33  ;;  %v6269_v32 = vld [vmem:[#allocation8 + $0x20] ss:$8 sps:$4 sm:$0xff]  }
 0x25c   :  { %3985 = vmatprep.subr.bf16.mxu1 %v6229_v0  ;;  %v6311_v33 = vld [vmem:[#allocation8 + $0x140] ss:$8 sps:$4 sm:$0xff]   ;;  %v6274_v0 = vld [vmem:[#allocation8 + $0x14] ss:$8 sps:$4 sm:$0xff]  }
 0x25e   :  { %3945 = vmatpush2.bf16.msra.mxu0 %v6224_v1  ;;  %v6316_v1 = vld [vmem:[#allocation8 + $0x134] ss:$8 sps:$4 sm:$0xff]  }
 0x25f   :  { %3986 = vmatpush2.bf16.msra.mxu1 %v6227_v2  ;;  %3946 = vmatprep.subr.bf16.mxu0 %v6232_v5  ;;  %v6272_v2 = vld [vmem:[#allocation8 + $0x10] ss:$8 sps:$4 sm:$0xff]  }
 0x260   :  { %3987 = vmatprep.subr.bf16.mxu1 %v6235_v62  ;;  %v6314_v5 = vld [vmem:[#allocation8 + $0x130] ss:$8 sps:$4 sm:$0xff]   ;;  %v6277_v62 = vld [vmem:[#allocation8 + $0x4] ss:$8 sps:$4 sm:$0xff]  }
 0x262   :  { %3947 = vmatpush2.bf16.msra.mxu0 %v6230_v3  ;;  %v6319_v3 = vld [vmem:[#allocation8 + $0x124] ss:$8 sps:$4 sm:$0xff]  }
 0x263   :  { %3988 = vmatpush2.bf16.msra.mxu1 %v6233_v47  ;;  %3948 = vmatprep.subr.bf16.mxu0 %v6238_v48  ;;  %v6275_v47 = vld [vmem:[#allocation8] ss:$8 sps:$4 sm:$0xff]  }
 0x264   :  { %3989 = vmatprep.subr.bf16.mxu1 %v6241_v52  ;;  %v6317_v48 = vld [vmem:[#allocation8 + $0x120] ss:$8 sps:$4 sm:$0xff]   ;;  %v6280_v52 = vld [vmem:[#allocation8 + $0xf4] ss:$8 sps:$4 sm:$0xff]  }
 0x266   :  { %3949 = vmatpush2.bf16.msra.mxu0 %v6236_v6  ;;  %v6322_v6 = vld [vmem:[#allocation8 + $0x114] ss:$8 sps:$4 sm:$0xff]  }
 0x267   :  { %3990 = vmatpush2.bf16.msra.mxu1 %v6239_v7  ;;  %3950 = vmatprep.subr.bf16.mxu0 %v6244_v8  ;;  %v6278_v7 = vld [vmem:[#allocation8 + $0xf0] ss:$8 sps:$4 sm:$0xff]  }
 0x268   :  { %3991 = vmatprep.subr.bf16.mxu1 %v6247_v39  ;;  %v6320_v8 = vld [vmem:[#allocation8 + $0x110] ss:$8 sps:$4 sm:$0xff]   ;;  %v6283_v39 = vld [vmem:[#allocation8 + $0xe4] ss:$8 sps:$4 sm:$0xff]  }
 0x26a   :  { %3951 = vmatpush2.bf16.msra.mxu0 %v6242_v13  ;;  %v6281_v13 = vld [vmem:[#allocation8 + $0xe0] ss:$8 sps:$4 sm:$0xff]  }
 0x26b   :  { %3992 = vmatpush2.bf16.msra.mxu1 %v6245_v14  ;;  %3952 = vmatprep.subr.bf16.mxu0 %v6250_v4  ;;  %v6323_v14 = vld [vmem:[#allocation8 + $0x100] ss:$8 sps:$4 sm:$0xff]   ;;  %v6286_v4 = vld [vmem:[#allocation8 + $0xd4] ss:$8 sps:$4 sm:$0xff]  }
 0x26c   :  { %3993 = vmatprep.subr.bf16.mxu1 %v6253_v49  ;;  %v6328_v49 = vld [vmem:[#allocation8 + $0x1f4] ss:$8 sps:$4 sm:$0xff]  }
 0x26e   :  { %3953 = vmatpush2.bf16.msra.mxu0 %v6248_v18  ;;  %v6326_v18 = vld [vmem:[#allocation8 + $0x1f0] ss:$8 sps:$4 sm:$0xff]  }
 0x26f   :  { %3994 = vmatpush2.bf16.msra.mxu1 %v6251_v19  ;;  %4408 = vmatprep.subr.bf16.mxu0 %v6256_v21  ;;  %v6289_v19 = vld [vmem:[#allocation8 + $0xc4] ss:$8 sps:$4 sm:$0xff]   ;;  %v6287_v21 = vld [vmem:[#allocation8 + $0xc0] ss:$8 sps:$4 sm:$0xff]  }
 0x270   :  { %4449 = vmatprep.subr.bf16.mxu1 %v6304_v41 }
 0x271   :  { %v3710_v30 = vpop.f32.mrf.mxu0  ;;  %3955 = vmatmul.mubr.bf16.vlgmr.msra.gmra.mxu0 %v6778_v27 }
 0x272   :  { %v3751_v31 = vpop.f32.mrf.mxu1  ;;  %3996 = vmatmul.mubr.bf16.vlgmr.msra.gmra.mxu1 %v6782_v28  ;;  %v3711_v16 = vadd.f32 %v3710_v30, %v779_v24  ;;  %4409 = vmatpush1.bf16.msra.mxu0 %v6254_v29  ;;  %v6265_v28 = vld [vmem:[#allocation8 + $0x44] ss:$8 sps:$4 sm:$0xff]   ;;  %v6290_v24 = vld [vmem:[#allocation8 + $0xb0] ss:$8 sps:$4 sm:$0xff]   ;;  %v6335_v30 = vld [vmem:[#allocation8 + $0x1c0] ss:$8 sps:$4 sm:$0xff]  }
 0x273   :  { %4440 = vmatprep.mubr.bf16.mxu0 %v4009_v12  ;;  %v3712_v34 = vpop.f32.mrf.mxu0  ;;  %4410 = vmatprep.subr.bf16.mxu0 %v6259_v9  ;;  %v6332_v29 = vld [vmem:[#allocation8 + $0x1d0] ss:$8 sps:$4 sm:$0xff]   ;;  %v6295_v9 = vld [vmem:[#allocation8 + $0xa4] ss:$8 sps:$4 sm:$0xff]  }
 0x274   :  { %v3753_v35 = vpop.f32.mrf.mxu1  ;;  %v6834_v58 = vadd.f32 %v3751_v31, %v3711_v16  ;;  %v3713_v60 = vadd.f32 %v3712_v34, %v783_v10  ;;  %4450 = vmatpush1.bf16.msra.mxu1 %v6302_v40  ;;  %v6337_v12 = vld [vmem:[#allocation8 + $0x1c4] ss:$8 sps:$4 sm:$0xff]   ;;  %v6293_v10 = vld [vmem:[#allocation8 + $0xa0] ss:$8 sps:$4 sm:$0xff]   ;;  %v6298_v31 = vld [vmem:[#allocation8 + $0x94] ss:$8 sps:$4 sm:$0xff]  }
 0x275   :  { %v3714_v37 = vpop.f32.mrf.mxu0  ;;  %4451 = vmatprep.subr.bf16.mxu1 %v6307_v42  ;;  %v6340_v16 = vld [vmem:[#allocation8 + $0x1b4] ss:$8 sps:$4 sm:$0xff]   ;;  %v6338_v34 = vld [vmem:[#allocation8 + $0x1b0] ss:$8 sps:$4 sm:$0xff]  }
 0x276   :  { %v3755_v53 = vpop.f32.mrf.mxu1  ;;  %v6836_v57 = vadd.f32 %v3753_v35, %v3713_v60  ;;  %4411 = vmatpush1.bf16.msra.mxu0 %v6257_v17  ;;  %v6296_v17 = vld [vmem:[#allocation8 + $0x90] ss:$8 sps:$4 sm:$0xff]   ;;  %v6301_v35 = vld [vmem:[#allocation8 + $0x84] ss:$8 sps:$4 sm:$0xff]   ;;  %v4004_v60 = vmax.f32 %v6823_v15, 0.0 }
 0x277   :  { %v3715_v27 = vpop.f32.mrf.mxu0  ;;  %4412 = vmatprep.subr.bf16.mxu0 %v6262_v36  ;;  %v6299_v36 = vld [vmem:[#allocation8 + $0x80] ss:$8 sps:$4 sm:$0xff]   ;;  %v6343_v53 = vld [vmem:[#allocation8 + $0x1a4] ss:$8 sps:$4 sm:$0xff]   ;;  %v6346_v42 = vld [vmem:[#allocation8 + $0x194] ss:$8 sps:$4 sm:$0xff]  }
 0x278   :  { %v3756_v59 = vpop.f32.mrf.mxu1  ;;  %4452 = vmatpush1.bf16.msra.mxu1 %v6305_v46  ;;  %v4008_v37 = vpack.c.bf16 %v4004_v60, %v4004_v60 }
 0x279   :  { %4453 = vmatprep.subr.bf16.mxu1 %v6310_v51 }
 0x27a   :  { %4413 = vmatpush1.bf16.msra.mxu0 %v6260_v38  ;;  %v6341_v38 = vld [vmem:[#allocation8 + $0x1a0] ss:$8 sps:$4 sm:$0xff]  }
 0x27b   :  { %4414 = vmatprep.subr.bf16.mxu0 %v6265_v28 }
 0x27c   :  { %4454 = vmatpush1.bf16.msra.mxu1 %v6308_v55 }
 0x27d   :  { %4455 = vmatprep.subr.bf16.mxu1 %v6313_v63  ;;  %v6349_v63 = vld [vmem:[#allocation8 + $0x184] ss:$8 sps:$4 sm:$0xff]  }
 0x27e   :  { %4415 = vmatpush1.bf16.msra.mxu0 %v6263_v45 }
 0x27f   :  { %4416 = vmatprep.subr.bf16.mxu0 %v6268_v50  ;;  %v6344_v50 = vld [vmem:[#allocation8 + $0x190] ss:$8 sps:$4 sm:$0xff]  }
 0x280   :  { %4456 = vmatpush1.bf16.msra.mxu1 %v6311_v33 }
 0x281   :  { %4457 = vmatprep.subr.bf16.mxu1 %v6316_v1 }
 0x282   :  { %4417 = vmatpush1.bf16.msra.mxu0 %v6266_v54 }
 0x283   :  { %4418 = vmatprep.subr.bf16.mxu0 %v6271_v56 }
 0x284   :  { %4458 = vmatpush1.bf16.msra.mxu1 %v6314_v5 }
 0x285   :  { %4459 = vmatprep.subr.bf16.mxu1 %v6319_v3 }
 0x286   :  { %4419 = vmatpush1.bf16.msra.mxu0 %v6269_v32  ;;  %v6347_v32 = vld [vmem:[#allocation8 + $0x180] ss:$8 sps:$4 sm:$0xff]  }
 0x287   :  { %4420 = vmatprep.subr.bf16.mxu0 %v6274_v0 }
 0x288   :  { %4460 = vmatpush1.bf16.msra.mxu1 %v6317_v48  ;;  %v6350_v48 = vld [vmem:[#allocation11 + $0x78] sm:$0xff]  }
 0x289   :  { %4461 = vmatprep.subr.bf16.mxu1 %v6322_v6  ;;  %v6352_v6 = vld [vmem:[#allocation11 + $0x70] sm:$0xff]  }
 0x28a   :  { %4421 = vmatpush1.bf16.msra.mxu0 %v6272_v2 }
 0x28b   :  { %4422 = vmatprep.subr.bf16.mxu0 %v6277_v62 }
 0x28c   :  { %4462 = vmatpush1.bf16.msra.mxu1 %v6320_v8  ;;  %v6354_v8 = vld [vmem:[#allocation11 + $0x68] sm:$0xff]  }
 0x28d   :  { %4463 = vmatprep.subr.bf16.mxu1 %v6325_v44  ;;  %v6356_v44 = vld [vmem:[#allocation11 + $0x60] sm:$0xff]  }
 0x28e   :  { %4423 = vmatpush1.bf16.msra.mxu0 %v6275_v47 }
 0x28f   :  { %4424 = vmatprep.subr.bf16.mxu0 %v6280_v52  ;;  %v6351_v52 = vld [vmem:[#allocation11 + $0x38] sm:$0xff]  }
 0x290   :  { %4464 = vmatpush1.bf16.msra.mxu1 %v6323_v14  ;;  %v6358_v14 = vld [vmem:[#allocation11 + $0x58] sm:$0xff]  }
 0x291   :  { %4465 = vmatprep.subr.bf16.mxu1 %v6328_v49  ;;  %v6360_v49 = vld [vmem:[#allocation11 + $0x50] sm:$0xff]  }
 0x292   :  { %4425 = vmatpush2.bf16.msra.mxu0 %v6278_v7  ;;  %v6353_v7 = vld [vmem:[#allocation11 + $0x30] sm:$0xff]  }
 0x293   :  { %4426 = vmatprep.subr.bf16.mxu0 %v6283_v39  ;;  %v6355_v39 = vld [vmem:[#allocation11 + $0x28] sm:$0xff]  }
 0x294   :  { %4466 = vmatpush2.bf16.msra.mxu1 %v6326_v18 }
 0x295   :  { %4467 = vmatprep.subr.bf16.mxu1 %v6331_v20 }
 0x296   :  { %4427 = vmatpush2.bf16.msra.mxu0 %v6281_v13  ;;  %v6357_v13 = vld [vmem:[#allocation11 + $0x20] sm:$0xff]  }
 0x297   :  { %4428 = vmatprep.subr.bf16.mxu0 %v6286_v4  ;;  %v6359_v4 = vld [vmem:[#allocation11 + $0x18] sm:$0xff]  }
 0x298   :  { %4468 = vmatpush2.bf16.msra.mxu1 %v6329_v25 }
 0x299   :  { %4469 = vmatprep.subr.bf16.mxu1 %v6334_v22 }
 0x29a   :  { %4429 = vmatpush2.bf16.msra.mxu0 %v6284_v61  ;;  %v6361_v61 = vld [vmem:[#allocation11 + $0x10] sm:$0xff]  }
 0x29b   :  { %4430 = vmatprep.subr.bf16.mxu0 %v6289_v19 }
 0x29c   :  { %4470 = vmatpush2.bf16.msra.mxu1 %v6332_v29 }
 0x29d   :  { %4471 = vmatprep.subr.bf16.mxu1 %v6337_v12 }
 0x29e   :  { %4431 = vmatpush2.bf16.msra.mxu0 %v6287_v21 }
 0x29f   :  { %4432 = vmatprep.subr.bf16.mxu0 %v6292_v11 }
 0x2a0   :  { %4472 = vmatpush2.bf16.msra.mxu1 %v6335_v30 }
 0x2a1   :  { %4473 = vmatprep.subr.bf16.mxu1 %v6340_v16 }
 0x2a2   :  { %4433 = vmatpush2.bf16.msra.mxu0 %v6290_v24 }
 0x2a3   :  { %4434 = vmatprep.subr.bf16.mxu0 %v6295_v9 }
 0x2a4   :  { %4474 = vmatpush2.bf16.msra.mxu1 %v6338_v34 }
 0x2a5   :  { %4475 = vmatprep.subr.bf16.mxu1 %v6343_v53 }
 0x2a6   :  { %4435 = vmatpush2.bf16.msra.mxu0 %v6293_v10 }
 0x2a7   :  { %4436 = vmatprep.subr.bf16.mxu0 %v6298_v31 }
 0x2a8   :  { %4476 = vmatpush2.bf16.msra.mxu1 %v6341_v38  ;;  %v6362_v38 = vld [vmem:[#allocation11 + $0x48] sm:$0xff]  }
 0x2a9   :  { %4477 = vmatprep.subr.bf16.mxu1 %v6346_v42  ;;  %v6367_v42 = vld [vmem:[#allocation14 + $0x30] sm:$0xff]  }
 0x2aa   :  { %4437 = vmatpush2.bf16.msra.mxu0 %v6296_v17 }
 0x2ab   :  { %4438 = vmatprep.subr.bf16.mxu0 %v6301_v35 }
 0x2ac   :  { %4478 = vmatpush2.bf16.msra.mxu1 %v6344_v50  ;;  %v6370_v50 = vld [vmem:[#allocation14 + $0x18] sm:$0xff]  }
 0x2ad   :  { %4479 = vmatprep.subr.bf16.mxu1 %v6349_v63 }
 0x2ae   :  { %4439 = vmatpush2.bf16.msra.mxu0 %v6299_v36 }
 0x2af   :  { %5412 = vmatprep.subr.bf16.mxu0 %v6350_v48 }
 0x2b0   :  { %4480 = vmatpush2.bf16.msra.mxu1 %v6347_v32 }
 0x2b1   :  { %v3792_v27 = vpop.f32.mrf.mxu0  ;;  %4441 = vmatmul.mubr.bf16.vlgmr.msra.gmra.mxu0 %v4008_v37 }
 0x2b2   :  { %v3833_v59 = vpop.f32.mrf.mxu1  ;;  %v3793_v28 = vadd.f32 %v3792_v27, %v6834_v58  ;;  %5413 = vmatpush3.bf16.msra.mxu0 %v6351_v52  ;;  %v6363_v27 = vld [vmem:[#allocation11 + $0x8] sm:$0xff]  }
 0x2b3   :  { %v3794_v40 = vpop.f32.mrf.mxu0  ;;  %5414 = vmatprep.subr.bf16.mxu0 %v6352_v6 }
 0x2b4   :  { %v3835_v41 = vpop.f32.mrf.mxu1  ;;  %v3834_v45 = vadd.f32 %v3833_v59, %v3793_v28  ;;  %v3795_v46 = vadd.f32 %v3794_v40, %v6836_v57  ;;  %v6364_v59 = vld [vmem:[#allocation11 + $0x40] sm:$0xff]  }
 0x2b5   :  { %v3796_v15 = vpop.f32.mrf.mxu0  ;;  %v6365_v28 = vld [vmem:[#allocation11] sm:$0xff]  }
 0x2b6   :  { %v3837_v51 = vpop.f32.mrf.mxu1  ;;  %v3836_v54 = vadd.f32 %v3835_v41, %v3795_v46  ;;  %5415 = vmatpush3.bf16.msra.mxu0 %v6353_v7  ;;  %v6366_v40 = vld [vmem:[#allocation14 + $0x38] sm:$0xff]   ;;  %v6607_v41 = vmov 0.0   ;;  %v6369_v46 = vld [vmem:[#allocation14 + $0x20] sm:$0xff]  }
 0x2b7   :  { %v3797_v55 = vpop.f32.mrf.mxu0  ;;  %5416 = vmatprep.subr.bf16.mxu0 %v6354_v8  ;;  %5443 = vmatprep.subr.bf16.mxu1 %v6607_v41  ;;  %v4076_v15 = vld [vmem:[#allocation10] sm:$0x3] }
 0x2b8   :  { %v3838_v56 = vpop.f32.mrf.mxu1  ;;  %v4081_v51 = vrot.slane %v4076_v15, %v770_v23  ;;  %v6372_v23 = vld [vmem:[#allocation14 + $0x8] sm:$0xff]  }
 0x2ba   :  { %5417 = vmatpush3.bf16.msra.mxu0 %v6355_v39 }
 0x2bb   :  { %5418 = vmatprep.subr.bf16.mxu0 %v6356_v44 }
 0x2be   :  { %5419 = vmatpush3.bf16.msra.mxu0 %v6357_v13  ;;  %v5402_v13 = vld [vmem:[#allocation16] ss:$0 sm:$0xff] }
 0x2bf   :  { %5420 = vmatprep.subr.bf16.mxu0 %v6358_v14 }
 0x2c2   :  { %5421 = vmatpush3.bf16.msra.mxu0 %v6359_v4 }
 0x2c3   :  { %5422 = vmatprep.subr.bf16.mxu0 %v6360_v49 }
 0x2c6   :  { %5423 = vmatpush3.bf16.msra.mxu0 %v6361_v61 }
 0x2c7   :  { %5424 = vmatprep.subr.bf16.mxu0 %v6362_v38 }
 0x2ca   :  { %5425 = vmatpush3.bf16.msra.mxu0 %v6363_v27 }
 0x2cb   :  { %5426 = vmatprep.subr.bf16.mxu0 %v6364_v59 }
 0x2ce   :  { %5427 = vmatpush3.bf16.msra.mxu0 %v6365_v28 }
 0x2f1   :  { %v3874_v58 = vpop.f32.mrf.mxu0 }
 0x2f2   :  { %v3915_v33 = vpop.f32.mrf.mxu1  ;;  %v3875_v0 = vadd.f32 %v3874_v58, %v3834_v45  ;;  %v6368_v45 = vld [vmem:[#allocation14 + $0x28] sm:$0xff]  }
 0x2f3   :  { %v3876_v1 = vpop.f32.mrf.mxu0 }
 0x2f4   :  { %v3917_v2 = vpop.f32.mrf.mxu1  ;;  %v3916_v5 = vadd.f32 %v3915_v33, %v3875_v0  ;;  %v3877_v18 = vadd.f32 %v3876_v1, %v3836_v54  ;;  %v4085_v54 = vrot.slane %v4076_v15, %v774_v26 }
 0x2f5   :  { %v3878_v62 = vpop.f32.mrf.mxu0 }
 0x2f6   :  { %v3919_v57 = vpop.f32.mrf.mxu1  ;;  %v3918_v21 = vadd.f32 %v3917_v2, %v3877_v18 }
 0x2f7   :  { %v3879_v3 = vpop.f32.mrf.mxu0 }
 0x2f8   :  { %v3920_v47 = vpop.f32.mrf.mxu1  ;;  %v6371_v3 = vld [vmem:[#allocation14 + $0x10] sm:$0xff]  }
 0x2f9   :  { %v5385_v47 = vld [vmem:[#allocation13] ss:$0 sm:$0xff] }
 0x331   :  { %v3956_v19 = vpop.f32.mrf.mxu0 }
 0x332   :  { %v3997_v20 = vpop.f32.mrf.mxu1  ;;  %v3957_v25 = vadd.f32 %v3956_v19, %v3916_v5 }
 0x333   :  { %v3958_v11 = vpop.f32.mrf.mxu0 }
 0x334   :  { %v3999_v22 = vpop.f32.mrf.mxu1  ;;  %v3998_v24 = vadd.f32 %v3997_v20, %v3957_v25  ;;  %v3959_v29 = vadd.f32 %v3958_v11, %v3918_v21 }
 0x335   :  { %v3960_v9 = vpop.f32.mrf.mxu0 }
 0x336   :  { %v4001_v12 = vpop.f32.mrf.mxu1  ;;  %v4000_v10 = vadd.f32 %v3999_v22, %v3959_v29  ;;  %v4006_v30 = vmax.f32 %v3998_v24, 0.0 }
 0x337   :  { %v3961_v31 = vpop.f32.mrf.mxu0 }
 0x338   :  { %v4002_v16 = vpop.f32.mrf.mxu1  ;;  %v4007_v17 = vmax.f32 %v4000_v10, 0.0  ;;  %v4010_v35 = vpack.c.bf16 %v4006_v30, %v4006_v30 }
 0x33a   :  { %v4011_v34 = vpack.c.bf16 %v4007_v17, %v4007_v17 }
 0x33c   :  { %4481 = vmatprep.mubr.bf16.mxu1 %v4011_v34 }
 0x33d   :  { %4482 = vmatmul.mubr.bf16.vlgmr.msra.gmra.mxu1 %v4010_v35 }
 0x33e   :  { %5444 = vmatpush3.bf16.msra.mxu1 %v6366_v40  ;;  %5459 = vmatprep.mubr.msk.bf16.mxu1 %vm6608_vm0, %v6607_v41 }
 0x33f   :  { %5445 = vmatprep.subr.bf16.mxu1 %v6607_v41 }
 0x342   :  { %5446 = vmatpush3.bf16.msra.mxu1 %v6367_v42 }
 0x343   :  { %5447 = vmatprep.subr.bf16.mxu1 %v6607_v41 }
 0x346   :  { %5448 = vmatpush3.bf16.msra.mxu1 %v6368_v45 }
 0x347   :  { %5449 = vmatprep.subr.bf16.mxu1 %v6607_v41 }
 0x34a   :  { %5450 = vmatpush3.bf16.msra.mxu1 %v6369_v46 }
 0x34b   :  { %5451 = vmatprep.subr.bf16.mxu1 %v6607_v41 }
 0x34e   :  { %5452 = vmatpush3.bf16.msra.mxu1 %v6370_v50 }
 0x34f   :  { %5453 = vmatprep.subr.bf16.mxu1 %v6607_v41 }
 0x352   :  { %5454 = vmatpush3.bf16.msra.mxu1 %v6371_v3 }
 0x353   :  { %5455 = vmatprep.subr.bf16.mxu1 %v6607_v41 }
 0x356   :  { %5456 = vmatpush3.bf16.msra.mxu1 %v6372_v23 }
 0x357   :  { %5457 = vmatprep.subr.bf16.mxu1 %v6607_v41 }
 0x35a   :  { %5458 = vmatpush3.bf16.msra.mxu1 %v6373_v43 }
 0x371   :  { %v4442_v36 = vpop.f32.mrf.mxu0 }
 0x372   :  { %v4443_v55 = vadd.f32 %v4442_v36, %v4081_v51 }
 0x373   :  { %v4444_v60 = vpop.f32.mrf.mxu0 }
 0x374   :  { %v4445_v63 = vadd.f32 %v4444_v60, %v4085_v54 }
 0x375   :  { %v4446_v37 = vpop.f32.mrf.mxu0 }
 0x377   :  { %v4447_v53 = vpop.f32.mrf.mxu0 }
 0x3fd   :  { %v4483_v56 = vpop.f32.mrf.mxu1 }
 0x3fe   :  { %v4484_v32 = vadd.f32 %v4483_v56, %v4443_v55 }
 0x3ff   :  { %v4485_v58 = vpop.f32.mrf.mxu1 }
 0x400   :  { %v4486_v33 = vadd.f32 %v4485_v58, %v4445_v63  ;;  %v4490_v0 = vmax.f32 %v4484_v32, 0.0 }
 0x401   :  { %v4487_v1 = vpop.f32.mrf.mxu1 }
 0x402   :  { %v4491_v2 = vmax.f32 %v4486_v33, 0.0  ;;  %v4492_v57 = vpack.c.bf16 %v4490_v0, %v4490_v0 }
 0x403   :  { %v4488_v5 = vpop.f32.mrf.mxu1 }
 0x404   :  { %v4493_v62 = vpack.c.bf16 %v4491_v2, %v4491_v2 }
 0x406   :  { %4661 = vmatprep.mubr.bf16.mxu0 %v4493_v62 }
 0x407   :  { %4662 = vmatmul.mubr.bf16.vlgmr.msra.gmra.mxu0 %v4492_v57 }
 0x4c7   :  { %v5428_v26 = vpop.f32.mrf.mxu0 }
 0x4c9   :  { %v5429_v48 = vpop.f32.mrf.mxu0 }
 0x4ca   :  { %v5430_v52 = vadd.f32 %v5429_v48, %v5428_v26 }
 0x4cb   :  { %v5431_v6 = vpop.f32.mrf.mxu0 }
 0x4cc   :  { %v4664_v7 = vadd.f32 %v5430_v52, %v5385_v47 }
 0x4cd   :  { %v5432_v8 = vpop.f32.mrf.mxu0 }
 0x4ce   :  { %v4669_v39 = vmax.f32 %v4664_v7, 0.0 }
 0x4d0   :  { %v4670_v44 = vpack.c.bf16 %v4669_v39, %v4669_v39 }
 0x4d2   :  { %5460 = vmatmul.mubr.bf16.vlgmr.msra.gmra.mxu1 %v4670_v44 }
 0x592   :  { %v4776_v14 = vpop.f32.mrf.mxu1 }
 0x593   :  { %v4777_v4 = vadd.f32 %v5402_v13, %v4776_v14 }
 0x594   :  { %v5461_v49 = vpop.f32.mrf.mxu1 }
 0x595   :  { %v5411_v61 = vmul.f32 -1.442695, %v4777_v4 }
 0x596   :  { %v4779_v18 = vpop.f32.mrf.mxu1 }
 0x597   :  { %6374 = vpow2.f32 %v5411_v61 }
 0x598   :  { %v5462_v19 = vpop.f32.mrf.mxu1 }
 0x5a4   :  { %v6375_v20 = vpop.eup %6374 }
 0x5a5   :  { %v4785_v21 = vadd.f32 1.0, %v6375_v20 }
 0x5a7   :  { %6376 = vrcp.f32 %v4785_v21 }
 0x5b4   :  { %v6377_v25 = vpop.eup %6376 }
 0x5b5   :  { %v4788_v11 = vpack.c.bf16 %v6377_v25, %v6377_v25 }
 0x5b7   :  { %4789 = vst [vmem:[#allocation17] sm:$0x1] %v4788_v11 }
 0x5b8   :  { %6570 = shalt.err (!%p6567_p7)
}
 0x5b9   :  { %4799 = dma.vmem_to_hbm [thread:$0]  %s4797_s8, 16, %s6857_s9, [#allocation4]  }
 0x5ba   :  { %6589 = dma.done.wait [#allocation4], 16  }
 0x5bb   :  { %6590 = vsyncadd [#allocation4], 4294967280 }
 0x5bc   :  { %4803 = vsyncpa [#allocation3], 1 }
 0x5bd   :  { %4804 = vsyncpa [#allocation6], 1 }
 0x5be   :  { %4805 = vsyncpa [#allocation9], 1 }
 0x5bf   :  { %4806 = vsyncpa [#allocation12], 1 }
 0x5c0   :  { %4807 = vsyncpa [#allocation15], 1 }
 0x5c1   :  { %4808 = vsyncpa [#allocation4], 1 }

// kernel: tpu_custom_call.1
= control target key start
LH: loop header
LB: loop body
LE: loop exit
PB: predicated region body
PF: predicated region fallthrough
CT: control target
= control target key end

     0   :  { %14 = vsyncpa [#allocation3], 0  ;;  %s6848_s0 = inlined_call_operand.hbm [shape: f32[2,2048], index: 0, kind: input, shape index: {}]   ;;  %s6849_s1 = inlined_call_operand.hbm [shape: bf16[2048,512], index: 1, kind: input, shape index: {}]   ;;  %s6850_s2 = inlined_call_operand.hbm [shape: f32[1,512], index: 2, kind: input, shape index: {}]   ;;  %s6851_s3 = inlined_call_operand.hbm [shape: bf16[512,256], index: 3, kind: input, shape index: {}]   ;;  %s6852_s4 = inlined_call_operand.hbm [shape: f32[1,256], index: 4, kind: input, shape index: {}]   ;;  %s6853_s5 = inlined_call_operand.hbm [shape: bf16[256,128], index: 5, kind: input, shape index: {}]   ;;  %s6854_s6 = inlined_call_operand.hbm [shape: f32[1,128], index: 6, kind: input, shape index: {}]   ;;  %s6855_s7 = inlined_call_operand.hbm [shape: bf16[128,128], index: 7, kind: input, shape index: {}]   ;;  %s6856_s8 = inlined_call_operand.hbm [shape: f32[1,128], index: 8, kind: input, shape index: {}]   ;;  %s6857_s9 = inlined_call_operand.hbm [shape: bf16[2,128], index: 9, kind: output, shape index: {}]  }
   0x1   :  { %15 = vsyncpa [#allocation6], 0 }
   0x2   :  { %16 = vsyncpa [#allocation9], 0 }
   0x3   :  { %17 = vsyncpa [#allocation12], 0 }
   0x4   :  { %18 = vsyncpa [#allocation15], 0 }
   0x5   :  { %19 = vsyncpa [#allocation4], 0  ;;  %s6591_s30 = smov [#allocation5]  }
   0x6   :  { %s35_s10 = sshll.u32 %s6591_s30, 4  ;;  %s36_s10 = int_to_ptr.vmem [resolvable:$true] %s35_s10 }
   0x7   :  { %s6387_s11 = scalar_lea.vmem %s36_s10, 65536  ;;  %p6392_p1 = scmp.lt.s32.totalorder %s36_s10, %s36_s10 }
   0x8   :  { %p6388_p0 = scmp.ne.s32.totalorder %s36_s10, %s6387_s11  ;;  %p6393_p2 = scmp.lt.s32.totalorder %s6387_s11, %s6387_s11 }
   0xa   :  { %p6394_p3 = por %p6393_p2, %p6392_p1 }
   0xc   :  { %p6395_p4 = pnand %p6394_p3, %p6388_p0 }
   0xe   :  { %6398 = shalt.err (!%p6395_p4)
}
   0xf   :  { %s6592_s12 = smov 256   ;;  %s6593_s13 = smov 16  }
  0x10   :  { %41 = dma.hbm_to_vmem [thread:$0]  %s6849_s1, 65536, %s36_s10, [#allocation6], %s6592_s12, %s6592_s12, %s6593_s13  }
  0x11   :  { %s6594_s16 = smov [#allocation8]  }
  0x12   :  { %s57_s17 = sshll.u32 %s6594_s16, 4  ;;  %s58_s17 = int_to_ptr.vmem [resolvable:$true] %s57_s17 }
  0x13   :  { %s6407_s18 = scalar_lea.vmem %s58_s17, 8192  ;;  %p6412_p6 = scmp.lt.s32.totalorder %s58_s17, %s58_s17 }
  0x14   :  { %p6408_p5 = scmp.ne.s32.totalorder %s58_s17, %s6407_s18  ;;  %p6413_p7 = scmp.lt.s32.totalorder %s6407_s18, %s6407_s18 }
  0x16   :  { %p6414_p8 = por %p6413_p7, %p6412_p6 }
  0x18   :  { %p6415_p9 = pnand %p6414_p8, %p6408_p5 }
  0x1a   :  { %6418 = shalt.err (!%p6415_p9)
}
  0x1b   :  { %s6595_s19 = smov 128   ;;  %s6596_s20 = smov 8  }
  0x1c   :  { %63 = dma.hbm_to_vmem [thread:$0]  %s6851_s3, 8192, %s58_s17, [#allocation9], %s6595_s19, %s6595_s19, %s6596_s20  }
  0x1d   :  { %s6597_s23 = smov [#allocation11]  }
  0x1e   :  { %s79_s24 = sshll.u32 %s6597_s23, 4  ;;  %s80_s24 = int_to_ptr.vmem [resolvable:$true] %s79_s24 }
  0x1f   :  { %s6427_s1 = scalar_lea.vmem %s80_s24, 2048  ;;  %p6432_p11 = scmp.lt.s32.totalorder %s80_s24, %s80_s24 }
  0x20   :  { %p6428_p10 = scmp.ne.s32.totalorder %s80_s24, %s6427_s1  ;;  %p6433_p12 = scmp.lt.s32.totalorder %s6427_s1, %s6427_s1 }
  0x22   :  { %p6434_p13 = por %p6433_p12, %p6432_p11 }
  0x24   :  { %p6435_p0 = pnand %p6434_p13, %p6428_p10 }
  0x26   :  { %6438 = shalt.err (!%p6435_p0)
}
  0x27   :  { %s6598_s25 = smov 64   ;;  %s6599_s26 = smov 4  }
  0x28   :  { %85 = dma.hbm_to_vmem [thread:$0]  %s6853_s5, 2048, %s80_s24, [#allocation12], %s6598_s25, %s6598_s25, %s6599_s26  }
  0x29   :  { %s6600_s29 = smov [#allocation14]   ;;  %s6601_s3 = smov [#allocation2]  }
  0x2a   :  { %s101_s30 = sshll.u32 %s6600_s29, 4  ;;  %s26_s10 = sshll.u32 %s6601_s3, 4  ;;  %s102_s30 = int_to_ptr.vmem [resolvable:$true] %s101_s30  ;;  %s27_s10 = int_to_ptr.vmem [resolvable:$true] %s26_s10 }
  0x2b   :  { %s6447_s11 = scalar_lea.vmem %s102_s30, 1024  ;;  %p6452_p2 = scmp.lt.s32.totalorder %s102_s30, %s102_s30 }
  0x2c   :  { %p6448_p1 = scmp.ne.s32.totalorder %s102_s30, %s6447_s11  ;;  %p6453_p3 = scmp.lt.s32.totalorder %s6447_s11, %s6447_s11 }
  0x2e   :  { %p6454_p4 = por %p6453_p3, %p6452_p2 }
  0x30   :  { %p6455_p5 = pnand %p6454_p4, %p6448_p1 }
  0x32   :  { %6458 = shalt.err (!%p6455_p5)
}
  0x33   :  { %107 = dma.hbm_to_vmem [thread:$0]  %s6855_s7, 1024, %s102_s30, [#allocation15], %s6598_s25, %s6598_s25, %s6599_s26  }
  0x34   :  { %s6467_s14 = scalar_lea.vmem %s27_s10, 512  ;;  %p6472_p7 = scmp.lt.s32.totalorder %s27_s10, %s27_s10 }
  0x35   :  { %p6468_p6 = scmp.ne.s32.totalorder %s27_s10, %s6467_s14  ;;  %p6473_p8 = scmp.lt.s32.totalorder %s6467_s14, %s6467_s14 }
  0x37   :  { %p6474_p9 = por %p6473_p8, %p6472_p7 }
  0x39   :  { %p6475_p10 = pnand %p6474_p9, %p6468_p6 }
  0x3b   :  { %6478 = shalt.err (!%p6475_p10)
}
  0x3c   :  { %29 = dma.hbm_to_vmem [thread:$0]  %s6848_s0, 512, %s27_s10, [#allocation3]  }
  0x3d   :  { %s6602_s16 = smov [#allocation7]   ;;  %s6603_s18 = smov [#allocation10]  }
  0x3e   :  { %s48_s17 = sshll.u32 %s6602_s16, 4  ;;  %s70_s19 = sshll.u32 %s6603_s18, 4  ;;  %s49_s17 = int_to_ptr.vmem [resolvable:$true] %s48_s17  ;;  %s71_s19 = int_to_ptr.vmem [resolvable:$true] %s70_s19 }
  0x3f   :  { %s6487_s20 = scalar_lea.vmem %s49_s17, 64  ;;  %p6492_p12 = scmp.lt.s32.totalorder %s49_s17, %s49_s17 }
  0x40   :  { %p6488_p11 = scmp.ne.s32.totalorder %s49_s17, %s6487_s20  ;;  %p6493_p13 = scmp.lt.s32.totalorder %s6487_s20, %s6487_s20 }
  0x42   :  { %p6494_p0 = por %p6493_p13, %p6492_p12 }
  0x44   :  { %p6495_p1 = pnand %p6494_p0, %p6488_p11 }
  0x46   :  { %6498 = shalt.err (!%p6495_p1)
}
  0x47   :  { %51 = dma.hbm_to_vmem [thread:$0]  %s6850_s2, 64, %s49_s17, [#allocation6]  }
  0x48   :  { %s6507_s22 = scalar_lea.vmem %s71_s19, 32  ;;  %p6512_p3 = scmp.lt.s32.totalorder %s71_s19, %s71_s19 }
  0x49   :  { %p6508_p2 = scmp.ne.s32.totalorder %s71_s19, %s6507_s22  ;;  %p6513_p4 = scmp.lt.s32.totalorder %s6507_s22, %s6507_s22 }
  0x4b   :  { %p6514_p5 = por %p6513_p4, %p6512_p3 }
  0x4d   :  { %p6515_p6 = pnand %p6514_p5, %p6508_p2 }
  0x4f   :  { %6518 = shalt.err (!%p6515_p6)
}
  0x50   :  { %73 = dma.hbm_to_vmem [thread:$0]  %s6852_s4, 32, %s71_s19, [#allocation9]  }
  0x51   :  { %s6604_s24 = smov [#allocation13]   ;;  %s6605_s25 = smov [#allocation16]  }
  0x52   :  { %s92_s1 = sshll.u32 %s6604_s24, 4  ;;  %s114_s26 = sshll.u32 %s6605_s25, 4  ;;  %s93_s1 = int_to_ptr.vmem [resolvable:$true] %s92_s1  ;;  %s115_s26 = int_to_ptr.vmem [resolvable:$true] %s114_s26 }
  0x53   :  { %s6527_s27 = scalar_lea.vmem %s93_s1, 16  ;;  %s6531_s2 = scalar_lea.vmem %s93_s1, 32 }
  0x54   :  { %p6528_p7 = scmp.ne.s32.totalorder %s93_s1, %s6527_s27  ;;  %p6532_p8 = scmp.lt.s32.totalorder %s93_s1, %s93_s1 }
  0x55   :  { %p6533_p9 = scmp.lt.s32.totalorder %s6531_s2, %s6527_s27 }
  0x57   :  { %p6534_p10 = por %p6533_p9, %p6532_p8 }
  0x59   :  { %p6535_p11 = pnand %p6534_p10, %p6528_p7 }
  0x5b   :  { %6538 = shalt.err (!%p6535_p11)
}
  0x5c   :  { %95 = dma.hbm_to_vmem [thread:$0]  %s6854_s6, 16, %s93_s1, [#allocation12]  }
  0x5d   :  { %s6547_s30 = scalar_lea.vmem %s115_s26, 16  ;;  %s6551_s4 = scalar_lea.vmem %s115_s26, 32 }
  0x5e   :  { %p6548_p12 = scmp.ne.s32.totalorder %s115_s26, %s6547_s30  ;;  %p6552_p13 = scmp.lt.s32.totalorder %s115_s26, %s115_s26 }
  0x5f   :  { %p6553_p0 = scmp.lt.s32.totalorder %s6551_s4, %s6547_s30 }
  0x61   :  { %p6554_p1 = por %p6553_p0, %p6552_p13 }
  0x63   :  { %p6555_p2 = pnand %p6554_p1, %p6548_p12 }
  0x65   :  { %6558 = shalt.err (!%p6555_p2)
}
  0x66   :  { %117 = dma.hbm_to_vmem [thread:$0]  %s6856_s8, 16, %s115_s26, [#allocation15]  }
  0x67   :  { %6579 = dma.done.wait [#allocation3], 512  }
  0x68   :  { %6580 = vsyncadd [#allocation3], 4294966784 }
  0x69   :  { %6581 = dma.done.wait [#allocation6], 65600  }
  0x6a   :  { %6582 = vsyncadd [#allocation6], 4294901696 }
  0x6b   :  { %6583 = dma.done.wait [#allocation9], 8224  }
  0x6c   :  { %6584 = vsyncadd [#allocation9], 4294959072 }
  0x6d   :  { %6585 = dma.done.wait [#allocation12], 2064  }
  0x6e   :  { %6586 = vsyncadd [#allocation12], 4294965232 }
  0x6f   :  { %6587 = dma.done.wait [#allocation15], 1040  }
  0x70   :  { %6588 = vsyncadd [#allocation15], 4294966256  ;;  %v5482_v0 = vld [vmem:[#allocation5 + $0xe4] ss:$16 sps:$4 sm:$0xff]   ;;  %v5486_v2 = vld [vmem:[#allocation5 + $0xe0] ss:$16 sps:$4 sm:$0xff]   ;;  %v158_v38 = vlaneseq }
  0x71   :  { %v5484_v1 = vld [vmem:[#allocation5 + $0x2e4] ss:$16 sps:$4 sm:$0xff]   ;;  %3348 = vmatprep.subr.bf16.mxu0 %v5482_v0  ;;  %v5487_v3 = vld [vmem:[#allocation5 + $0x2e0] ss:$16 sps:$4 sm:$0xff]   ;;  %v6606_v36 = vmov 1983009808  }
  0x72   :  { %3389 = vmatprep.subr.bf16.mxu1 %v5484_v1  ;;  %v5488_v4 = vld [vmem:[#allocation5 + $0xc4] ss:$16 sps:$4 sm:$0xff]   ;;  %3349 = vmatpush1.bf16.msra.mxu0 %v5486_v2  ;;  %v5492_v6 = vld [vmem:[#allocation5 + $0xc0] ss:$16 sps:$4 sm:$0xff]   ;;  %v156_v37 = vunpack.c.l.s4 %v6606_v36  ;;  %v6687_v43 = vshrl.u32 %v158_v38, 7  ;;  %vm6608_vm0 = vmmov 0  }
  0x73   :  { %3390 = vmatpush1.bf16.msra.mxu1 %v5487_v3  ;;  %v5490_v5 = vld [vmem:[#allocation5 + $0x2c4] ss:$16 sps:$4 sm:$0xff]   ;;  %3350 = vmatprep.subr.bf16.mxu0 %v5488_v4  ;;  %v5493_v7 = vld [vmem:[#allocation5 + $0x2c0] ss:$16 sps:$4 sm:$0xff]   ;;  %s6609_s6 = smov [#allocation17]  }
  0x74   :  { %3391 = vmatprep.subr.bf16.mxu1 %v5490_v5  ;;  %v5494_v8 = vld [vmem:[#allocation5 + $0xa4] ss:$16 sps:$4 sm:$0xff]   ;;  %v5498_v10 = vld [vmem:[#allocation5 + $0xa0] ss:$16 sps:$4 sm:$0xff]   ;;  %v157_v42 = vunpack.c.0.s8 %v156_v37  ;;  %s4796_s8 = sshll.u32 %s6609_s6, 4  ;;  %s4797_s8 = int_to_ptr.vmem [resolvable:$true] %s4796_s8 }
  0x75   :  { %v5496_v9 = vld [vmem:[#allocation5 + $0x2a4] ss:$16 sps:$4 sm:$0xff]   ;;  %v5499_v11 = vld [vmem:[#allocation5 + $0x2a0] ss:$16 sps:$4 sm:$0xff]   ;;  %s6559_s11 = scalar_lea.vmem %s4797_s8, 16  ;;  %s6563_s12 = scalar_lea.vmem %s4797_s8, 32 }
  0x76   :  { %3351 = vmatpush1.bf16.msra.mxu0 %v5492_v6  ;;  %v5500_v12 = vld [vmem:[#allocation5 + $0x84] ss:$16 sps:$4 sm:$0xff]   ;;  %v5504_v14 = vld [vmem:[#allocation5 + $0x80] ss:$16 sps:$4 sm:$0xff]   ;;  %v6690_v49 = vsub.s32 %v157_v42, %v6687_v43  ;;  %v147_v42 = vld [vmem:[#allocation2 + $0x8] sm:$0xff]  ;;  %p6560_p3 = scmp.ne.s32.totalorder %s4797_s8, %s6559_s11  ;;  %p6564_p4 = scmp.lt.s32.totalorder %s4797_s8, %s4797_s8 }
  0x77   :  { %3392 = vmatpush1.bf16.msra.mxu1 %v5493_v7  ;;  %3352 = vmatprep.subr.bf16.mxu0 %v5494_v8  ;;  %v5502_v13 = vld [vmem:[#allocation5 + $0x284] ss:$16 sps:$4 sm:$0xff]   ;;  %v5505_v15 = vld [vmem:[#allocation5 + $0x280] ss:$16 sps:$4 sm:$0xff]   ;;  %p6565_p5 = scmp.lt.s32.totalorder %s6563_s12, %s6559_s11 }
  0x78   :  { %3393 = vmatprep.subr.bf16.mxu1 %v5496_v9  ;;  %v5506_v16 = vld [vmem:[#allocation5 + $0x64] ss:$16 sps:$4 sm:$0xff]   ;;  %v5510_v18 = vld [vmem:[#allocation5 + $0x60] ss:$16 sps:$4 sm:$0xff]  }
  0x79   :  { %v5508_v17 = vld [vmem:[#allocation5 + $0x264] ss:$16 sps:$4 sm:$0xff]   ;;  %v5511_v19 = vld [vmem:[#allocation5 + $0x260] ss:$16 sps:$4 sm:$0xff]   ;;  %p6566_p6 = por %p6565_p5, %p6564_p4 }
  0x7a   :  { %3353 = vmatpush1.bf16.msra.mxu0 %v5498_v10  ;;  %v5512_v20 = vld [vmem:[#allocation5 + $0x44] ss:$16 sps:$4 sm:$0xff]   ;;  %v5516_v22 = vld [vmem:[#allocation5 + $0x40] ss:$16 sps:$4 sm:$0xff]  }
  0x7b   :  { %3394 = vmatpush1.bf16.msra.mxu1 %v5499_v11  ;;  %3354 = vmatprep.subr.bf16.mxu0 %v5500_v12  ;;  %v5514_v21 = vld [vmem:[#allocation5 + $0x244] ss:$16 sps:$4 sm:$0xff]   ;;  %v5517_v23 = vld [vmem:[#allocation5 + $0x240] ss:$16 sps:$4 sm:$0xff]   ;;  %p6567_p7 = pnand %p6566_p6, %p6560_p3 }
  0x7c   :  { %3395 = vmatprep.subr.bf16.mxu1 %v5502_v13  ;;  %v5518_v24 = vld [vmem:[#allocation5 + $0x24] ss:$16 sps:$4 sm:$0xff]   ;;  %v5522_v26 = vld [vmem:[#allocation5 + $0x20] ss:$16 sps:$4 sm:$0xff]  }
  0x7d   :  { %v5520_v25 = vld [vmem:[#allocation5 + $0x224] ss:$16 sps:$4 sm:$0xff]   ;;  %v5523_v27 = vld [vmem:[#allocation5 + $0x220] ss:$16 sps:$4 sm:$0xff]  }
  0x7e   :  { %3355 = vmatpush1.bf16.msra.mxu0 %v5504_v14  ;;  %v5524_v28 = vld [vmem:[#allocation5 + $0x4] ss:$16 sps:$4 sm:$0xff]   ;;  %v5528_v30 = vld [vmem:[#allocation5] ss:$16 sps:$4 sm:$0xff]  }
  0x7f   :  { %3396 = vmatpush1.bf16.msra.mxu1 %v5505_v15  ;;  %3356 = vmatprep.subr.bf16.mxu0 %v5506_v16  ;;  %v5526_v29 = vld [vmem:[#allocation5 + $0x204] ss:$16 sps:$4 sm:$0xff]   ;;  %v5529_v31 = vld [vmem:[#allocation5 + $0x200] ss:$16 sps:$4 sm:$0xff]  }
  0x80   :  { %3397 = vmatprep.subr.bf16.mxu1 %v5508_v17  ;;  %v5530_v32 = vld [vmem:[#allocation5 + $0x1e4] ss:$16 sps:$4 sm:$0xff]   ;;  %v5534_v34 = vld [vmem:[#allocation5 + $0x1e0] ss:$16 sps:$4 sm:$0xff]  }
  0x81   :  { %v5532_v33 = vld [vmem:[#allocation5 + $0x3e4] ss:$16 sps:$4 sm:$0xff]   ;;  %v5535_v35 = vld [vmem:[#allocation5 + $0x3e0] ss:$16 sps:$4 sm:$0xff]  }
  0x82   :  { %3357 = vmatpush1.bf16.msra.mxu0 %v5510_v18  ;;  %v5536_v39 = vld [vmem:[#allocation5 + $0x1c4] ss:$16 sps:$4 sm:$0xff]   ;;  %v5540_v41 = vld [vmem:[#allocation5 + $0x1c0] ss:$16 sps:$4 sm:$0xff]  }
  0x83   :  { %3398 = vmatpush1.bf16.msra.mxu1 %v5511_v19  ;;  %3358 = vmatprep.subr.bf16.mxu0 %v5512_v20  ;;  %v5538_v40 = vld [vmem:[#allocation5 + $0x3c4] ss:$16 sps:$4 sm:$0xff]   ;;  %v5541_v44 = vld [vmem:[#allocation5 + $0x3c0] ss:$16 sps:$4 sm:$0xff]  }
  0x84   :  { %3399 = vmatprep.subr.bf16.mxu1 %v5514_v21  ;;  %v5542_v45 = vld [vmem:[#allocation5 + $0x1a4] ss:$16 sps:$4 sm:$0xff]   ;;  %v5546_v47 = vld [vmem:[#allocation5 + $0x1a0] ss:$16 sps:$4 sm:$0xff]  }
  0x85   :  { %v5544_v46 = vld [vmem:[#allocation5 + $0x3a4] ss:$16 sps:$4 sm:$0xff]   ;;  %v5547_v48 = vld [vmem:[#allocation5 + $0x3a0] ss:$16 sps:$4 sm:$0xff]  }
  0x86   :  { %3359 = vmatpush1.bf16.msra.mxu0 %v5516_v22  ;;  %v5548_v50 = vld [vmem:[#allocation5 + $0x184] ss:$16 sps:$4 sm:$0xff]   ;;  %v5552_v53 = vld [vmem:[#allocation5 + $0x180] ss:$16 sps:$4 sm:$0xff]  }
  0x87   :  { %3400 = vmatpush1.bf16.msra.mxu1 %v5517_v23  ;;  %3360 = vmatprep.subr.bf16.mxu0 %v5518_v24  ;;  %v5550_v51 = vld [vmem:[#allocation5 + $0x384] ss:$16 sps:$4 sm:$0xff]   ;;  %v5553_v56 = vld [vmem:[#allocation5 + $0x380] ss:$16 sps:$4 sm:$0xff]  }
  0x88   :  { %3401 = vmatprep.subr.bf16.mxu1 %v5520_v25  ;;  %v146_v52 = vld [vmem:[#allocation2] sm:$0xff] }
  0x89   :  { %v161_v54 = vrot.slane %v146_v52, %v6690_v49  ;;  %v154_v55 = vcombine.high %v146_v52, %v146_v52  ;;  %v5554_v57 = vld [vmem:[#allocation5 + $0x164] ss:$16 sps:$4 sm:$0xff]   ;;  %v5558_v61 = vld [vmem:[#allocation5 + $0x160] ss:$16 sps:$4 sm:$0xff]  }
  0x8a   :  { %3361 = vmatpush1.bf16.msra.mxu0 %v5522_v26  ;;  %v5556_v58 = vld [vmem:[#allocation5 + $0x364] ss:$16 sps:$4 sm:$0xff]   ;;  %v5559_v0 = vld [vmem:[#allocation5 + $0x360] ss:$16 sps:$4 sm:$0xff]  }
  0x8b   :  { %3402 = vmatpush1.bf16.msra.mxu1 %v5523_v27  ;;  %3362 = vmatprep.subr.bf16.mxu0 %v5524_v28  ;;  %v169_v59 = vcombine.high %v161_v54, %v161_v54  ;;  %v168_v60 = vrot.slane %v154_v55, %v6690_v49  ;;  %v5560_v1 = vld [vmem:[#allocation5 + $0x144] ss:$16 sps:$4 sm:$0xff]   ;;  %v5564_v4 = vld [vmem:[#allocation5 + $0x140] ss:$16 sps:$4 sm:$0xff]   ;;  %v6700_v16 = vpack.c.bf16 %v161_v54, %v161_v54 }
  0x8c   :  { %3403 = vmatprep.subr.bf16.mxu1 %v5526_v29  ;;  %v5562_v2 = vld [vmem:[#allocation5 + $0x344] ss:$16 sps:$4 sm:$0xff]   ;;  %v5565_v5 = vld [vmem:[#allocation5 + $0x340] ss:$16 sps:$4 sm:$0xff]  }
  0x8d   :  { %v6694_v62 = vpack.c.bf16 %v169_v59, %v169_v59  ;;  %v170_v63 = vcombine.high %v168_v60, %v168_v60  ;;  %v5566_v6 = vld [vmem:[#allocation5 + $0x124] ss:$16 sps:$4 sm:$0xff]   ;;  %v5570_v8 = vld [vmem:[#allocation5 + $0x120] ss:$16 sps:$4 sm:$0xff]   ;;  %v6702_v17 = vpack.c.bf16 %v168_v60, %v168_v60 }
  0x8e   :  { %3363 = vmatpush1.bf16.msra.mxu0 %v5528_v30  ;;  %v5568_v7 = vld [vmem:[#allocation5 + $0x324] ss:$16 sps:$4 sm:$0xff]   ;;  %v5571_v9 = vld [vmem:[#allocation5 + $0x320] ss:$16 sps:$4 sm:$0xff]  }
  0x8f   :  { %3404 = vmatpush1.bf16.msra.mxu1 %v5529_v31  ;;  %3364 = vmatprep.subr.bf16.mxu0 %v5530_v32  ;;  %v6696_v3 = vpack.c.bf16 %v170_v63, %v170_v63  ;;  %v5572_v10 = vld [vmem:[#allocation5 + $0x104] ss:$16 sps:$4 sm:$0xff]   ;;  %v5576_v12 = vld [vmem:[#allocation5 + $0x100] ss:$16 sps:$4 sm:$0xff]  }
  0x90   :  { %3405 = vmatprep.subr.bf16.mxu1 %v5532_v33  ;;  %3380 = vmatprep.mubr.bf16.mxu0 %v6694_v62  ;;  %v5574_v11 = vld [vmem:[#allocation5 + $0x304] ss:$16 sps:$4 sm:$0xff]   ;;  %v5577_v13 = vld [vmem:[#allocation5 + $0x300] ss:$16 sps:$4 sm:$0xff]  }
  0x91   :  { %3421 = vmatprep.mubr.bf16.mxu1 %v6696_v3  ;;  %v5581_v14 = vld [vmem:[#allocation5 + $0x4e4] ss:$16 sps:$4 sm:$0xff]   ;;  %v5579_v18 = vld [vmem:[#allocation5 + $0x4e0] ss:$16 sps:$4 sm:$0xff]  }
  0x92   :  { %3365 = vmatpush2.bf16.msra.mxu0 %v5534_v34  ;;  %v5584_v15 = vld [vmem:[#allocation5 + $0x6e4] ss:$16 sps:$4 sm:$0xff]   ;;  %v5582_v19 = vld [vmem:[#allocation5 + $0x6e0] ss:$16 sps:$4 sm:$0xff]  }
  0x93   :  { %3406 = vmatpush2.bf16.msra.mxu1 %v5535_v35  ;;  %3366 = vmatprep.subr.bf16.mxu0 %v5536_v39  ;;  %v5587_v20 = vld [vmem:[#allocation5 + $0x4c4] ss:$16 sps:$4 sm:$0xff]   ;;  %v5585_v22 = vld [vmem:[#allocation5 + $0x4c0] ss:$16 sps:$4 sm:$0xff]  }
  0x94   :  { %3407 = vmatprep.subr.bf16.mxu1 %v5538_v40  ;;  %v5590_v21 = vld [vmem:[#allocation5 + $0x6c4] ss:$16 sps:$4 sm:$0xff]   ;;  %v5588_v23 = vld [vmem:[#allocation5 + $0x6c0] ss:$16 sps:$4 sm:$0xff]  }
  0x95   :  { %v5593_v24 = vld [vmem:[#allocation5 + $0x4a4] ss:$16 sps:$4 sm:$0xff]   ;;  %v5591_v26 = vld [vmem:[#allocation5 + $0x4a0] ss:$16 sps:$4 sm:$0xff]  }
  0x96   :  { %3367 = vmatpush2.bf16.msra.mxu0 %v5540_v41  ;;  %v5596_v25 = vld [vmem:[#allocation5 + $0x6a4] ss:$16 sps:$4 sm:$0xff]   ;;  %v5594_v27 = vld [vmem:[#allocation5 + $0x6a0] ss:$16 sps:$4 sm:$0xff]  }
  0x97   :  { %3408 = vmatpush2.bf16.msra.mxu1 %v5541_v44  ;;  %3368 = vmatprep.subr.bf16.mxu0 %v5542_v45  ;;  %v5599_v28 = vld [vmem:[#allocation5 + $0x484] ss:$16 sps:$4 sm:$0xff]   ;;  %v5597_v30 = vld [vmem:[#allocation5 + $0x480] ss:$16 sps:$4 sm:$0xff]   ;;  %v6707_v44 = vrot.slane %v147_v42, %v6690_v49  ;;  %v171_v45 = vcombine.high %v147_v42, %v147_v42 }
  0x98   :  { %3409 = vmatprep.subr.bf16.mxu1 %v5544_v46  ;;  %v5602_v29 = vld [vmem:[#allocation5 + $0x684] ss:$16 sps:$4 sm:$0xff]   ;;  %v5600_v31 = vld [vmem:[#allocation5 + $0x680] ss:$16 sps:$4 sm:$0xff]  }
  0x99   :  { %v5605_v32 = vld [vmem:[#allocation5 + $0x464] ss:$16 sps:$4 sm:$0xff]   ;;  %v5603_v34 = vld [vmem:[#allocation5 + $0x460] ss:$16 sps:$4 sm:$0xff]  }
  0x9a   :  { %3369 = vmatpush2.bf16.msra.mxu0 %v5546_v47  ;;  %v5608_v33 = vld [vmem:[#allocation5 + $0x664] ss:$16 sps:$4 sm:$0xff]   ;;  %v5606_v35 = vld [vmem:[#allocation5 + $0x660] ss:$16 sps:$4 sm:$0xff]  }
  0x9b   :  { %3410 = vmatpush2.bf16.msra.mxu1 %v5547_v48  ;;  %3370 = vmatprep.subr.bf16.mxu0 %v5548_v50  ;;  %v5611_v36 = vld [vmem:[#allocation5 + $0x444] ss:$16 sps:$4 sm:$0xff]   ;;  %v5609_v38 = vld [vmem:[#allocation5 + $0x440] ss:$16 sps:$4 sm:$0xff]   ;;  %v186_v48 = vcombine.high %v6707_v44, %v6707_v44  ;;  %v6712_v50 = vrot.slane %v171_v45, %v6690_v49 }
  0x9c   :  { %3411 = vmatprep.subr.bf16.mxu1 %v5550_v51  ;;  %v5614_v37 = vld [vmem:[#allocation5 + $0x644] ss:$16 sps:$4 sm:$0xff]   ;;  %v5612_v39 = vld [vmem:[#allocation5 + $0x640] ss:$16 sps:$4 sm:$0xff]  }
  0x9d   :  { %v5617_v40 = vld [vmem:[#allocation5 + $0x424] ss:$16 sps:$4 sm:$0xff]   ;;  %v5615_v46 = vld [vmem:[#allocation5 + $0x420] ss:$16 sps:$4 sm:$0xff]   ;;  %v187_v54 = vcombine.high %v6712_v50, %v6712_v50 }
  0x9e   :  { %3371 = vmatpush2.bf16.msra.mxu0 %v5552_v53  ;;  %v5620_v41 = vld [vmem:[#allocation5 + $0x624] ss:$16 sps:$4 sm:$0xff]   ;;  %v5618_v47 = vld [vmem:[#allocation5 + $0x620] ss:$16 sps:$4 sm:$0xff]   ;;  %v6714_v53 = vpack.c.bf16 %v186_v48, %v186_v48 }
  0x9f   :  { %3412 = vmatpush2.bf16.msra.mxu1 %v5553_v56  ;;  %3372 = vmatprep.subr.bf16.mxu0 %v5554_v57  ;;  %v5623_v51 = vld [vmem:[#allocation5 + $0x404] ss:$16 sps:$4 sm:$0xff]   ;;  %v5621_v55 = vld [vmem:[#allocation5 + $0x400] ss:$16 sps:$4 sm:$0xff]   ;;  %v6718_v57 = vpack.c.bf16 %v187_v54, %v187_v54 }
  0xa0   :  { %3413 = vmatprep.subr.bf16.mxu1 %v5556_v58  ;;  %v5626_v52 = vld [vmem:[#allocation5 + $0x604] ss:$16 sps:$4 sm:$0xff]   ;;  %v5624_v56 = vld [vmem:[#allocation5 + $0x600] ss:$16 sps:$4 sm:$0xff]  }
  0xa1   :  { %v5629_v58 = vld [vmem:[#allocation5 + $0x5e4] ss:$16 sps:$4 sm:$0xff]   ;;  %v5627_v60 = vld [vmem:[#allocation5 + $0x5e0] ss:$16 sps:$4 sm:$0xff]  }
  0xa2   :  { %3373 = vmatpush2.bf16.msra.mxu0 %v5558_v61  ;;  %v5632_v59 = vld [vmem:[#allocation5 + $0x7e4] ss:$16 sps:$4 sm:$0xff]   ;;  %v5630_v61 = vld [vmem:[#allocation5 + $0x7e0] ss:$16 sps:$4 sm:$0xff]  }
  0xa3   :  { %3414 = vmatpush2.bf16.msra.mxu1 %v5559_v0  ;;  %3374 = vmatprep.subr.bf16.mxu0 %v5560_v1  ;;  %v5635_v63 = vld [vmem:[#allocation5 + $0x5c4] ss:$16 sps:$4 sm:$0xff]   ;;  %v5633_v1 = vld [vmem:[#allocation5 + $0x5c0] ss:$16 sps:$4 sm:$0xff]  }
  0xa4   :  { %3415 = vmatprep.subr.bf16.mxu1 %v5562_v2  ;;  %v5638_v0 = vld [vmem:[#allocation5 + $0x7c4] ss:$16 sps:$4 sm:$0xff]   ;;  %v5636_v2 = vld [vmem:[#allocation5 + $0x7c0] ss:$16 sps:$4 sm:$0xff]  }
  0xa5   :  { %v5685_v45 = vld [vmem:[#allocation5 + $0xac0] ss:$16 sps:$4 sm:$0xff]  }
  0xa6   :  { %3375 = vmatpush2.bf16.msra.mxu0 %v5564_v4  ;;  %v5641_v4 = vld [vmem:[#allocation5 + $0x5a4] ss:$16 sps:$4 sm:$0xff]   ;;  %v5691_v54 = vld [vmem:[#allocation5 + $0xaa0] ss:$16 sps:$4 sm:$0xff]  }
  0xa7   :  { %3416 = vmatpush2.bf16.msra.mxu1 %v5565_v5  ;;  %3376 = vmatprep.subr.bf16.mxu0 %v5566_v6  ;;  %v5644_v5 = vld [vmem:[#allocation5 + $0x7a4] ss:$16 sps:$4 sm:$0xff]   ;;  %v5639_v6 = vld [vmem:[#allocation5 + $0x5a0] ss:$16 sps:$4 sm:$0xff]  }
  0xa8   :  { %3417 = vmatprep.subr.bf16.mxu1 %v5568_v7  ;;  %v5642_v7 = vld [vmem:[#allocation5 + $0x7a0] ss:$16 sps:$4 sm:$0xff]  }
  0xaa   :  { %3377 = vmatpush2.bf16.msra.mxu0 %v5570_v8  ;;  %v5647_v8 = vld [vmem:[#allocation5 + $0x584] ss:$16 sps:$4 sm:$0xff]  }
  0xab   :  { %3418 = vmatpush2.bf16.msra.mxu1 %v5571_v9  ;;  %3378 = vmatprep.subr.bf16.mxu0 %v5572_v10  ;;  %v5650_v9 = vld [vmem:[#allocation5 + $0x784] ss:$16 sps:$4 sm:$0xff]   ;;  %v5645_v10 = vld [vmem:[#allocation5 + $0x580] ss:$16 sps:$4 sm:$0xff]  }
  0xac   :  { %3419 = vmatprep.subr.bf16.mxu1 %v5574_v11  ;;  %v5648_v11 = vld [vmem:[#allocation5 + $0x780] ss:$16 sps:$4 sm:$0xff]  }
  0xae   :  { %3379 = vmatpush2.bf16.msra.mxu0 %v5576_v12  ;;  %v5653_v12 = vld [vmem:[#allocation5 + $0x564] ss:$16 sps:$4 sm:$0xff]  }
  0xaf   :  { %3420 = vmatpush2.bf16.msra.mxu1 %v5577_v13  ;;  %3430 = vmatprep.subr.bf16.mxu0 %v5581_v14  ;;  %v5656_v13 = vld [vmem:[#allocation5 + $0x764] ss:$16 sps:$4 sm:$0xff]   ;;  %v5651_v14 = vld [vmem:[#allocation5 + $0x560] ss:$16 sps:$4 sm:$0xff]  }
  0xb0   :  { %3471 = vmatprep.subr.bf16.mxu1 %v5584_v15  ;;  %v5654_v15 = vld [vmem:[#allocation5 + $0x760] ss:$16 sps:$4 sm:$0xff]  }
  0xb1   :  { %3381 = vmatmul.mubr.bf16.vlgmr.msra.gmra.mxu0 %v6700_v16 }
  0xb2   :  { %3422 = vmatmul.mubr.bf16.vlgmr.msra.gmra.mxu1 %v6702_v17  ;;  %3431 = vmatpush1.bf16.msra.mxu0 %v5579_v18  ;;  %v5659_v18 = vld [vmem:[#allocation5 + $0x544] ss:$16 sps:$4 sm:$0xff]  }
  0xb3   :  { %3472 = vmatpush1.bf16.msra.mxu1 %v5582_v19  ;;  %3432 = vmatprep.subr.bf16.mxu0 %v5587_v20  ;;  %v5662_v19 = vld [vmem:[#allocation5 + $0x744] ss:$16 sps:$4 sm:$0xff]   ;;  %v5657_v20 = vld [vmem:[#allocation5 + $0x540] ss:$16 sps:$4 sm:$0xff]  }
  0xb4   :  { %3473 = vmatprep.subr.bf16.mxu1 %v5590_v21  ;;  %3462 = vmatprep.mubr.bf16.mxu0 %v6714_v53  ;;  %v5660_v21 = vld [vmem:[#allocation5 + $0x740] ss:$16 sps:$4 sm:$0xff]  }
  0xb5   :  { %3503 = vmatprep.mubr.bf16.mxu1 %v6718_v57 }
  0xb6   :  { %3433 = vmatpush1.bf16.msra.mxu0 %v5585_v22  ;;  %v5665_v22 = vld [vmem:[#allocation5 + $0x524] ss:$16 sps:$4 sm:$0xff]  }
  0xb7   :  { %3474 = vmatpush1.bf16.msra.mxu1 %v5588_v23  ;;  %3434 = vmatprep.subr.bf16.mxu0 %v5593_v24  ;;  %v5668_v23 = vld [vmem:[#allocation5 + $0x724] ss:$16 sps:$4 sm:$0xff]   ;;  %v5663_v24 = vld [vmem:[#allocation5 + $0x520] ss:$16 sps:$4 sm:$0xff]  }
  0xb8   :  { %3475 = vmatprep.subr.bf16.mxu1 %v5596_v25  ;;  %v5666_v25 = vld [vmem:[#allocation5 + $0x720] ss:$16 sps:$4 sm:$0xff]  }
  0xba   :  { %3435 = vmatpush1.bf16.msra.mxu0 %v5591_v26  ;;  %v5671_v26 = vld [vmem:[#allocation5 + $0x504] ss:$16 sps:$4 sm:$0xff]  }
  0xbb   :  { %3476 = vmatpush1.bf16.msra.mxu1 %v5594_v27  ;;  %3436 = vmatprep.subr.bf16.mxu0 %v5599_v28  ;;  %v5674_v27 = vld [vmem:[#allocation5 + $0x704] ss:$16 sps:$4 sm:$0xff]   ;;  %v5669_v28 = vld [vmem:[#allocation5 + $0x500] ss:$16 sps:$4 sm:$0xff]  }
  0xbc   :  { %3477 = vmatprep.subr.bf16.mxu1 %v5602_v29  ;;  %v5672_v29 = vld [vmem:[#allocation5 + $0x700] ss:$16 sps:$4 sm:$0xff]  }
  0xbe   :  { %3437 = vmatpush1.bf16.msra.mxu0 %v5597_v30  ;;  %v5678_v30 = vld [vmem:[#allocation5 + $0x8e4] ss:$16 sps:$4 sm:$0xff]  }
  0xbf   :  { %3478 = vmatpush1.bf16.msra.mxu1 %v5600_v31  ;;  %3438 = vmatprep.subr.bf16.mxu0 %v5605_v32  ;;  %v5681_v31 = vld [vmem:[#allocation5 + $0xae4] ss:$16 sps:$4 sm:$0xff]   ;;  %v6724_v32 = vpack.c.bf16 %v6707_v44, %v6707_v44 }
  0xc0   :  { %3479 = vmatprep.subr.bf16.mxu1 %v5608_v33  ;;  %v6728_v33 = vpack.c.bf16 %v6712_v50, %v6712_v50 }
  0xc2   :  { %3439 = vmatpush1.bf16.msra.mxu0 %v5603_v34  ;;  %v5676_v34 = vld [vmem:[#allocation5 + $0x8e0] ss:$16 sps:$4 sm:$0xff]  }
  0xc3   :  { %3480 = vmatpush1.bf16.msra.mxu1 %v5606_v35  ;;  %3440 = vmatprep.subr.bf16.mxu0 %v5611_v36  ;;  %v5679_v35 = vld [vmem:[#allocation5 + $0xae0] ss:$16 sps:$4 sm:$0xff]   ;;  %v5684_v36 = vld [vmem:[#allocation5 + $0x8c4] ss:$16 sps:$4 sm:$0xff]  }
  0xc4   :  { %3481 = vmatprep.subr.bf16.mxu1 %v5614_v37  ;;  %v148_v37 = vld [vmem:[#allocation2 + $0x10] sm:$0xff] }
  0xc6   :  { %3441 = vmatpush1.bf16.msra.mxu0 %v5609_v38  ;;  %v5687_v38 = vld [vmem:[#allocation5 + $0xac4] ss:$16 sps:$4 sm:$0xff]  }
  0xc7   :  { %3482 = vmatpush1.bf16.msra.mxu1 %v5612_v39  ;;  %3442 = vmatprep.subr.bf16.mxu0 %v5617_v40  ;;  %v6731_v39 = vrot.slane %v148_v37, %v6690_v49  ;;  %v188_v40 = vcombine.high %v148_v37, %v148_v37  ;;  %v5751_v37 = vld [vmem:[#allocation5 + $0xb60] ss:$16 sps:$4 sm:$0xff]  }
  0xc8   :  { %3483 = vmatprep.subr.bf16.mxu1 %v5620_v41  ;;  %v5682_v41 = vld [vmem:[#allocation5 + $0x8c0] ss:$16 sps:$4 sm:$0xff]  }
  0xc9   :  { %v203_v42 = vcombine.high %v6731_v39, %v6731_v39  ;;  %v6738_v44 = vrot.slane %v188_v40, %v6690_v49  ;;  %v5759_v40 = vld [vmem:[#allocation5 + $0xb44] ss:$16 sps:$4 sm:$0xff]  }
  0xca   :  { %3443 = vmatpush1.bf16.msra.mxu0 %v5615_v46  ;;  %v5690_v46 = vld [vmem:[#allocation5 + $0x8a4] ss:$16 sps:$4 sm:$0xff]  }
  0xcb   :  { %3484 = vmatpush1.bf16.msra.mxu1 %v5618_v47  ;;  %3444 = vmatprep.subr.bf16.mxu0 %v5623_v51  ;;  %v5693_v47 = vld [vmem:[#allocation5 + $0xaa4] ss:$16 sps:$4 sm:$0xff]   ;;  %v6740_v48 = vpack.c.bf16 %v203_v42, %v203_v42  ;;  %v204_v50 = vcombine.high %v6738_v44, %v6738_v44  ;;  %v5688_v51 = vld [vmem:[#allocation5 + $0x8a0] ss:$16 sps:$4 sm:$0xff]   ;;  %v149_v42 = vld [vmem:[#allocation2 + $0x18] sm:$0xff] }
  0xcc   :  { %3485 = vmatprep.subr.bf16.mxu1 %v5626_v52 }
  0xcd   :  { %v6745_v52 = vpack.c.bf16 %v204_v50, %v204_v50  ;;  %v205_v50 = vcombine.high %v149_v42, %v149_v42 }
  0xce   :  { %3445 = vmatpush1.bf16.msra.mxu0 %v5621_v55  ;;  %v5696_v55 = vld [vmem:[#allocation5 + $0x884] ss:$16 sps:$4 sm:$0xff]  }
  0xcf   :  { %3486 = vmatpush1.bf16.msra.mxu1 %v5624_v56  ;;  %3446 = vmatprep.subr.bf16.mxu0 %v5629_v58  ;;  %v5699_v56 = vld [vmem:[#allocation5 + $0xa84] ss:$16 sps:$4 sm:$0xff]   ;;  %v5694_v58 = vld [vmem:[#allocation5 + $0x880] ss:$16 sps:$4 sm:$0xff]  }
  0xd0   :  { %3487 = vmatprep.subr.bf16.mxu1 %v5632_v59  ;;  %v5697_v59 = vld [vmem:[#allocation5 + $0xa80] ss:$16 sps:$4 sm:$0xff]  }
  0xd2   :  { %3447 = vmatpush2.bf16.msra.mxu0 %v5627_v60  ;;  %v5702_v60 = vld [vmem:[#allocation5 + $0x864] ss:$16 sps:$4 sm:$0xff]  }
  0xd3   :  { %3488 = vmatpush2.bf16.msra.mxu1 %v5630_v61  ;;  %3448 = vmatprep.subr.bf16.mxu0 %v5635_v63  ;;  %v5705_v61 = vld [vmem:[#allocation5 + $0xa64] ss:$16 sps:$4 sm:$0xff]   ;;  %v5700_v63 = vld [vmem:[#allocation5 + $0x860] ss:$16 sps:$4 sm:$0xff]  }
  0xd4   :  { %3489 = vmatprep.subr.bf16.mxu1 %v5638_v0  ;;  %v5703_v0 = vld [vmem:[#allocation5 + $0xa60] ss:$16 sps:$4 sm:$0xff]  }
  0xd6   :  { %3449 = vmatpush2.bf16.msra.mxu0 %v5633_v1  ;;  %v5708_v1 = vld [vmem:[#allocation5 + $0x844] ss:$16 sps:$4 sm:$0xff]  }
  0xd7   :  { %3490 = vmatpush2.bf16.msra.mxu1 %v5636_v2  ;;  %3450 = vmatprep.subr.bf16.mxu0 %v5641_v4  ;;  %v5711_v2 = vld [vmem:[#allocation5 + $0xa44] ss:$16 sps:$4 sm:$0xff]   ;;  %v5706_v4 = vld [vmem:[#allocation5 + $0x840] ss:$16 sps:$4 sm:$0xff]  }
  0xd8   :  { %3491 = vmatprep.subr.bf16.mxu1 %v5644_v5  ;;  %v5709_v5 = vld [vmem:[#allocation5 + $0xa40] ss:$16 sps:$4 sm:$0xff]  }
  0xda   :  { %3451 = vmatpush2.bf16.msra.mxu0 %v5639_v6  ;;  %v5714_v6 = vld [vmem:[#allocation5 + $0x824] ss:$16 sps:$4 sm:$0xff]  }
  0xdb   :  { %3492 = vmatpush2.bf16.msra.mxu1 %v5642_v7  ;;  %3452 = vmatprep.subr.bf16.mxu0 %v5647_v8  ;;  %v5717_v7 = vld [vmem:[#allocation5 + $0xa24] ss:$16 sps:$4 sm:$0xff]   ;;  %v5712_v8 = vld [vmem:[#allocation5 + $0x820] ss:$16 sps:$4 sm:$0xff]  }
  0xdc   :  { %3493 = vmatprep.subr.bf16.mxu1 %v5650_v9  ;;  %v5715_v9 = vld [vmem:[#allocation5 + $0xa20] ss:$16 sps:$4 sm:$0xff]  }
  0xde   :  { %3453 = vmatpush2.bf16.msra.mxu0 %v5645_v10  ;;  %v5720_v10 = vld [vmem:[#allocation5 + $0x804] ss:$16 sps:$4 sm:$0xff]  }
  0xdf   :  { %3494 = vmatpush2.bf16.msra.mxu1 %v5648_v11  ;;  %3454 = vmatprep.subr.bf16.mxu0 %v5653_v12  ;;  %v5723_v11 = vld [vmem:[#allocation5 + $0xa04] ss:$16 sps:$4 sm:$0xff]   ;;  %v5718_v12 = vld [vmem:[#allocation5 + $0x800] ss:$16 sps:$4 sm:$0xff]  }
  0xe0   :  { %3495 = vmatprep.subr.bf16.mxu1 %v5656_v13  ;;  %v5721_v13 = vld [vmem:[#allocation5 + $0xa00] ss:$16 sps:$4 sm:$0xff]  }
  0xe2   :  { %3455 = vmatpush2.bf16.msra.mxu0 %v5651_v14  ;;  %v5726_v14 = vld [vmem:[#allocation5 + $0x9e4] ss:$16 sps:$4 sm:$0xff]  }
  0xe3   :  { %3496 = vmatpush2.bf16.msra.mxu1 %v5654_v15  ;;  %3456 = vmatprep.subr.bf16.mxu0 %v5659_v18  ;;  %v5729_v15 = vld [vmem:[#allocation5 + $0xbe4] ss:$16 sps:$4 sm:$0xff]   ;;  %v5724_v18 = vld [vmem:[#allocation5 + $0x9e0] ss:$16 sps:$4 sm:$0xff]  }
  0xe4   :  { %3497 = vmatprep.subr.bf16.mxu1 %v5662_v19  ;;  %v5727_v19 = vld [vmem:[#allocation5 + $0xbe0] ss:$16 sps:$4 sm:$0xff]  }
  0xe6   :  { %3457 = vmatpush2.bf16.msra.mxu0 %v5657_v20  ;;  %v5732_v20 = vld [vmem:[#allocation5 + $0x9c4] ss:$16 sps:$4 sm:$0xff]  }
  0xe7   :  { %3498 = vmatpush2.bf16.msra.mxu1 %v5660_v21  ;;  %3458 = vmatprep.subr.bf16.mxu0 %v5665_v22  ;;  %v5735_v21 = vld [vmem:[#allocation5 + $0xbc4] ss:$16 sps:$4 sm:$0xff]   ;;  %v5730_v22 = vld [vmem:[#allocation5 + $0x9c0] ss:$16 sps:$4 sm:$0xff]  }
  0xe8   :  { %3499 = vmatprep.subr.bf16.mxu1 %v5668_v23  ;;  %v5733_v23 = vld [vmem:[#allocation5 + $0xbc0] ss:$16 sps:$4 sm:$0xff]  }
  0xea   :  { %3459 = vmatpush2.bf16.msra.mxu0 %v5663_v24  ;;  %v5738_v24 = vld [vmem:[#allocation5 + $0x9a4] ss:$16 sps:$4 sm:$0xff]  }
  0xeb   :  { %3500 = vmatpush2.bf16.msra.mxu1 %v5666_v25  ;;  %3460 = vmatprep.subr.bf16.mxu0 %v5671_v26  ;;  %v5741_v25 = vld [vmem:[#allocation5 + $0xba4] ss:$16 sps:$4 sm:$0xff]   ;;  %v5736_v26 = vld [vmem:[#allocation5 + $0x9a0] ss:$16 sps:$4 sm:$0xff]  }
  0xec   :  { %3501 = vmatprep.subr.bf16.mxu1 %v5674_v27  ;;  %v5739_v27 = vld [vmem:[#allocation5 + $0xba0] ss:$16 sps:$4 sm:$0xff]  }
  0xee   :  { %3461 = vmatpush2.bf16.msra.mxu0 %v5669_v28  ;;  %v5744_v28 = vld [vmem:[#allocation5 + $0x984] ss:$16 sps:$4 sm:$0xff]  }
  0xef   :  { %3502 = vmatpush2.bf16.msra.mxu1 %v5672_v29  ;;  %3512 = vmatprep.subr.bf16.mxu0 %v5678_v30  ;;  %v5747_v29 = vld [vmem:[#allocation5 + $0xb84] ss:$16 sps:$4 sm:$0xff]   ;;  %v5742_v30 = vld [vmem:[#allocation5 + $0x980] ss:$16 sps:$4 sm:$0xff]  }
  0xf0   :  { %3553 = vmatprep.subr.bf16.mxu1 %v5681_v31  ;;  %v5745_v31 = vld [vmem:[#allocation5 + $0xb80] ss:$16 sps:$4 sm:$0xff]  }
  0xf1   :  { %3463 = vmatmul.mubr.bf16.vlgmr.msra.gmra.mxu0 %v6724_v32 }
  0xf2   :  { %3504 = vmatmul.mubr.bf16.vlgmr.msra.gmra.mxu1 %v6728_v33  ;;  %3513 = vmatpush1.bf16.msra.mxu0 %v5676_v34  ;;  %v5750_v34 = vld [vmem:[#allocation5 + $0x964] ss:$16 sps:$4 sm:$0xff]  }
  0xf3   :  { %3554 = vmatpush1.bf16.msra.mxu1 %v5679_v35  ;;  %3514 = vmatprep.subr.bf16.mxu0 %v5684_v36  ;;  %v5753_v35 = vld [vmem:[#allocation5 + $0xb64] ss:$16 sps:$4 sm:$0xff]   ;;  %v5748_v36 = vld [vmem:[#allocation5 + $0x960] ss:$16 sps:$4 sm:$0xff]  }
  0xf4   :  { %3555 = vmatprep.subr.bf16.mxu1 %v5687_v38  ;;  %3544 = vmatprep.mubr.bf16.mxu0 %v6740_v48  ;;  %v5756_v38 = vld [vmem:[#allocation5 + $0x944] ss:$16 sps:$4 sm:$0xff]  }
  0xf5   :  { %3585 = vmatprep.mubr.bf16.mxu1 %v6745_v52 }
  0xf6   :  { %3515 = vmatpush1.bf16.msra.mxu0 %v5682_v41  ;;  %v5754_v41 = vld [vmem:[#allocation5 + $0x940] ss:$16 sps:$4 sm:$0xff]  }
  0xf7   :  { %3556 = vmatpush1.bf16.msra.mxu1 %v5685_v45  ;;  %3516 = vmatprep.subr.bf16.mxu0 %v5690_v46  ;;  %v5757_v45 = vld [vmem:[#allocation5 + $0xb40] ss:$16 sps:$4 sm:$0xff]   ;;  %v5762_v46 = vld [vmem:[#allocation5 + $0x924] ss:$16 sps:$4 sm:$0xff]  }
  0xf8   :  { %3557 = vmatprep.subr.bf16.mxu1 %v5693_v47  ;;  %v5765_v47 = vld [vmem:[#allocation5 + $0xb24] ss:$16 sps:$4 sm:$0xff]  }
  0xfa   :  { %3517 = vmatpush1.bf16.msra.mxu0 %v5688_v51  ;;  %v5760_v51 = vld [vmem:[#allocation5 + $0x920] ss:$16 sps:$4 sm:$0xff]  }
  0xfb   :  { %3558 = vmatpush1.bf16.msra.mxu1 %v5691_v54  ;;  %3518 = vmatprep.subr.bf16.mxu0 %v5696_v55  ;;  %v5763_v54 = vld [vmem:[#allocation5 + $0xb20] ss:$16 sps:$4 sm:$0xff]   ;;  %v5768_v55 = vld [vmem:[#allocation5 + $0x904] ss:$16 sps:$4 sm:$0xff]  }
  0xfc   :  { %3559 = vmatprep.subr.bf16.mxu1 %v5699_v56  ;;  %v5771_v56 = vld [vmem:[#allocation5 + $0xb04] ss:$16 sps:$4 sm:$0xff]  }
  0xfe   :  { %3519 = vmatpush1.bf16.msra.mxu0 %v5694_v58  ;;  %v6749_v58 = vrot.slane %v149_v42, %v6690_v49  ;;  %v5821_v42 = vld [vmem:[#allocation5 + $0xde0] ss:$16 sps:$4 sm:$0xff]  }
  0xff   :  { %3560 = vmatpush1.bf16.msra.mxu1 %v5697_v59  ;;  %3520 = vmatprep.subr.bf16.mxu0 %v5702_v60  ;;  %v6752_v59 = vrot.slane %v205_v50, %v6690_v49  ;;  %v5766_v60 = vld [vmem:[#allocation5 + $0x900] ss:$16 sps:$4 sm:$0xff]   ;;  %v6764_v49 = vpack.c.bf16 %v6738_v44, %v6738_v44 }
 0x100   :  { %3561 = vmatprep.subr.bf16.mxu1 %v5705_v61  ;;  %v5769_v61 = vld [vmem:[#allocation5 + $0xb00] ss:$16 sps:$4 sm:$0xff]  }
 0x101   :  { %v5782_v44 = vld [vmem:[#allocation5 + $0xec0] ss:$16 sps:$4 sm:$0xff]  }
 0x102   :  { %3521 = vmatpush1.bf16.msra.mxu0 %v5700_v63  ;;  %v5775_v63 = vld [vmem:[#allocation5 + $0xce4] ss:$16 sps:$4 sm:$0xff]   ;;  %v5827_v50 = vld [vmem:[#allocation5 + $0xdc0] ss:$16 sps:$4 sm:$0xff]  }
 0x103   :  { %3562 = vmatpush1.bf16.msra.mxu1 %v5703_v0  ;;  %3522 = vmatprep.subr.bf16.mxu0 %v5708_v1  ;;  %v5778_v0 = vld [vmem:[#allocation5 + $0xee4] ss:$16 sps:$4 sm:$0xff]   ;;  %v220_v1 = vcombine.high %v6749_v58, %v6749_v58 }
 0x104   :  { %3563 = vmatprep.subr.bf16.mxu1 %v5711_v2  ;;  %v221_v2 = vcombine.high %v6752_v59, %v6752_v59 }
 0x106   :  { %3523 = vmatpush1.bf16.msra.mxu0 %v5706_v4  ;;  %v6760_v4 = vpack.c.bf16 %v6731_v39, %v6731_v39  ;;  %v5779_v39 = vld [vmem:[#allocation5 + $0xcc0] ss:$16 sps:$4 sm:$0xff]  }
 0x107   :  { %3564 = vmatpush1.bf16.msra.mxu1 %v5709_v5  ;;  %3524 = vmatprep.subr.bf16.mxu0 %v5714_v6  ;;  %v5773_v5 = vld [vmem:[#allocation5 + $0xce0] ss:$16 sps:$4 sm:$0xff]  }
 0x108   :  { %3565 = vmatprep.subr.bf16.mxu1 %v5717_v7  ;;  %v5776_v6 = vld [vmem:[#allocation5 + $0xee0] ss:$16 sps:$4 sm:$0xff]   ;;  %v5781_v7 = vld [vmem:[#allocation5 + $0xcc4] ss:$16 sps:$4 sm:$0xff]  }
 0x10a   :  { %3525 = vmatpush1.bf16.msra.mxu0 %v5712_v8  ;;  %v5784_v8 = vld [vmem:[#allocation5 + $0xec4] ss:$16 sps:$4 sm:$0xff]  }
 0x10b   :  { %3566 = vmatpush1.bf16.msra.mxu1 %v5715_v9  ;;  %3526 = vmatprep.subr.bf16.mxu0 %v5720_v10  ;;  %v6766_v9 = vpack.c.bf16 %v220_v1, %v220_v1  ;;  %v6768_v10 = vpack.c.bf16 %v221_v2, %v221_v2  ;;  %v5842_v1 = vld [vmem:[#allocation5 + $0xf80] ss:$16 sps:$4 sm:$0xff]   ;;  %v5847_v2 = vld [vmem:[#allocation5 + $0xd64] ss:$16 sps:$4 sm:$0xff]  }
 0x10c   :  { %3567 = vmatprep.subr.bf16.mxu1 %v5723_v11  ;;  %v5787_v11 = vld [vmem:[#allocation5 + $0xca4] ss:$16 sps:$4 sm:$0xff]  }
 0x10e   :  { %3527 = vmatpush1.bf16.msra.mxu0 %v5718_v12  ;;  %v5790_v12 = vld [vmem:[#allocation5 + $0xea4] ss:$16 sps:$4 sm:$0xff]  }
 0x10f   :  { %3568 = vmatpush1.bf16.msra.mxu1 %v5721_v13  ;;  %3528 = vmatprep.subr.bf16.mxu0 %v5726_v14  ;;  %v5785_v13 = vld [vmem:[#allocation5 + $0xca0] ss:$16 sps:$4 sm:$0xff]  }
 0x110   :  { %3569 = vmatprep.subr.bf16.mxu1 %v5729_v15  ;;  %v5788_v14 = vld [vmem:[#allocation5 + $0xea0] ss:$16 sps:$4 sm:$0xff]   ;;  %v5793_v15 = vld [vmem:[#allocation5 + $0xc84] ss:$16 sps:$4 sm:$0xff]  }
 0x112   :  { %3529 = vmatpush2.bf16.msra.mxu0 %v5724_v18  ;;  %v5796_v18 = vld [vmem:[#allocation5 + $0xe84] ss:$16 sps:$4 sm:$0xff]  }
 0x113   :  { %3570 = vmatpush2.bf16.msra.mxu1 %v5727_v19  ;;  %3530 = vmatprep.subr.bf16.mxu0 %v5732_v20  ;;  %v5791_v19 = vld [vmem:[#allocation5 + $0xc80] ss:$16 sps:$4 sm:$0xff]  }
 0x114   :  { %3571 = vmatprep.subr.bf16.mxu1 %v5735_v21  ;;  %v5794_v20 = vld [vmem:[#allocation5 + $0xe80] ss:$16 sps:$4 sm:$0xff]   ;;  %v5799_v21 = vld [vmem:[#allocation5 + $0xc64] ss:$16 sps:$4 sm:$0xff]  }
 0x116   :  { %3531 = vmatpush2.bf16.msra.mxu0 %v5730_v22  ;;  %v5802_v22 = vld [vmem:[#allocation5 + $0xe64] ss:$16 sps:$4 sm:$0xff]  }
 0x117   :  { %3572 = vmatpush2.bf16.msra.mxu1 %v5733_v23  ;;  %3532 = vmatprep.subr.bf16.mxu0 %v5738_v24  ;;  %v5797_v23 = vld [vmem:[#allocation5 + $0xc60] ss:$16 sps:$4 sm:$0xff]  }
 0x118   :  { %3573 = vmatprep.subr.bf16.mxu1 %v5741_v25  ;;  %v5800_v24 = vld [vmem:[#allocation5 + $0xe60] ss:$16 sps:$4 sm:$0xff]   ;;  %v5805_v25 = vld [vmem:[#allocation5 + $0xc44] ss:$16 sps:$4 sm:$0xff]  }
 0x11a   :  { %3533 = vmatpush2.bf16.msra.mxu0 %v5736_v26  ;;  %v5808_v26 = vld [vmem:[#allocation5 + $0xe44] ss:$16 sps:$4 sm:$0xff]  }
 0x11b   :  { %3574 = vmatpush2.bf16.msra.mxu1 %v5739_v27  ;;  %3534 = vmatprep.subr.bf16.mxu0 %v5744_v28  ;;  %v5803_v27 = vld [vmem:[#allocation5 + $0xc40] ss:$16 sps:$4 sm:$0xff]  }
 0x11c   :  { %3575 = vmatprep.subr.bf16.mxu1 %v5747_v29  ;;  %v5806_v28 = vld [vmem:[#allocation5 + $0xe40] ss:$16 sps:$4 sm:$0xff]   ;;  %v5811_v29 = vld [vmem:[#allocation5 + $0xc24] ss:$16 sps:$4 sm:$0xff]  }
 0x11e   :  { %3535 = vmatpush2.bf16.msra.mxu0 %v5742_v30  ;;  %v5814_v30 = vld [vmem:[#allocation5 + $0xe24] ss:$16 sps:$4 sm:$0xff]  }
 0x11f   :  { %3576 = vmatpush2.bf16.msra.mxu1 %v5745_v31  ;;  %3536 = vmatprep.subr.bf16.mxu0 %v5750_v34  ;;  %v5809_v31 = vld [vmem:[#allocation5 + $0xc20] ss:$16 sps:$4 sm:$0xff]  }
 0x120   :  { %3577 = vmatprep.subr.bf16.mxu1 %v5753_v35  ;;  %v5812_v34 = vld [vmem:[#allocation5 + $0xe20] ss:$16 sps:$4 sm:$0xff]   ;;  %v5817_v35 = vld [vmem:[#allocation5 + $0xc04] ss:$16 sps:$4 sm:$0xff]  }
 0x122   :  { %3537 = vmatpush2.bf16.msra.mxu0 %v5748_v36  ;;  %v5820_v36 = vld [vmem:[#allocation5 + $0xe04] ss:$16 sps:$4 sm:$0xff]  }
 0x123   :  { %3578 = vmatpush2.bf16.msra.mxu1 %v5751_v37  ;;  %3538 = vmatprep.subr.bf16.mxu0 %v5756_v38  ;;  %v5815_v37 = vld [vmem:[#allocation5 + $0xc00] ss:$16 sps:$4 sm:$0xff]  }
 0x124   :  { %3579 = vmatprep.subr.bf16.mxu1 %v5759_v40  ;;  %v5818_v38 = vld [vmem:[#allocation5 + $0xe00] ss:$16 sps:$4 sm:$0xff]   ;;  %v5823_v40 = vld [vmem:[#allocation5 + $0xde4] ss:$16 sps:$4 sm:$0xff]  }
 0x126   :  { %3539 = vmatpush2.bf16.msra.mxu0 %v5754_v41  ;;  %v5826_v41 = vld [vmem:[#allocation5 + $0xfe4] ss:$16 sps:$4 sm:$0xff]  }
 0x127   :  { %3580 = vmatpush2.bf16.msra.mxu1 %v5757_v45  ;;  %3540 = vmatprep.subr.bf16.mxu0 %v5762_v46  ;;  %v5824_v45 = vld [vmem:[#allocation5 + $0xfe0] ss:$16 sps:$4 sm:$0xff]   ;;  %v5829_v46 = vld [vmem:[#allocation5 + $0xdc4] ss:$16 sps:$4 sm:$0xff]  }
 0x128   :  { %3581 = vmatprep.subr.bf16.mxu1 %v5765_v47  ;;  %v5832_v47 = vld [vmem:[#allocation5 + $0xfc4] ss:$16 sps:$4 sm:$0xff]  }
 0x12a   :  { %3541 = vmatpush2.bf16.msra.mxu0 %v5760_v51  ;;  %v5830_v51 = vld [vmem:[#allocation5 + $0xfc0] ss:$16 sps:$4 sm:$0xff]  }
 0x12b   :  { %3582 = vmatpush2.bf16.msra.mxu1 %v5763_v54  ;;  %3542 = vmatprep.subr.bf16.mxu0 %v5768_v55  ;;  %v5835_v54 = vld [vmem:[#allocation5 + $0xda4] ss:$16 sps:$4 sm:$0xff]  }
 0x12c   :  { %3583 = vmatprep.subr.bf16.mxu1 %v5771_v56  ;;  %v5838_v55 = vld [vmem:[#allocation5 + $0xfa4] ss:$16 sps:$4 sm:$0xff]   ;;  %v5833_v56 = vld [vmem:[#allocation5 + $0xda0] ss:$16 sps:$4 sm:$0xff]  }
 0x12e   :  { %3543 = vmatpush2.bf16.msra.mxu0 %v5766_v60  ;;  %v5836_v60 = vld [vmem:[#allocation5 + $0xfa0] ss:$16 sps:$4 sm:$0xff]  }
 0x12f   :  { %3584 = vmatpush2.bf16.msra.mxu1 %v5769_v61  ;;  %3594 = vmatprep.subr.bf16.mxu0 %v5775_v63  ;;  %v5841_v61 = vld [vmem:[#allocation5 + $0xd84] ss:$16 sps:$4 sm:$0xff]  }
 0x130   :  { %3635 = vmatprep.subr.bf16.mxu1 %v5778_v0  ;;  %v5844_v63 = vld [vmem:[#allocation5 + $0xf84] ss:$16 sps:$4 sm:$0xff]   ;;  %v5839_v0 = vld [vmem:[#allocation5 + $0xd80] ss:$16 sps:$4 sm:$0xff]  }
 0x131   :  { %3545 = vmatmul.mubr.bf16.vlgmr.msra.gmra.mxu0 %v6760_v4 }
 0x132   :  { %3586 = vmatmul.mubr.bf16.vlgmr.msra.gmra.mxu1 %v6764_v49  ;;  %3595 = vmatpush1.bf16.msra.mxu0 %v5773_v5  ;;  %v5850_v5 = vld [vmem:[#allocation5 + $0xf64] ss:$16 sps:$4 sm:$0xff]  }
 0x133   :  { %3636 = vmatpush1.bf16.msra.mxu1 %v5776_v6  ;;  %3596 = vmatprep.subr.bf16.mxu0 %v5781_v7  ;;  %v5845_v6 = vld [vmem:[#allocation5 + $0xd60] ss:$16 sps:$4 sm:$0xff]  }
 0x134   :  { %3637 = vmatprep.subr.bf16.mxu1 %v5784_v8  ;;  %3626 = vmatprep.mubr.bf16.mxu0 %v6766_v9  ;;  %v5848_v7 = vld [vmem:[#allocation5 + $0xf60] ss:$16 sps:$4 sm:$0xff]   ;;  %v5853_v8 = vld [vmem:[#allocation5 + $0xd44] ss:$16 sps:$4 sm:$0xff]  }
 0x135   :  { %3667 = vmatprep.mubr.bf16.mxu1 %v6768_v10 }
 0x136   :  { %3597 = vmatpush1.bf16.msra.mxu0 %v5779_v39  ;;  %v5856_v39 = vld [vmem:[#allocation5 + $0xf44] ss:$16 sps:$4 sm:$0xff]  }
 0x137   :  { %3638 = vmatpush1.bf16.msra.mxu1 %v5782_v44  ;;  %3598 = vmatprep.subr.bf16.mxu0 %v5787_v11  ;;  %v5851_v44 = vld [vmem:[#allocation5 + $0xd40] ss:$16 sps:$4 sm:$0xff]  }
 0x138   :  { %3639 = vmatprep.subr.bf16.mxu1 %v5790_v12  ;;  %v5854_v11 = vld [vmem:[#allocation5 + $0xf40] ss:$16 sps:$4 sm:$0xff]   ;;  %v5859_v12 = vld [vmem:[#allocation5 + $0xd24] ss:$16 sps:$4 sm:$0xff]  }
 0x13a   :  { %3599 = vmatpush1.bf16.msra.mxu0 %v5785_v13  ;;  %v5862_v13 = vld [vmem:[#allocation5 + $0xf24] ss:$16 sps:$4 sm:$0xff]  }
 0x13b   :  { %3640 = vmatpush1.bf16.msra.mxu1 %v5788_v14  ;;  %3600 = vmatprep.subr.bf16.mxu0 %v5793_v15  ;;  %v5857_v14 = vld [vmem:[#allocation5 + $0xd20] ss:$16 sps:$4 sm:$0xff]  }
 0x13c   :  { %3641 = vmatprep.subr.bf16.mxu1 %v5796_v18  ;;  %v5860_v15 = vld [vmem:[#allocation5 + $0xf20] ss:$16 sps:$4 sm:$0xff]   ;;  %v5865_v18 = vld [vmem:[#allocation5 + $0xd04] ss:$16 sps:$4 sm:$0xff]  }
 0x13e   :  { %3601 = vmatpush1.bf16.msra.mxu0 %v5791_v19  ;;  %v5868_v19 = vld [vmem:[#allocation5 + $0xf04] ss:$16 sps:$4 sm:$0xff]  }
 0x13f   :  { %3642 = vmatpush1.bf16.msra.mxu1 %v5794_v20  ;;  %3602 = vmatprep.subr.bf16.mxu0 %v5799_v21  ;;  %v5863_v20 = vld [vmem:[#allocation5 + $0xd00] ss:$16 sps:$4 sm:$0xff]  }
 0x140   :  { %3643 = vmatprep.subr.bf16.mxu1 %v5802_v22  ;;  %v5866_v21 = vld [vmem:[#allocation5 + $0xf00] ss:$16 sps:$4 sm:$0xff]  }
 0x141   :  { %v766_v22 = vld [vmem:[#allocation7] sm:$0xf] }
 0x142   :  { %3603 = vmatpush1.bf16.msra.mxu0 %v5797_v23  ;;  %v770_v23 = vsub.s32 0, %v6687_v43 }
 0x143   :  { %3644 = vmatpush1.bf16.msra.mxu1 %v5800_v24  ;;  %3604 = vmatprep.subr.bf16.mxu0 %v5805_v25  ;;  %v5872_v24 = vld [vmem:[#allocation5 + $0xec] ss:$16 sps:$4 sm:$0xff]  }
 0x144   :  { %3645 = vmatprep.subr.bf16.mxu1 %v5808_v26  ;;  %v5875_v25 = vld [vmem:[#allocation5 + $0x2ec] ss:$16 sps:$4 sm:$0xff]   ;;  %v774_v26 = vsub.s32 1, %v6687_v43 }
 0x146   :  { %3605 = vmatpush1.bf16.msra.mxu0 %v5803_v27  ;;  %v6778_v27 = vpack.c.bf16 %v6749_v58, %v6749_v58  ;;  %v5876_v58 = vld [vmem:[#allocation5 + $0xc8] ss:$16 sps:$4 sm:$0xff]  }
 0x147   :  { %3646 = vmatpush1.bf16.msra.mxu1 %v5806_v28  ;;  %3606 = vmatprep.subr.bf16.mxu0 %v5811_v29  ;;  %v6782_v28 = vpack.c.bf16 %v6752_v59, %v6752_v59  ;;  %v5870_v29 = vld [vmem:[#allocation5 + $0xe8] ss:$16 sps:$4 sm:$0xff]  }
 0x148   :  { %3647 = vmatprep.subr.bf16.mxu1 %v5814_v30  ;;  %v771_v30 = vrot.slane %v766_v22, %v770_v23  ;;  %v5879_v59 = vld [vmem:[#allocation5 + $0x2c8] ss:$16 sps:$4 sm:$0xff]  }
 0x14a   :  { %3607 = vmatpush1.bf16.msra.mxu0 %v5809_v31  ;;  %v5873_v31 = vld [vmem:[#allocation5 + $0x2e8] ss:$16 sps:$4 sm:$0xff]  }
 0x14b   :  { %3648 = vmatpush1.bf16.msra.mxu1 %v5812_v34  ;;  %3608 = vmatprep.subr.bf16.mxu0 %v5817_v35  ;;  %v5878_v34 = vld [vmem:[#allocation5 + $0xcc] ss:$16 sps:$4 sm:$0xff]  }
 0x14c   :  { %3649 = vmatprep.subr.bf16.mxu1 %v5820_v36  ;;  %v5881_v35 = vld [vmem:[#allocation5 + $0x2cc] ss:$16 sps:$4 sm:$0xff]   ;;  %v775_v36 = vrot.slane %v766_v22, %v774_v26 }
 0x14d   :  { %v5920_v22 = vld [vmem:[#allocation5 + $0x1ec] ss:$16 sps:$4 sm:$0xff]  }
 0x14e   :  { %3609 = vmatpush1.bf16.msra.mxu0 %v5815_v37 }
 0x14f   :  { %3650 = vmatpush1.bf16.msra.mxu1 %v5818_v38  ;;  %3610 = vmatprep.subr.bf16.mxu0 %v5823_v40 }
 0x150   :  { %3651 = vmatprep.subr.bf16.mxu1 %v5826_v41  ;;  %v5884_v41 = vld [vmem:[#allocation5 + $0xac] ss:$16 sps:$4 sm:$0xff]  }
 0x152   :  { %3611 = vmatpush2.bf16.msra.mxu0 %v5821_v42 }
 0x153   :  { %3652 = vmatpush2.bf16.msra.mxu1 %v5824_v45  ;;  %3612 = vmatprep.subr.bf16.mxu0 %v5829_v46  ;;  %v5887_v46 = vld [vmem:[#allocation5 + $0x2ac] ss:$16 sps:$4 sm:$0xff]  }
 0x154   :  { %3653 = vmatprep.subr.bf16.mxu1 %v5832_v47 }
 0x156   :  { %3613 = vmatpush2.bf16.msra.mxu0 %v5827_v50 }
 0x157   :  { %3654 = vmatpush2.bf16.msra.mxu1 %v5830_v51  ;;  %3614 = vmatprep.subr.bf16.mxu0 %v5835_v54  ;;  %v5882_v51 = vld [vmem:[#allocation5 + $0xa8] ss:$16 sps:$4 sm:$0xff]  }
 0x158   :  { %3655 = vmatprep.subr.bf16.mxu1 %v5838_v55  ;;  %v5885_v54 = vld [vmem:[#allocation5 + $0x2a8] ss:$16 sps:$4 sm:$0xff]  }
 0x15a   :  { %3615 = vmatpush2.bf16.msra.mxu0 %v5833_v56 }
 0x15b   :  { %3656 = vmatpush2.bf16.msra.mxu1 %v5836_v60  ;;  %3616 = vmatprep.subr.bf16.mxu0 %v5841_v61 }
 0x15c   :  { %3657 = vmatprep.subr.bf16.mxu1 %v5844_v63 }
 0x15e   :  { %3617 = vmatpush2.bf16.msra.mxu0 %v5839_v0  ;;  %v5890_v0 = vld [vmem:[#allocation5 + $0x8c] ss:$16 sps:$4 sm:$0xff]  }
 0x15f   :  { %3658 = vmatpush2.bf16.msra.mxu1 %v5842_v1  ;;  %3618 = vmatprep.subr.bf16.mxu0 %v5847_v2  ;;  %v5893_v1 = vld [vmem:[#allocation5 + $0x28c] ss:$16 sps:$4 sm:$0xff]   ;;  %v5888_v2 = vld [vmem:[#allocation5 + $0x88] ss:$16 sps:$4 sm:$0xff]  }
 0x160   :  { %3659 = vmatprep.subr.bf16.mxu1 %v5850_v5  ;;  %v5891_v5 = vld [vmem:[#allocation5 + $0x288] ss:$16 sps:$4 sm:$0xff]  }
 0x162   :  { %3619 = vmatpush2.bf16.msra.mxu0 %v5845_v6  ;;  %v5894_v6 = vld [vmem:[#allocation5 + $0x68] ss:$16 sps:$4 sm:$0xff]  }
 0x163   :  { %3660 = vmatpush2.bf16.msra.mxu1 %v5848_v7  ;;  %3620 = vmatprep.subr.bf16.mxu0 %v5853_v8  ;;  %v5897_v7 = vld [vmem:[#allocation5 + $0x268] ss:$16 sps:$4 sm:$0xff]   ;;  %v5902_v8 = vld [vmem:[#allocation5 + $0x4c] ss:$16 sps:$4 sm:$0xff]  }
 0x164   :  { %3661 = vmatprep.subr.bf16.mxu1 %v5856_v39  ;;  %v5905_v39 = vld [vmem:[#allocation5 + $0x24c] ss:$16 sps:$4 sm:$0xff]  }
 0x166   :  { %3621 = vmatpush2.bf16.msra.mxu0 %v5851_v44  ;;  %v5900_v44 = vld [vmem:[#allocation5 + $0x48] ss:$16 sps:$4 sm:$0xff]  }
 0x167   :  { %3662 = vmatpush2.bf16.msra.mxu1 %v5854_v11  ;;  %3622 = vmatprep.subr.bf16.mxu0 %v5859_v12  ;;  %v5903_v11 = vld [vmem:[#allocation5 + $0x248] ss:$16 sps:$4 sm:$0xff]   ;;  %v5908_v12 = vld [vmem:[#allocation5 + $0x2c] ss:$16 sps:$4 sm:$0xff]  }
 0x168   :  { %3663 = vmatprep.subr.bf16.mxu1 %v5862_v13  ;;  %v5911_v13 = vld [vmem:[#allocation5 + $0x22c] ss:$16 sps:$4 sm:$0xff]  }
 0x16a   :  { %3623 = vmatpush2.bf16.msra.mxu0 %v5857_v14  ;;  %v5906_v14 = vld [vmem:[#allocation5 + $0x28] ss:$16 sps:$4 sm:$0xff]  }
 0x16b   :  { %3664 = vmatpush2.bf16.msra.mxu1 %v5860_v15  ;;  %3624 = vmatprep.subr.bf16.mxu0 %v5865_v18  ;;  %v5909_v15 = vld [vmem:[#allocation5 + $0x228] ss:$16 sps:$4 sm:$0xff]   ;;  %v5914_v18 = vld [vmem:[#allocation5 + $0xc] ss:$16 sps:$4 sm:$0xff]  }
 0x16c   :  { %3665 = vmatprep.subr.bf16.mxu1 %v5868_v19  ;;  %v5917_v19 = vld [vmem:[#allocation5 + $0x20c] ss:$16 sps:$4 sm:$0xff]  }
 0x16e   :  { %3625 = vmatpush2.bf16.msra.mxu0 %v5863_v20  ;;  %v5912_v20 = vld [vmem:[#allocation5 + $0x8] ss:$16 sps:$4 sm:$0xff]  }
 0x16f   :  { %3666 = vmatpush2.bf16.msra.mxu1 %v5866_v21  ;;  %3676 = vmatprep.subr.bf16.mxu0 %v5872_v24  ;;  %v5915_v21 = vld [vmem:[#allocation5 + $0x208] ss:$16 sps:$4 sm:$0xff]   ;;  %v5923_v24 = vld [vmem:[#allocation5 + $0x3ec] ss:$16 sps:$4 sm:$0xff]  }
 0x170   :  { %3717 = vmatprep.subr.bf16.mxu1 %v5875_v25  ;;  %v5918_v25 = vld [vmem:[#allocation5 + $0x1e8] ss:$16 sps:$4 sm:$0xff]  }
 0x171   :  { %v3382_v37 = vpop.f32.mrf.mxu0  ;;  %3627 = vmatmul.mubr.bf16.vlgmr.msra.gmra.mxu0 %v6778_v27 }
 0x172   :  { %v3423_v38 = vpop.f32.mrf.mxu1  ;;  %3668 = vmatmul.mubr.bf16.vlgmr.msra.gmra.mxu1 %v6782_v28  ;;  %v3383_v40 = vadd.f32 %v3382_v37, %v771_v30  ;;  %3677 = vmatpush1.bf16.msra.mxu0 %v5870_v29  ;;  %v5921_v29 = vld [vmem:[#allocation5 + $0x3e8] ss:$16 sps:$4 sm:$0xff]   ;;  %v5926_v30 = vld [vmem:[#allocation5 + $0x1cc] ss:$16 sps:$4 sm:$0xff]  }
 0x173   :  { %3718 = vmatpush1.bf16.msra.mxu1 %v5873_v31  ;;  %v3384_v42 = vpop.f32.mrf.mxu0  ;;  %3678 = vmatprep.subr.bf16.mxu0 %v5878_v34  ;;  %v5929_v31 = vld [vmem:[#allocation5 + $0x3cc] ss:$16 sps:$4 sm:$0xff]   ;;  %v5924_v34 = vld [vmem:[#allocation5 + $0x1c8] ss:$16 sps:$4 sm:$0xff]  }
 0x174   :  { %v3425_v45 = vpop.f32.mrf.mxu1  ;;  %3719 = vmatprep.subr.bf16.mxu1 %v5881_v35  ;;  %v6790_v47 = vadd.f32 %v3423_v38, %v3383_v40  ;;  %v3385_v50 = vadd.f32 %v3384_v42, %v775_v36  ;;  %3708 = vmatprep.mubr.bf16.mxu0 %v6694_v62  ;;  %v5896_v62 = vld [vmem:[#allocation5 + $0x6c] ss:$16 sps:$4 sm:$0xff]   ;;  %v5927_v35 = vld [vmem:[#allocation5 + $0x3c8] ss:$16 sps:$4 sm:$0xff]  }
 0x175   :  { %3749 = vmatprep.mubr.bf16.mxu1 %v6696_v3  ;;  %v3386_v55 = vpop.f32.mrf.mxu0  ;;  %v5899_v3 = vld [vmem:[#allocation5 + $0x26c] ss:$16 sps:$4 sm:$0xff]   ;;  %v5930_v37 = vld [vmem:[#allocation5 + $0x1a8] ss:$16 sps:$4 sm:$0xff]  }
 0x176   :  { %v3427_v56 = vpop.f32.mrf.mxu1  ;;  %v6794_v60 = vadd.f32 %v3425_v45, %v3385_v50  ;;  %3679 = vmatpush1.bf16.msra.mxu0 %v5876_v58  ;;  %v5932_v36 = vld [vmem:[#allocation5 + $0x1ac] ss:$16 sps:$4 sm:$0xff]   ;;  %v5933_v38 = vld [vmem:[#allocation5 + $0x3a8] ss:$16 sps:$4 sm:$0xff]  }
 0x177   :  { %3720 = vmatpush1.bf16.msra.mxu1 %v5879_v59  ;;  %v3387_v61 = vpop.f32.mrf.mxu0  ;;  %3680 = vmatprep.subr.bf16.mxu0 %v5884_v41  ;;  %v5935_v58 = vld [vmem:[#allocation5 + $0x3ac] ss:$16 sps:$4 sm:$0xff]   ;;  %v5936_v41 = vld [vmem:[#allocation5 + $0x188] ss:$16 sps:$4 sm:$0xff]  }
 0x178   :  { %v3428_v63 = vpop.f32.mrf.mxu1  ;;  %3721 = vmatprep.subr.bf16.mxu1 %v5887_v46  ;;  %v5938_v59 = vld [vmem:[#allocation5 + $0x18c] ss:$16 sps:$4 sm:$0xff]   ;;  %v5939_v42 = vld [vmem:[#allocation5 + $0x388] ss:$16 sps:$4 sm:$0xff]  }
 0x179   :  { %v5941_v40 = vld [vmem:[#allocation5 + $0x38c] ss:$16 sps:$4 sm:$0xff]   ;;  %v5942_v50 = vld [vmem:[#allocation5 + $0x168] ss:$16 sps:$4 sm:$0xff]  }
 0x17a   :  { %3681 = vmatpush1.bf16.msra.mxu0 %v5882_v51  ;;  %v5944_v45 = vld [vmem:[#allocation5 + $0x16c] ss:$16 sps:$4 sm:$0xff]   ;;  %v5945_v51 = vld [vmem:[#allocation5 + $0x368] ss:$16 sps:$4 sm:$0xff]  }
 0x17b   :  { %3722 = vmatpush1.bf16.msra.mxu1 %v5885_v54  ;;  %3682 = vmatprep.subr.bf16.mxu0 %v5890_v0  ;;  %v5947_v46 = vld [vmem:[#allocation5 + $0x36c] ss:$16 sps:$4 sm:$0xff]   ;;  %v5948_v56 = vld [vmem:[#allocation5 + $0x148] ss:$16 sps:$4 sm:$0xff]  }
 0x17c   :  { %3723 = vmatprep.subr.bf16.mxu1 %v5893_v1  ;;  %v5950_v54 = vld [vmem:[#allocation5 + $0x14c] ss:$16 sps:$4 sm:$0xff]   ;;  %v5951_v61 = vld [vmem:[#allocation5 + $0x348] ss:$16 sps:$4 sm:$0xff]  }
 0x17d   :  { %v5953_v55 = vld [vmem:[#allocation5 + $0x34c] ss:$16 sps:$4 sm:$0xff]   ;;  %v5954_v1 = vld [vmem:[#allocation5 + $0x128] ss:$16 sps:$4 sm:$0xff]  }
 0x17e   :  { %3683 = vmatpush1.bf16.msra.mxu0 %v5888_v2  ;;  %v5956_v63 = vld [vmem:[#allocation5 + $0x12c] ss:$16 sps:$4 sm:$0xff]   ;;  %v5957_v2 = vld [vmem:[#allocation5 + $0x328] ss:$16 sps:$4 sm:$0xff]  }
 0x17f   :  { %3724 = vmatpush1.bf16.msra.mxu1 %v5891_v5  ;;  %3684 = vmatprep.subr.bf16.mxu0 %v5896_v62  ;;  %v5959_v0 = vld [vmem:[#allocation5 + $0x32c] ss:$16 sps:$4 sm:$0xff]  }
 0x180   :  { %3725 = vmatprep.subr.bf16.mxu1 %v5899_v3  ;;  %v5962_v5 = vld [vmem:[#allocation5 + $0x10c] ss:$16 sps:$4 sm:$0xff]   ;;  %v5960_v3 = vld [vmem:[#allocation5 + $0x108] ss:$16 sps:$4 sm:$0xff]  }
 0x181   :  { %v5965_v62 = vld [vmem:[#allocation5 + $0x30c] ss:$16 sps:$4 sm:$0xff]  }
 0x182   :  { %3685 = vmatpush1.bf16.msra.mxu0 %v5894_v6  ;;  %v5963_v6 = vld [vmem:[#allocation5 + $0x308] ss:$16 sps:$4 sm:$0xff]  }
 0x183   :  { %3726 = vmatpush1.bf16.msra.mxu1 %v5897_v7  ;;  %3686 = vmatprep.subr.bf16.mxu0 %v5902_v8  ;;  %v5968_v7 = vld [vmem:[#allocation5 + $0x4ec] ss:$16 sps:$4 sm:$0xff]  }
 0x184   :  { %3727 = vmatprep.subr.bf16.mxu1 %v5905_v39  ;;  %v5971_v8 = vld [vmem:[#allocation5 + $0x6ec] ss:$16 sps:$4 sm:$0xff]   ;;  %v5966_v39 = vld [vmem:[#allocation5 + $0x4e8] ss:$16 sps:$4 sm:$0xff]  }
 0x186   :  { %3687 = vmatpush1.bf16.msra.mxu0 %v5900_v44  ;;  %v5969_v44 = vld [vmem:[#allocation5 + $0x6e8] ss:$16 sps:$4 sm:$0xff]  }
 0x187   :  { %3728 = vmatpush1.bf16.msra.mxu1 %v5903_v11  ;;  %3688 = vmatprep.subr.bf16.mxu0 %v5908_v12  ;;  %v5974_v11 = vld [vmem:[#allocation5 + $0x4cc] ss:$16 sps:$4 sm:$0xff]  }
 0x188   :  { %3729 = vmatprep.subr.bf16.mxu1 %v5911_v13  ;;  %v5977_v12 = vld [vmem:[#allocation5 + $0x6cc] ss:$16 sps:$4 sm:$0xff]   ;;  %v5972_v13 = vld [vmem:[#allocation5 + $0x4c8] ss:$16 sps:$4 sm:$0xff]  }
 0x18a   :  { %3689 = vmatpush1.bf16.msra.mxu0 %v5906_v14  ;;  %v5975_v14 = vld [vmem:[#allocation5 + $0x6c8] ss:$16 sps:$4 sm:$0xff]  }
 0x18b   :  { %3730 = vmatpush1.bf16.msra.mxu1 %v5909_v15  ;;  %3690 = vmatprep.subr.bf16.mxu0 %v5914_v18 }
 0x18c   :  { %3731 = vmatprep.subr.bf16.mxu1 %v5917_v19 }
 0x18e   :  { %3691 = vmatpush1.bf16.msra.mxu0 %v5912_v20 }
 0x18f   :  { %3732 = vmatpush1.bf16.msra.mxu1 %v5915_v21  ;;  %3692 = vmatprep.subr.bf16.mxu0 %v5920_v22  ;;  %v5980_v22 = vld [vmem:[#allocation5 + $0x4ac] ss:$16 sps:$4 sm:$0xff]  }
 0x190   :  { %3733 = vmatprep.subr.bf16.mxu1 %v5923_v24  ;;  %v5983_v24 = vld [vmem:[#allocation5 + $0x6ac] ss:$16 sps:$4 sm:$0xff]  }
 0x192   :  { %3693 = vmatpush2.bf16.msra.mxu0 %v5918_v25 }
 0x193   :  { %3734 = vmatpush2.bf16.msra.mxu1 %v5921_v29  ;;  %3694 = vmatprep.subr.bf16.mxu0 %v5926_v30  ;;  %v5978_v30 = vld [vmem:[#allocation5 + $0x4a8] ss:$16 sps:$4 sm:$0xff]  }
 0x194   :  { %3735 = vmatprep.subr.bf16.mxu1 %v5929_v31  ;;  %v5981_v31 = vld [vmem:[#allocation5 + $0x6a8] ss:$16 sps:$4 sm:$0xff]  }
 0x196   :  { %3695 = vmatpush2.bf16.msra.mxu0 %v5924_v34 }
 0x197   :  { %3736 = vmatpush2.bf16.msra.mxu1 %v5927_v35  ;;  %3696 = vmatprep.subr.bf16.mxu0 %v5932_v36  ;;  %v5986_v36 = vld [vmem:[#allocation5 + $0x48c] ss:$16 sps:$4 sm:$0xff]  }
 0x198   :  { %3737 = vmatprep.subr.bf16.mxu1 %v5935_v58  ;;  %v5989_v58 = vld [vmem:[#allocation5 + $0x68c] ss:$16 sps:$4 sm:$0xff]  }
 0x19a   :  { %3697 = vmatpush2.bf16.msra.mxu0 %v5930_v37  ;;  %v5987_v37 = vld [vmem:[#allocation5 + $0x688] ss:$16 sps:$4 sm:$0xff]  }
 0x19b   :  { %3738 = vmatpush2.bf16.msra.mxu1 %v5933_v38  ;;  %3698 = vmatprep.subr.bf16.mxu0 %v5938_v59  ;;  %v5990_v38 = vld [vmem:[#allocation5 + $0x468] ss:$16 sps:$4 sm:$0xff]  }
 0x19c   :  { %3739 = vmatprep.subr.bf16.mxu1 %v5941_v40  ;;  %v5993_v59 = vld [vmem:[#allocation5 + $0x668] ss:$16 sps:$4 sm:$0xff]   ;;  %v5998_v40 = vld [vmem:[#allocation5 + $0x44c] ss:$16 sps:$4 sm:$0xff]  }
 0x19e   :  { %3699 = vmatpush2.bf16.msra.mxu0 %v5936_v41  ;;  %v6001_v41 = vld [vmem:[#allocation5 + $0x64c] ss:$16 sps:$4 sm:$0xff]  }
 0x19f   :  { %3740 = vmatpush2.bf16.msra.mxu1 %v5939_v42  ;;  %3700 = vmatprep.subr.bf16.mxu0 %v5944_v45  ;;  %v5996_v42 = vld [vmem:[#allocation5 + $0x448] ss:$16 sps:$4 sm:$0xff]  }
 0x1a0   :  { %3741 = vmatprep.subr.bf16.mxu1 %v5947_v46  ;;  %v5999_v45 = vld [vmem:[#allocation5 + $0x648] ss:$16 sps:$4 sm:$0xff]   ;;  %v6004_v46 = vld [vmem:[#allocation5 + $0x42c] ss:$16 sps:$4 sm:$0xff]  }
 0x1a2   :  { %3701 = vmatpush2.bf16.msra.mxu0 %v5942_v50  ;;  %v6007_v50 = vld [vmem:[#allocation5 + $0x62c] ss:$16 sps:$4 sm:$0xff]  }
 0x1a3   :  { %3742 = vmatpush2.bf16.msra.mxu1 %v5945_v51  ;;  %3702 = vmatprep.subr.bf16.mxu0 %v5950_v54  ;;  %v6002_v51 = vld [vmem:[#allocation5 + $0x428] ss:$16 sps:$4 sm:$0xff]  }
 0x1a4   :  { %3743 = vmatprep.subr.bf16.mxu1 %v5953_v55  ;;  %v6005_v54 = vld [vmem:[#allocation5 + $0x628] ss:$16 sps:$4 sm:$0xff]   ;;  %v6010_v55 = vld [vmem:[#allocation5 + $0x40c] ss:$16 sps:$4 sm:$0xff]  }
 0x1a6   :  { %3703 = vmatpush2.bf16.msra.mxu0 %v5948_v56  ;;  %v6013_v56 = vld [vmem:[#allocation5 + $0x60c] ss:$16 sps:$4 sm:$0xff]  }
 0x1a7   :  { %3744 = vmatpush2.bf16.msra.mxu1 %v5951_v61  ;;  %3704 = vmatprep.subr.bf16.mxu0 %v5956_v63  ;;  %v6008_v61 = vld [vmem:[#allocation5 + $0x408] ss:$16 sps:$4 sm:$0xff]  }
 0x1a8   :  { %3745 = vmatprep.subr.bf16.mxu1 %v5959_v0  ;;  %v6011_v63 = vld [vmem:[#allocation5 + $0x608] ss:$16 sps:$4 sm:$0xff]   ;;  %v6016_v0 = vld [vmem:[#allocation5 + $0x5ec] ss:$16 sps:$4 sm:$0xff]  }
 0x1aa   :  { %3705 = vmatpush2.bf16.msra.mxu0 %v5954_v1  ;;  %v6019_v1 = vld [vmem:[#allocation5 + $0x7ec] ss:$16 sps:$4 sm:$0xff]  }
 0x1ab   :  { %3746 = vmatpush2.bf16.msra.mxu1 %v5957_v2  ;;  %3706 = vmatprep.subr.bf16.mxu0 %v5962_v5  ;;  %v6014_v2 = vld [vmem:[#allocation5 + $0x5e8] ss:$16 sps:$4 sm:$0xff]  }
 0x1ac   :  { %3747 = vmatprep.subr.bf16.mxu1 %v5965_v62  ;;  %v6017_v5 = vld [vmem:[#allocation5 + $0x7e8] ss:$16 sps:$4 sm:$0xff]   ;;  %v6022_v62 = vld [vmem:[#allocation5 + $0x5cc] ss:$16 sps:$4 sm:$0xff]  }
 0x1ae   :  { %3707 = vmatpush2.bf16.msra.mxu0 %v5960_v3  ;;  %v6025_v3 = vld [vmem:[#allocation5 + $0x7cc] ss:$16 sps:$4 sm:$0xff]  }
 0x1af   :  { %3748 = vmatpush2.bf16.msra.mxu1 %v5963_v6  ;;  %3758 = vmatprep.subr.bf16.mxu0 %v5968_v7  ;;  %v6020_v6 = vld [vmem:[#allocation5 + $0x5c8] ss:$16 sps:$4 sm:$0xff]  }
 0x1b0   :  { %3799 = vmatprep.subr.bf16.mxu1 %v5971_v8  ;;  %v6023_v7 = vld [vmem:[#allocation5 + $0x7c8] ss:$16 sps:$4 sm:$0xff]   ;;  %v6028_v8 = vld [vmem:[#allocation5 + $0x5ac] ss:$16 sps:$4 sm:$0xff]  }
 0x1b1   :  { %v3464_v15 = vpop.f32.mrf.mxu0  ;;  %3709 = vmatmul.mubr.bf16.vlgmr.msra.gmra.mxu0 %v6700_v16 }
 0x1b2   :  { %v3505_v18 = vpop.f32.mrf.mxu1  ;;  %3750 = vmatmul.mubr.bf16.vlgmr.msra.gmra.mxu1 %v6702_v17  ;;  %v3465_v19 = vadd.f32 %v3464_v15, %v6790_v47  ;;  %3759 = vmatpush1.bf16.msra.mxu0 %v5966_v39  ;;  %v6031_v39 = vld [vmem:[#allocation5 + $0x7ac] ss:$16 sps:$4 sm:$0xff]   ;;  %v6035_v15 = vld [vmem:[#allocation5 + $0x788] ss:$16 sps:$4 sm:$0xff]  }
 0x1b3   :  { %3800 = vmatpush1.bf16.msra.mxu1 %v5969_v44  ;;  %v3466_v20 = vpop.f32.mrf.mxu0  ;;  %3760 = vmatprep.subr.bf16.mxu0 %v5974_v11  ;;  %v6026_v44 = vld [vmem:[#allocation5 + $0x5a8] ss:$16 sps:$4 sm:$0xff]  }
 0x1b4   :  { %v3507_v21 = vpop.f32.mrf.mxu1  ;;  %3801 = vmatprep.subr.bf16.mxu1 %v5977_v12  ;;  %v6799_v25 = vadd.f32 %v3505_v18, %v3465_v19  ;;  %v3467_v29 = vadd.f32 %v3466_v20, %v6794_v60  ;;  %3790 = vmatprep.mubr.bf16.mxu0 %v6714_v53  ;;  %v5984_v60 = vld [vmem:[#allocation5 + $0x488] ss:$16 sps:$4 sm:$0xff]   ;;  %v5992_v53 = vld [vmem:[#allocation5 + $0x46c] ss:$16 sps:$4 sm:$0xff]  }
 0x1b5   :  { %3831 = vmatprep.mubr.bf16.mxu1 %v6718_v57  ;;  %v3468_v16 = vpop.f32.mrf.mxu0  ;;  %v5995_v57 = vld [vmem:[#allocation5 + $0x66c] ss:$16 sps:$4 sm:$0xff]   ;;  %v6029_v11 = vld [vmem:[#allocation5 + $0x7a8] ss:$16 sps:$4 sm:$0xff]  }
 0x1b6   :  { %v3509_v17 = vpop.f32.mrf.mxu1  ;;  %v6804_v47 = vadd.f32 %v3507_v21, %v3467_v29  ;;  %3761 = vmatpush1.bf16.msra.mxu0 %v5972_v13  ;;  %v6034_v12 = vld [vmem:[#allocation5 + $0x58c] ss:$16 sps:$4 sm:$0xff]   ;;  %v6038_v20 = vld [vmem:[#allocation5 + $0x568] ss:$16 sps:$4 sm:$0xff]  }
 0x1b7   :  { %3802 = vmatpush1.bf16.msra.mxu1 %v5975_v14  ;;  %v3469_v34 = vpop.f32.mrf.mxu0  ;;  %3762 = vmatprep.subr.bf16.mxu0 %v5980_v22  ;;  %v6037_v13 = vld [vmem:[#allocation5 + $0x78c] ss:$16 sps:$4 sm:$0xff]   ;;  %v6032_v14 = vld [vmem:[#allocation5 + $0x588] ss:$16 sps:$4 sm:$0xff]  }
 0x1b8   :  { %v3510_v35 = vpop.f32.mrf.mxu1  ;;  %3803 = vmatprep.subr.bf16.mxu1 %v5983_v24  ;;  %v6040_v18 = vld [vmem:[#allocation5 + $0x56c] ss:$16 sps:$4 sm:$0xff]   ;;  %v6041_v21 = vld [vmem:[#allocation5 + $0x768] ss:$16 sps:$4 sm:$0xff]  }
 0x1b9   :  { %v6043_v19 = vld [vmem:[#allocation5 + $0x76c] ss:$16 sps:$4 sm:$0xff]   ;;  %v6044_v29 = vld [vmem:[#allocation5 + $0x548] ss:$16 sps:$4 sm:$0xff]  }
 0x1ba   :  { %3763 = vmatpush1.bf16.msra.mxu0 %v5978_v30  ;;  %v6046_v22 = vld [vmem:[#allocation5 + $0x54c] ss:$16 sps:$4 sm:$0xff]   ;;  %v6047_v30 = vld [vmem:[#allocation5 + $0x748] ss:$16 sps:$4 sm:$0xff]  }
 0x1bb   :  { %3804 = vmatpush1.bf16.msra.mxu1 %v5981_v31  ;;  %3764 = vmatprep.subr.bf16.mxu0 %v5986_v36  ;;  %v6049_v24 = vld [vmem:[#allocation5 + $0x74c] ss:$16 sps:$4 sm:$0xff]   ;;  %v6050_v17 = vld [vmem:[#allocation5 + $0x528] ss:$16 sps:$4 sm:$0xff]  }
 0x1bc   :  { %3805 = vmatprep.subr.bf16.mxu1 %v5989_v58  ;;  %v6052_v31 = vld [vmem:[#allocation5 + $0x52c] ss:$16 sps:$4 sm:$0xff]   ;;  %v6053_v34 = vld [vmem:[#allocation5 + $0x728] ss:$16 sps:$4 sm:$0xff]  }
 0x1bd   :  { %v6055_v16 = vld [vmem:[#allocation5 + $0x72c] ss:$16 sps:$4 sm:$0xff]   ;;  %v6056_v58 = vld [vmem:[#allocation5 + $0x508] ss:$16 sps:$4 sm:$0xff]  }
 0x1be   :  { %3765 = vmatpush1.bf16.msra.mxu0 %v5984_v60  ;;  %v6058_v35 = vld [vmem:[#allocation5 + $0x50c] ss:$16 sps:$4 sm:$0xff]   ;;  %v6059_v60 = vld [vmem:[#allocation5 + $0x708] ss:$16 sps:$4 sm:$0xff]  }
 0x1bf   :  { %3806 = vmatpush1.bf16.msra.mxu1 %v5987_v37  ;;  %3766 = vmatprep.subr.bf16.mxu0 %v5992_v53  ;;  %v6061_v36 = vld [vmem:[#allocation5 + $0x70c] ss:$16 sps:$4 sm:$0xff]  }
 0x1c0   :  { %3807 = vmatprep.subr.bf16.mxu1 %v5995_v57  ;;  %v6064_v37 = vld [vmem:[#allocation5 + $0x8ec] ss:$16 sps:$4 sm:$0xff]   ;;  %v6062_v57 = vld [vmem:[#allocation5 + $0x8e8] ss:$16 sps:$4 sm:$0xff]  }
 0x1c1   :  { %v6067_v53 = vld [vmem:[#allocation5 + $0xaec] ss:$16 sps:$4 sm:$0xff]  }
 0x1c2   :  { %3767 = vmatpush1.bf16.msra.mxu0 %v5990_v38  ;;  %v6065_v38 = vld [vmem:[#allocation5 + $0xae8] ss:$16 sps:$4 sm:$0xff]  }
 0x1c3   :  { %3808 = vmatpush1.bf16.msra.mxu1 %v5993_v59  ;;  %3768 = vmatprep.subr.bf16.mxu0 %v5998_v40  ;;  %v6070_v59 = vld [vmem:[#allocation5 + $0x8cc] ss:$16 sps:$4 sm:$0xff]  }
 0x1c4   :  { %3809 = vmatprep.subr.bf16.mxu1 %v6001_v41  ;;  %v6073_v40 = vld [vmem:[#allocation5 + $0xacc] ss:$16 sps:$4 sm:$0xff]  }
 0x1c6   :  { %3769 = vmatpush1.bf16.msra.mxu0 %v5996_v42 }
 0x1c7   :  { %3810 = vmatpush1.bf16.msra.mxu1 %v5999_v45  ;;  %3770 = vmatprep.subr.bf16.mxu0 %v6004_v46  ;;  %v6068_v46 = vld [vmem:[#allocation5 + $0x8c8] ss:$16 sps:$4 sm:$0xff]  }
 0x1c8   :  { %3811 = vmatprep.subr.bf16.mxu1 %v6007_v50  ;;  %v6071_v50 = vld [vmem:[#allocation5 + $0xac8] ss:$16 sps:$4 sm:$0xff]  }
 0x1ca   :  { %3771 = vmatpush1.bf16.msra.mxu0 %v6002_v51 }
 0x1cb   :  { %3812 = vmatpush1.bf16.msra.mxu1 %v6005_v54  ;;  %3772 = vmatprep.subr.bf16.mxu0 %v6010_v55  ;;  %v6076_v55 = vld [vmem:[#allocation5 + $0x8ac] ss:$16 sps:$4 sm:$0xff]  }
 0x1cc   :  { %3813 = vmatprep.subr.bf16.mxu1 %v6013_v56  ;;  %v6079_v56 = vld [vmem:[#allocation5 + $0xaac] ss:$16 sps:$4 sm:$0xff]  }
 0x1ce   :  { %3773 = vmatpush1.bf16.msra.mxu0 %v6008_v61 }
 0x1cf   :  { %3814 = vmatpush1.bf16.msra.mxu1 %v6011_v63  ;;  %3774 = vmatprep.subr.bf16.mxu0 %v6016_v0  ;;  %v6074_v0 = vld [vmem:[#allocation5 + $0x8a8] ss:$16 sps:$4 sm:$0xff]  }
 0x1d0   :  { %3815 = vmatprep.subr.bf16.mxu1 %v6019_v1  ;;  %v6077_v1 = vld [vmem:[#allocation5 + $0xaa8] ss:$16 sps:$4 sm:$0xff]  }
 0x1d2   :  { %3775 = vmatpush2.bf16.msra.mxu0 %v6014_v2 }
 0x1d3   :  { %3816 = vmatpush2.bf16.msra.mxu1 %v6017_v5  ;;  %3776 = vmatprep.subr.bf16.mxu0 %v6022_v62  ;;  %v6082_v62 = vld [vmem:[#allocation5 + $0x88c] ss:$16 sps:$4 sm:$0xff]  }
 0x1d4   :  { %3817 = vmatprep.subr.bf16.mxu1 %v6025_v3  ;;  %v6085_v3 = vld [vmem:[#allocation5 + $0xa8c] ss:$16 sps:$4 sm:$0xff]  }
 0x1d6   :  { %3777 = vmatpush2.bf16.msra.mxu0 %v6020_v6  ;;  %v6091_v6 = vld [vmem:[#allocation5 + $0xa6c] ss:$16 sps:$4 sm:$0xff]  }
 0x1d7   :  { %3818 = vmatpush2.bf16.msra.mxu1 %v6023_v7  ;;  %3778 = vmatprep.subr.bf16.mxu0 %v6028_v8  ;;  %v6086_v7 = vld [vmem:[#allocation5 + $0x868] ss:$16 sps:$4 sm:$0xff]  }
 0x1d8   :  { %3819 = vmatprep.subr.bf16.mxu1 %v6031_v39  ;;  %v6089_v8 = vld [vmem:[#allocation5 + $0xa68] ss:$16 sps:$4 sm:$0xff]   ;;  %v6094_v39 = vld [vmem:[#allocation5 + $0x84c] ss:$16 sps:$4 sm:$0xff]  }
 0x1da   :  { %3779 = vmatpush2.bf16.msra.mxu0 %v6026_v44  ;;  %v6097_v44 = vld [vmem:[#allocation5 + $0xa4c] ss:$16 sps:$4 sm:$0xff]  }
 0x1db   :  { %3820 = vmatpush2.bf16.msra.mxu1 %v6029_v11  ;;  %3780 = vmatprep.subr.bf16.mxu0 %v6034_v12  ;;  %v6092_v11 = vld [vmem:[#allocation5 + $0x848] ss:$16 sps:$4 sm:$0xff]  }
 0x1dc   :  { %3821 = vmatprep.subr.bf16.mxu1 %v6037_v13  ;;  %v6095_v12 = vld [vmem:[#allocation5 + $0xa48] ss:$16 sps:$4 sm:$0xff]   ;;  %v6100_v13 = vld [vmem:[#allocation5 + $0x82c] ss:$16 sps:$4 sm:$0xff]  }
 0x1de   :  { %3781 = vmatpush2.bf16.msra.mxu0 %v6032_v14  ;;  %v6103_v14 = vld [vmem:[#allocation5 + $0xa2c] ss:$16 sps:$4 sm:$0xff]  }
 0x1df   :  { %3822 = vmatpush2.bf16.msra.mxu1 %v6035_v15  ;;  %3782 = vmatprep.subr.bf16.mxu0 %v6040_v18  ;;  %v6098_v15 = vld [vmem:[#allocation5 + $0x828] ss:$16 sps:$4 sm:$0xff]  }
 0x1e0   :  { %3823 = vmatprep.subr.bf16.mxu1 %v6043_v19  ;;  %v6101_v18 = vld [vmem:[#allocation5 + $0xa28] ss:$16 sps:$4 sm:$0xff]   ;;  %v6106_v19 = vld [vmem:[#allocation5 + $0x80c] ss:$16 sps:$4 sm:$0xff]  }
 0x1e2   :  { %3783 = vmatpush2.bf16.msra.mxu0 %v6038_v20  ;;  %v6109_v20 = vld [vmem:[#allocation5 + $0xa0c] ss:$16 sps:$4 sm:$0xff]  }
 0x1e3   :  { %3824 = vmatpush2.bf16.msra.mxu1 %v6041_v21  ;;  %3784 = vmatprep.subr.bf16.mxu0 %v6046_v22  ;;  %v6104_v21 = vld [vmem:[#allocation5 + $0x808] ss:$16 sps:$4 sm:$0xff]  }
 0x1e4   :  { %3825 = vmatprep.subr.bf16.mxu1 %v6049_v24  ;;  %v6107_v22 = vld [vmem:[#allocation5 + $0xa08] ss:$16 sps:$4 sm:$0xff]   ;;  %v6112_v24 = vld [vmem:[#allocation5 + $0x9ec] ss:$16 sps:$4 sm:$0xff]  }
 0x1e6   :  { %3785 = vmatpush2.bf16.msra.mxu0 %v6044_v29  ;;  %v6115_v29 = vld [vmem:[#allocation5 + $0xbec] ss:$16 sps:$4 sm:$0xff]  }
 0x1e7   :  { %3826 = vmatpush2.bf16.msra.mxu1 %v6047_v30  ;;  %3786 = vmatprep.subr.bf16.mxu0 %v6052_v31  ;;  %v6110_v30 = vld [vmem:[#allocation5 + $0x9e8] ss:$16 sps:$4 sm:$0xff]  }
 0x1e8   :  { %3827 = vmatprep.subr.bf16.mxu1 %v6055_v16  ;;  %v6113_v31 = vld [vmem:[#allocation5 + $0xbe8] ss:$16 sps:$4 sm:$0xff]   ;;  %v6118_v16 = vld [vmem:[#allocation5 + $0x9cc] ss:$16 sps:$4 sm:$0xff]  }
 0x1ea   :  { %3787 = vmatpush2.bf16.msra.mxu0 %v6050_v17  ;;  %v6121_v17 = vld [vmem:[#allocation5 + $0xbcc] ss:$16 sps:$4 sm:$0xff]  }
 0x1eb   :  { %3828 = vmatpush2.bf16.msra.mxu1 %v6053_v34  ;;  %3788 = vmatprep.subr.bf16.mxu0 %v6058_v35  ;;  %v6116_v34 = vld [vmem:[#allocation5 + $0x9c8] ss:$16 sps:$4 sm:$0xff]  }
 0x1ec   :  { %3829 = vmatprep.subr.bf16.mxu1 %v6061_v36  ;;  %v6119_v35 = vld [vmem:[#allocation5 + $0xbc8] ss:$16 sps:$4 sm:$0xff]   ;;  %v6124_v36 = vld [vmem:[#allocation5 + $0x9ac] ss:$16 sps:$4 sm:$0xff]  }
 0x1ee   :  { %3789 = vmatpush2.bf16.msra.mxu0 %v6056_v58  ;;  %v6127_v58 = vld [vmem:[#allocation5 + $0xbac] ss:$16 sps:$4 sm:$0xff]  }
 0x1ef   :  { %3830 = vmatpush2.bf16.msra.mxu1 %v6059_v60  ;;  %3840 = vmatprep.subr.bf16.mxu0 %v6064_v37  ;;  %v6122_v60 = vld [vmem:[#allocation5 + $0x9a8] ss:$16 sps:$4 sm:$0xff]  }
 0x1f0   :  { %3881 = vmatprep.subr.bf16.mxu1 %v6067_v53  ;;  %v6125_v37 = vld [vmem:[#allocation5 + $0xba8] ss:$16 sps:$4 sm:$0xff]   ;;  %v6130_v53 = vld [vmem:[#allocation5 + $0x98c] ss:$16 sps:$4 sm:$0xff]  }
 0x1f1   :  { %v3546_v41 = vpop.f32.mrf.mxu0  ;;  %3791 = vmatmul.mubr.bf16.vlgmr.msra.gmra.mxu0 %v6724_v32 }
 0x1f2   :  { %v3587_v42 = vpop.f32.mrf.mxu1  ;;  %3832 = vmatmul.mubr.bf16.vlgmr.msra.gmra.mxu1 %v6728_v33  ;;  %v3547_v45 = vadd.f32 %v3546_v41, %v6799_v25  ;;  %3841 = vmatpush1.bf16.msra.mxu0 %v6062_v57  ;;  %v6133_v57 = vld [vmem:[#allocation5 + $0xb8c] ss:$16 sps:$4 sm:$0xff]  }
 0x1f3   :  { %3882 = vmatpush1.bf16.msra.mxu1 %v6065_v38  ;;  %v3548_v51 = vpop.f32.mrf.mxu0  ;;  %3842 = vmatprep.subr.bf16.mxu0 %v6070_v59  ;;  %v6128_v38 = vld [vmem:[#allocation5 + $0x988] ss:$16 sps:$4 sm:$0xff]   ;;  %v6139_v41 = vld [vmem:[#allocation5 + $0xb6c] ss:$16 sps:$4 sm:$0xff]  }
 0x1f4   :  { %v3589_v54 = vpop.f32.mrf.mxu1  ;;  %3883 = vmatprep.subr.bf16.mxu1 %v6073_v40  ;;  %v6809_v61 = vadd.f32 %v3587_v42, %v3547_v45  ;;  %v3549_v63 = vadd.f32 %v3548_v51, %v6804_v47  ;;  %3872 = vmatprep.mubr.bf16.mxu0 %v6740_v48  ;;  %v6080_v47 = vld [vmem:[#allocation5 + $0x888] ss:$16 sps:$4 sm:$0xff]   ;;  %v6136_v40 = vld [vmem:[#allocation5 + $0x96c] ss:$16 sps:$4 sm:$0xff]  }
 0x1f5   :  { %3913 = vmatprep.mubr.bf16.mxu1 %v6745_v52  ;;  %v3550_v32 = vpop.f32.mrf.mxu0  ;;  %v6083_v48 = vld [vmem:[#allocation5 + $0xa88] ss:$16 sps:$4 sm:$0xff]   ;;  %v6088_v52 = vld [vmem:[#allocation5 + $0x86c] ss:$16 sps:$4 sm:$0xff]  }
 0x1f6   :  { %v3591_v33 = vpop.f32.mrf.mxu1  ;;  %v6814_v25 = vadd.f32 %v3589_v54, %v3549_v63  ;;  %3843 = vmatpush1.bf16.msra.mxu0 %v6068_v46  ;;  %v6131_v59 = vld [vmem:[#allocation5 + $0xb88] ss:$16 sps:$4 sm:$0xff]   ;;  %v6142_v46 = vld [vmem:[#allocation5 + $0x94c] ss:$16 sps:$4 sm:$0xff]  }
 0x1f7   :  { %3884 = vmatpush1.bf16.msra.mxu1 %v6071_v50  ;;  %v3551_v2 = vpop.f32.mrf.mxu0  ;;  %3844 = vmatprep.subr.bf16.mxu0 %v6076_v55  ;;  %v6134_v42 = vld [vmem:[#allocation5 + $0x968] ss:$16 sps:$4 sm:$0xff]   ;;  %v6145_v50 = vld [vmem:[#allocation5 + $0xb4c] ss:$16 sps:$4 sm:$0xff]  }
 0x1f8   :  { %v3592_v5 = vpop.f32.mrf.mxu1  ;;  %3885 = vmatprep.subr.bf16.mxu1 %v6079_v56  ;;  %v6137_v45 = vld [vmem:[#allocation5 + $0xb68] ss:$16 sps:$4 sm:$0xff]   ;;  %v6148_v55 = vld [vmem:[#allocation5 + $0x92c] ss:$16 sps:$4 sm:$0xff]  }
 0x1f9   :  { %v6140_v51 = vld [vmem:[#allocation5 + $0x948] ss:$16 sps:$4 sm:$0xff]   ;;  %v6151_v56 = vld [vmem:[#allocation5 + $0xb2c] ss:$16 sps:$4 sm:$0xff]  }
 0x1fa   :  { %3845 = vmatpush1.bf16.msra.mxu0 %v6074_v0  ;;  %v6143_v54 = vld [vmem:[#allocation5 + $0xb48] ss:$16 sps:$4 sm:$0xff]   ;;  %v6154_v33 = vld [vmem:[#allocation5 + $0x90c] ss:$16 sps:$4 sm:$0xff]  }
 0x1fb   :  { %3886 = vmatpush1.bf16.msra.mxu1 %v6077_v1  ;;  %3846 = vmatprep.subr.bf16.mxu0 %v6082_v62  ;;  %v6146_v63 = vld [vmem:[#allocation5 + $0x928] ss:$16 sps:$4 sm:$0xff]   ;;  %v6157_v0 = vld [vmem:[#allocation5 + $0xb0c] ss:$16 sps:$4 sm:$0xff]  }
 0x1fc   :  { %3887 = vmatprep.subr.bf16.mxu1 %v6085_v3  ;;  %v6149_v32 = vld [vmem:[#allocation5 + $0xb28] ss:$16 sps:$4 sm:$0xff]   ;;  %v6160_v5 = vld [vmem:[#allocation5 + $0xcec] ss:$16 sps:$4 sm:$0xff]  }
 0x1fd   :  { %v6152_v1 = vld [vmem:[#allocation5 + $0x908] ss:$16 sps:$4 sm:$0xff]   ;;  %v6163_v62 = vld [vmem:[#allocation5 + $0xeec] ss:$16 sps:$4 sm:$0xff]  }
 0x1fe   :  { %3847 = vmatpush1.bf16.msra.mxu0 %v6080_v47  ;;  %v6155_v2 = vld [vmem:[#allocation5 + $0xb08] ss:$16 sps:$4 sm:$0xff]  }
 0x1ff   :  { %3888 = vmatpush1.bf16.msra.mxu1 %v6083_v48  ;;  %3848 = vmatprep.subr.bf16.mxu0 %v6088_v52  ;;  %v6158_v3 = vld [vmem:[#allocation5 + $0xce8] ss:$16 sps:$4 sm:$0xff]   ;;  %v6166_v48 = vld [vmem:[#allocation5 + $0xccc] ss:$16 sps:$4 sm:$0xff]  }
 0x200   :  { %3889 = vmatprep.subr.bf16.mxu1 %v6091_v6  ;;  %v6161_v47 = vld [vmem:[#allocation5 + $0xee8] ss:$16 sps:$4 sm:$0xff]   ;;  %v6169_v52 = vld [vmem:[#allocation5 + $0xecc] ss:$16 sps:$4 sm:$0xff]  }
 0x202   :  { %3849 = vmatpush1.bf16.msra.mxu0 %v6086_v7 }
 0x203   :  { %3890 = vmatpush1.bf16.msra.mxu1 %v6089_v8  ;;  %3850 = vmatprep.subr.bf16.mxu0 %v6094_v39  ;;  %v6164_v39 = vld [vmem:[#allocation5 + $0xcc8] ss:$16 sps:$4 sm:$0xff]  }
 0x204   :  { %3891 = vmatprep.subr.bf16.mxu1 %v6097_v44  ;;  %v6167_v44 = vld [vmem:[#allocation5 + $0xec8] ss:$16 sps:$4 sm:$0xff]  }
 0x206   :  { %3851 = vmatpush1.bf16.msra.mxu0 %v6092_v11 }
 0x207   :  { %3892 = vmatpush1.bf16.msra.mxu1 %v6095_v12  ;;  %3852 = vmatprep.subr.bf16.mxu0 %v6100_v13  ;;  %v6172_v13 = vld [vmem:[#allocation5 + $0xcac] ss:$16 sps:$4 sm:$0xff]  }
 0x208   :  { %3893 = vmatprep.subr.bf16.mxu1 %v6103_v14  ;;  %v6175_v14 = vld [vmem:[#allocation5 + $0xeac] ss:$16 sps:$4 sm:$0xff]  }
 0x20a   :  { %3853 = vmatpush1.bf16.msra.mxu0 %v6098_v15 }
 0x20b   :  { %3894 = vmatpush1.bf16.msra.mxu1 %v6101_v18  ;;  %3854 = vmatprep.subr.bf16.mxu0 %v6106_v19  ;;  %v6173_v18 = vld [vmem:[#allocation5 + $0xea8] ss:$16 sps:$4 sm:$0xff]  }
 0x20c   :  { %3895 = vmatprep.subr.bf16.mxu1 %v6109_v20 }
 0x20e   :  { %3855 = vmatpush1.bf16.msra.mxu0 %v6104_v21  ;;  %v6178_v21 = vld [vmem:[#allocation5 + $0xc8c] ss:$16 sps:$4 sm:$0xff]  }
 0x20f   :  { %3896 = vmatpush1.bf16.msra.mxu1 %v6107_v22  ;;  %3856 = vmatprep.subr.bf16.mxu0 %v6112_v24  ;;  %v6181_v22 = vld [vmem:[#allocation5 + $0xe8c] ss:$16 sps:$4 sm:$0xff]   ;;  %v6176_v24 = vld [vmem:[#allocation5 + $0xc88] ss:$16 sps:$4 sm:$0xff]  }
 0x210   :  { %3897 = vmatprep.subr.bf16.mxu1 %v6115_v29  ;;  %v6179_v29 = vld [vmem:[#allocation5 + $0xe88] ss:$16 sps:$4 sm:$0xff]  }
 0x212   :  { %3857 = vmatpush2.bf16.msra.mxu0 %v6110_v30  ;;  %v6182_v30 = vld [vmem:[#allocation5 + $0xc68] ss:$16 sps:$4 sm:$0xff]  }
 0x213   :  { %3898 = vmatpush2.bf16.msra.mxu1 %v6113_v31  ;;  %3858 = vmatprep.subr.bf16.mxu0 %v6118_v16  ;;  %v6185_v31 = vld [vmem:[#allocation5 + $0xe68] ss:$16 sps:$4 sm:$0xff]   ;;  %v6190_v16 = vld [vmem:[#allocation5 + $0xc4c] ss:$16 sps:$4 sm:$0xff]  }
 0x214   :  { %3899 = vmatprep.subr.bf16.mxu1 %v6121_v17  ;;  %v6193_v17 = vld [vmem:[#allocation5 + $0xe4c] ss:$16 sps:$4 sm:$0xff]  }
 0x216   :  { %3859 = vmatpush2.bf16.msra.mxu0 %v6116_v34  ;;  %v6188_v34 = vld [vmem:[#allocation5 + $0xc48] ss:$16 sps:$4 sm:$0xff]  }
 0x217   :  { %3900 = vmatpush2.bf16.msra.mxu1 %v6119_v35  ;;  %3860 = vmatprep.subr.bf16.mxu0 %v6124_v36  ;;  %v6191_v35 = vld [vmem:[#allocation5 + $0xe48] ss:$16 sps:$4 sm:$0xff]   ;;  %v6196_v36 = vld [vmem:[#allocation5 + $0xc2c] ss:$16 sps:$4 sm:$0xff]  }
 0x218   :  { %3901 = vmatprep.subr.bf16.mxu1 %v6127_v58  ;;  %v6199_v58 = vld [vmem:[#allocation5 + $0xe2c] ss:$16 sps:$4 sm:$0xff]  }
 0x21a   :  { %3861 = vmatpush2.bf16.msra.mxu0 %v6122_v60  ;;  %v6194_v60 = vld [vmem:[#allocation5 + $0xc28] ss:$16 sps:$4 sm:$0xff]  }
 0x21b   :  { %3902 = vmatpush2.bf16.msra.mxu1 %v6125_v37  ;;  %3862 = vmatprep.subr.bf16.mxu0 %v6130_v53  ;;  %v6197_v37 = vld [vmem:[#allocation5 + $0xe28] ss:$16 sps:$4 sm:$0xff]   ;;  %v6202_v53 = vld [vmem:[#allocation5 + $0xc0c] ss:$16 sps:$4 sm:$0xff]  }
 0x21c   :  { %3903 = vmatprep.subr.bf16.mxu1 %v6133_v57  ;;  %v6205_v57 = vld [vmem:[#allocation5 + $0xe0c] ss:$16 sps:$4 sm:$0xff]  }
 0x21e   :  { %3863 = vmatpush2.bf16.msra.mxu0 %v6128_v38  ;;  %v6200_v38 = vld [vmem:[#allocation5 + $0xc08] ss:$16 sps:$4 sm:$0xff]  }
 0x21f   :  { %3904 = vmatpush2.bf16.msra.mxu1 %v6131_v59  ;;  %3864 = vmatprep.subr.bf16.mxu0 %v6136_v40  ;;  %v6203_v59 = vld [vmem:[#allocation5 + $0xe08] ss:$16 sps:$4 sm:$0xff]   ;;  %v6208_v40 = vld [vmem:[#allocation5 + $0xdec] ss:$16 sps:$4 sm:$0xff]  }
 0x220   :  { %3905 = vmatprep.subr.bf16.mxu1 %v6139_v41  ;;  %v6211_v41 = vld [vmem:[#allocation5 + $0xfec] ss:$16 sps:$4 sm:$0xff]  }
 0x222   :  { %3865 = vmatpush2.bf16.msra.mxu0 %v6134_v42  ;;  %v6206_v42 = vld [vmem:[#allocation5 + $0xde8] ss:$16 sps:$4 sm:$0xff]  }
 0x223   :  { %3906 = vmatpush2.bf16.msra.mxu1 %v6137_v45  ;;  %3866 = vmatprep.subr.bf16.mxu0 %v6142_v46  ;;  %v6209_v45 = vld [vmem:[#allocation5 + $0xfe8] ss:$16 sps:$4 sm:$0xff]   ;;  %v6214_v46 = vld [vmem:[#allocation5 + $0xdcc] ss:$16 sps:$4 sm:$0xff]  }
 0x224   :  { %3907 = vmatprep.subr.bf16.mxu1 %v6145_v50  ;;  %v6217_v50 = vld [vmem:[#allocation5 + $0xfcc] ss:$16 sps:$4 sm:$0xff]  }
 0x226   :  { %3867 = vmatpush2.bf16.msra.mxu0 %v6140_v51  ;;  %v6212_v51 = vld [vmem:[#allocation5 + $0xdc8] ss:$16 sps:$4 sm:$0xff]  }
 0x227   :  { %3908 = vmatpush2.bf16.msra.mxu1 %v6143_v54  ;;  %3868 = vmatprep.subr.bf16.mxu0 %v6148_v55  ;;  %v6215_v54 = vld [vmem:[#allocation5 + $0xfc8] ss:$16 sps:$4 sm:$0xff]   ;;  %v6220_v55 = vld [vmem:[#allocation5 + $0xdac] ss:$16 sps:$4 sm:$0xff]  }
 0x228   :  { %3909 = vmatprep.subr.bf16.mxu1 %v6151_v56  ;;  %v6223_v56 = vld [vmem:[#allocation5 + $0xfac] ss:$16 sps:$4 sm:$0xff]  }
 0x22a   :  { %3869 = vmatpush2.bf16.msra.mxu0 %v6146_v63  ;;  %v6218_v63 = vld [vmem:[#allocation5 + $0xda8] ss:$16 sps:$4 sm:$0xff]  }
 0x22b   :  { %3910 = vmatpush2.bf16.msra.mxu1 %v6149_v32  ;;  %3870 = vmatprep.subr.bf16.mxu0 %v6154_v33  ;;  %v6221_v32 = vld [vmem:[#allocation5 + $0xfa8] ss:$16 sps:$4 sm:$0xff]   ;;  %v6226_v33 = vld [vmem:[#allocation5 + $0xd8c] ss:$16 sps:$4 sm:$0xff]  }
 0x22c   :  { %3911 = vmatprep.subr.bf16.mxu1 %v6157_v0  ;;  %v6229_v0 = vld [vmem:[#allocation5 + $0xf8c] ss:$16 sps:$4 sm:$0xff]  }
 0x22e   :  { %3871 = vmatpush2.bf16.msra.mxu0 %v6152_v1  ;;  %v6224_v1 = vld [vmem:[#allocation5 + $0xd88] ss:$16 sps:$4 sm:$0xff]  }
 0x22f   :  { %3912 = vmatpush2.bf16.msra.mxu1 %v6155_v2  ;;  %3922 = vmatprep.subr.bf16.mxu0 %v6160_v5  ;;  %v6227_v2 = vld [vmem:[#allocation5 + $0xf88] ss:$16 sps:$4 sm:$0xff]   ;;  %v6232_v5 = vld [vmem:[#allocation5 + $0xd6c] ss:$16 sps:$4 sm:$0xff]  }
 0x230   :  { %3963 = vmatprep.subr.bf16.mxu1 %v6163_v62  ;;  %v6235_v62 = vld [vmem:[#allocation5 + $0xf6c] ss:$16 sps:$4 sm:$0xff]  }
 0x231   :  { %v3628_v6 = vpop.f32.mrf.mxu0  ;;  %3873 = vmatmul.mubr.bf16.vlgmr.msra.gmra.mxu0 %v6760_v4 }
 0x232   :  { %v3669_v7 = vpop.f32.mrf.mxu1  ;;  %3914 = vmatmul.mubr.bf16.vlgmr.msra.gmra.mxu1 %v6764_v49  ;;  %v3629_v8 = vadd.f32 %v3628_v6, %v6809_v61  ;;  %3923 = vmatpush1.bf16.msra.mxu0 %v6158_v3  ;;  %v6170_v61 = vld [vmem:[#allocation5 + $0xca8] ss:$16 sps:$4 sm:$0xff]  }
 0x233   :  { %3964 = vmatpush1.bf16.msra.mxu1 %v6161_v47  ;;  %v6819_v11 = vpop.f32.mrf.mxu0  ;;  %3924 = vmatprep.subr.bf16.mxu0 %v6166_v48  ;;  %v6230_v3 = vld [vmem:[#allocation5 + $0xd68] ss:$16 sps:$4 sm:$0xff]   ;;  %v6238_v48 = vld [vmem:[#allocation5 + $0xd4c] ss:$16 sps:$4 sm:$0xff]  }
 0x234   :  { %v6821_v12 = vpop.f32.mrf.mxu1  ;;  %3965 = vmatprep.subr.bf16.mxu1 %v6169_v52  ;;  %v6823_v15 = vadd.f32 %v3669_v7, %v3629_v8  ;;  %3954 = vmatprep.mubr.bf16.mxu0 %v6766_v9  ;;  %v6184_v9 = vld [vmem:[#allocation5 + $0xc6c] ss:$16 sps:$4 sm:$0xff]   ;;  %v6233_v47 = vld [vmem:[#allocation5 + $0xf68] ss:$16 sps:$4 sm:$0xff]  }
 0x235   :  { %3995 = vmatprep.mubr.bf16.mxu1 %v6768_v10  ;;  %v3632_v4 = vpop.f32.mrf.mxu0  ;;  %v6187_v10 = vld [vmem:[#allocation5 + $0xe6c] ss:$16 sps:$4 sm:$0xff]   ;;  %v6236_v6 = vld [vmem:[#allocation5 + $0xd48] ss:$16 sps:$4 sm:$0xff]  }
 0x236   :  { %v3673_v49 = vpop.f32.mrf.mxu1  ;;  %3925 = vmatpush1.bf16.msra.mxu0 %v6164_v39  ;;  %v6241_v52 = vld [vmem:[#allocation5 + $0xf4c] ss:$16 sps:$4 sm:$0xff]   ;;  %v6239_v7 = vld [vmem:[#allocation5 + $0xf48] ss:$16 sps:$4 sm:$0xff]  }
 0x237   :  { %3966 = vmatpush1.bf16.msra.mxu1 %v6167_v44  ;;  %v3633_v19 = vpop.f32.mrf.mxu0  ;;  %3926 = vmatprep.subr.bf16.mxu0 %v6172_v13  ;;  %v6244_v8 = vld [vmem:[#allocation5 + $0xd2c] ss:$16 sps:$4 sm:$0xff]   ;;  %v3631_v44 = vadd.f32 %v6819_v11, %v6814_v25  ;;  %v6242_v13 = vld [vmem:[#allocation5 + $0xd28] ss:$16 sps:$4 sm:$0xff]   ;;  %v782_v11 = vsub.s32 3, %v6687_v43 }
 0x238   :  { %v3674_v20 = vpop.f32.mrf.mxu1  ;;  %3967 = vmatprep.subr.bf16.mxu1 %v6175_v14  ;;  %v6247_v39 = vld [vmem:[#allocation5 + $0xf2c] ss:$16 sps:$4 sm:$0xff]   ;;  %v6245_v14 = vld [vmem:[#allocation5 + $0xf28] ss:$16 sps:$4 sm:$0xff]  }
 0x239   :  { %v6250_v4 = vld [vmem:[#allocation5 + $0xd0c] ss:$16 sps:$4 sm:$0xff]   ;;  %v6251_v19 = vld [vmem:[#allocation5 + $0xf08] ss:$16 sps:$4 sm:$0xff]   ;;  %v778_v20 = vsub.s32 2, %v6687_v43 }
 0x23a   :  { %3927 = vmatpush1.bf16.msra.mxu0 %v6170_v61  ;;  %v6253_v49 = vld [vmem:[#allocation5 + $0xf0c] ss:$16 sps:$4 sm:$0xff]   ;;  %v3672_v61 = vadd.f32 %v6821_v12, %v3631_v44  ;;  %v6325_v44 = vld [vmem:[#allocation8 + $0x104] ss:$8 sps:$4 sm:$0xff]  }
 0x23b   :  { %3968 = vmatpush1.bf16.msra.mxu1 %v6173_v18  ;;  %3928 = vmatprep.subr.bf16.mxu0 %v6178_v21  ;;  %v6248_v18 = vld [vmem:[#allocation5 + $0xd08] ss:$16 sps:$4 sm:$0xff]  }
 0x23c   :  { %3969 = vmatprep.subr.bf16.mxu1 %v6181_v22  ;;  %v6256_v21 = vld [vmem:[#allocation8 + $0x74] ss:$8 sps:$4 sm:$0xff]   ;;  %v4005_v25 = vmax.f32 %v3672_v61, 0.0  ;;  %v6284_v61 = vld [vmem:[#allocation8 + $0xd0] ss:$8 sps:$4 sm:$0xff]   ;;  %v6373_v43 = vld [vmem:[#allocation14] sm:$0xff]  }
 0x23d   :  { %v6378_v22 = vld [vmem:[#allocation7] sm:$0xf] }
 0x23e   :  { %3929 = vmatpush1.bf16.msra.mxu0 %v6176_v24  ;;  %v779_v24 = vrot.slane %v6378_v22, %v778_v20  ;;  %v4009_v12 = vpack.c.bf16 %v4005_v25, %v4005_v25  ;;  %v6331_v20 = vld [vmem:[#allocation8 + $0x1e4] ss:$8 sps:$4 sm:$0xff]   ;;  %v6329_v25 = vld [vmem:[#allocation8 + $0x1e0] ss:$8 sps:$4 sm:$0xff]  }
 0x23f   :  { %3970 = vmatpush1.bf16.msra.mxu1 %v6179_v29  ;;  %3930 = vmatprep.subr.bf16.mxu0 %v6184_v9  ;;  %v6254_v29 = vld [vmem:[#allocation8 + $0x70] ss:$8 sps:$4 sm:$0xff]   ;;  %v6259_v9 = vld [vmem:[#allocation8 + $0x64] ss:$8 sps:$4 sm:$0xff]  }
 0x240   :  { %3971 = vmatprep.subr.bf16.mxu1 %v6187_v10  ;;  %v783_v10 = vrot.slane %v6378_v22, %v782_v11  ;;  %v6292_v11 = vld [vmem:[#allocation8 + $0xb4] ss:$8 sps:$4 sm:$0xff]  }
 0x241   :  { %v6334_v22 = vld [vmem:[#allocation8 + $0x1d4] ss:$8 sps:$4 sm:$0xff]  }
 0x242   :  { %3931 = vmatpush1.bf16.msra.mxu0 %v6182_v30 }
 0x243   :  { %3972 = vmatpush1.bf16.msra.mxu1 %v6185_v31  ;;  %3932 = vmatprep.subr.bf16.mxu0 %v6190_v16 }
 0x244   :  { %3973 = vmatprep.subr.bf16.mxu1 %v6193_v17  ;;  %v6257_v17 = vld [vmem:[#allocation8 + $0x60] ss:$8 sps:$4 sm:$0xff]  }
 0x246   :  { %3933 = vmatpush1.bf16.msra.mxu0 %v6188_v34 }
 0x247   :  { %3974 = vmatpush1.bf16.msra.mxu1 %v6191_v35  ;;  %3934 = vmatprep.subr.bf16.mxu0 %v6196_v36  ;;  %v6262_v36 = vld [vmem:[#allocation8 + $0x54] ss:$8 sps:$4 sm:$0xff]  }
 0x248   :  { %3975 = vmatprep.subr.bf16.mxu1 %v6199_v58 }
 0x24a   :  { %3935 = vmatpush1.bf16.msra.mxu0 %v6194_v60 }
 0x24b   :  { %3976 = vmatpush1.bf16.msra.mxu1 %v6197_v37  ;;  %3936 = vmatprep.subr.bf16.mxu0 %v6202_v53 }
 0x24c   :  { %3977 = vmatprep.subr.bf16.mxu1 %v6205_v57 }
 0x24e   :  { %3937 = vmatpush1.bf16.msra.mxu0 %v6200_v38  ;;  %v6260_v38 = vld [vmem:[#allocation8 + $0x50] ss:$8 sps:$4 sm:$0xff]  }
 0x24f   :  { %3978 = vmatpush1.bf16.msra.mxu1 %v6203_v59  ;;  %3938 = vmatprep.subr.bf16.mxu0 %v6208_v40  ;;  %v6302_v40 = vld [vmem:[#allocation8 + $0x170] ss:$8 sps:$4 sm:$0xff]  }
 0x250   :  { %3979 = vmatprep.subr.bf16.mxu1 %v6211_v41  ;;  %v6304_v41 = vld [vmem:[#allocation8 + $0x174] ss:$8 sps:$4 sm:$0xff]  }
 0x252   :  { %3939 = vmatpush2.bf16.msra.mxu0 %v6206_v42  ;;  %v6307_v42 = vld [vmem:[#allocation8 + $0x164] ss:$8 sps:$4 sm:$0xff]  }
 0x253   :  { %3980 = vmatpush2.bf16.msra.mxu1 %v6209_v45  ;;  %3940 = vmatprep.subr.bf16.mxu0 %v6214_v46  ;;  %v6263_v45 = vld [vmem:[#allocation8 + $0x40] ss:$8 sps:$4 sm:$0xff]  }
 0x254   :  { %3981 = vmatprep.subr.bf16.mxu1 %v6217_v50  ;;  %v6305_v46 = vld [vmem:[#allocation8 + $0x160] ss:$8 sps:$4 sm:$0xff]   ;;  %v6268_v50 = vld [vmem:[#allocation8 + $0x34] ss:$8 sps:$4 sm:$0xff]  }
 0x256   :  { %3941 = vmatpush2.bf16.msra.mxu0 %v6212_v51  ;;  %v6310_v51 = vld [vmem:[#allocation8 + $0x154] ss:$8 sps:$4 sm:$0xff]  }
 0x257   :  { %3982 = vmatpush2.bf16.msra.mxu1 %v6215_v54  ;;  %3942 = vmatprep.subr.bf16.mxu0 %v6220_v55  ;;  %v6266_v54 = vld [vmem:[#allocation8 + $0x30] ss:$8 sps:$4 sm:$0xff]  }
 0x258   :  { %3983 = vmatprep.subr.bf16.mxu1 %v6223_v56  ;;  %v6308_v55 = vld [vmem:[#allocation8 + $0x150] ss:$8 sps:$4 sm:$0xff]   ;;  %v6271_v56 = vld [vmem:[#allocation8 + $0x24] ss:$8 sps:$4 sm:$0xff]  }
 0x25a   :  { %3943 = vmatpush2.bf16.msra.mxu0 %v6218_v63  ;;  %v6313_v63 = vld [vmem:[#allocation8 + $0x144] ss:$8 sps:$4 sm:$0xff]  }
 0x25b   :  { %3984 = vmatpush2.bf16.msra.mxu1 %v6221_v32  ;;  %3944 = vmatprep.subr.bf16.mxu0 %v6226_v33  ;;  %v6269_v32 = vld [vmem:[#allocation8 + $0x20] ss:$8 sps:$4 sm:$0xff]  }
 0x25c   :  { %3985 = vmatprep.subr.bf16.mxu1 %v6229_v0  ;;  %v6311_v33 = vld [vmem:[#allocation8 + $0x140] ss:$8 sps:$4 sm:$0xff]   ;;  %v6274_v0 = vld [vmem:[#allocation8 + $0x14] ss:$8 sps:$4 sm:$0xff]  }
 0x25e   :  { %3945 = vmatpush2.bf16.msra.mxu0 %v6224_v1  ;;  %v6316_v1 = vld [vmem:[#allocation8 + $0x134] ss:$8 sps:$4 sm:$0xff]  }
 0x25f   :  { %3986 = vmatpush2.bf16.msra.mxu1 %v6227_v2  ;;  %3946 = vmatprep.subr.bf16.mxu0 %v6232_v5  ;;  %v6272_v2 = vld [vmem:[#allocation8 + $0x10] ss:$8 sps:$4 sm:$0xff]  }
 0x260   :  { %3987 = vmatprep.subr.bf16.mxu1 %v6235_v62  ;;  %v6314_v5 = vld [vmem:[#allocation8 + $0x130] ss:$8 sps:$4 sm:$0xff]   ;;  %v6277_v62 = vld [vmem:[#allocation8 + $0x4] ss:$8 sps:$4 sm:$0xff]  }
 0x262   :  { %3947 = vmatpush2.bf16.msra.mxu0 %v6230_v3  ;;  %v6319_v3 = vld [vmem:[#allocation8 + $0x124] ss:$8 sps:$4 sm:$0xff]  }
 0x263   :  { %3988 = vmatpush2.bf16.msra.mxu1 %v6233_v47  ;;  %3948 = vmatprep.subr.bf16.mxu0 %v6238_v48  ;;  %v6275_v47 = vld [vmem:[#allocation8] ss:$8 sps:$4 sm:$0xff]  }
 0x264   :  { %3989 = vmatprep.subr.bf16.mxu1 %v6241_v52  ;;  %v6317_v48 = vld [vmem:[#allocation8 + $0x120] ss:$8 sps:$4 sm:$0xff]   ;;  %v6280_v52 = vld [vmem:[#allocation8 + $0xf4] ss:$8 sps:$4 sm:$0xff]  }
 0x266   :  { %3949 = vmatpush2.bf16.msra.mxu0 %v6236_v6  ;;  %v6322_v6 = vld [vmem:[#allocation8 + $0x114] ss:$8 sps:$4 sm:$0xff]  }
 0x267   :  { %3990 = vmatpush2.bf16.msra.mxu1 %v6239_v7  ;;  %3950 = vmatprep.subr.bf16.mxu0 %v6244_v8  ;;  %v6278_v7 = vld [vmem:[#allocation8 + $0xf0] ss:$8 sps:$4 sm:$0xff]  }
 0x268   :  { %3991 = vmatprep.subr.bf16.mxu1 %v6247_v39  ;;  %v6320_v8 = vld [vmem:[#allocation8 + $0x110] ss:$8 sps:$4 sm:$0xff]   ;;  %v6283_v39 = vld [vmem:[#allocation8 + $0xe4] ss:$8 sps:$4 sm:$0xff]  }
 0x26a   :  { %3951 = vmatpush2.bf16.msra.mxu0 %v6242_v13  ;;  %v6281_v13 = vld [vmem:[#allocation8 + $0xe0] ss:$8 sps:$4 sm:$0xff]  }
 0x26b   :  { %3992 = vmatpush2.bf16.msra.mxu1 %v6245_v14  ;;  %3952 = vmatprep.subr.bf16.mxu0 %v6250_v4  ;;  %v6323_v14 = vld [vmem:[#allocation8 + $0x100] ss:$8 sps:$4 sm:$0xff]   ;;  %v6286_v4 = vld [vmem:[#allocation8 + $0xd4] ss:$8 sps:$4 sm:$0xff]  }
 0x26c   :  { %3993 = vmatprep.subr.bf16.mxu1 %v6253_v49  ;;  %v6328_v49 = vld [vmem:[#allocation8 + $0x1f4] ss:$8 sps:$4 sm:$0xff]  }
 0x26e   :  { %3953 = vmatpush2.bf16.msra.mxu0 %v6248_v18  ;;  %v6326_v18 = vld [vmem:[#allocation8 + $0x1f0] ss:$8 sps:$4 sm:$0xff]  }
 0x26f   :  { %3994 = vmatpush2.bf16.msra.mxu1 %v6251_v19  ;;  %4408 = vmatprep.subr.bf16.mxu0 %v6256_v21  ;;  %v6289_v19 = vld [vmem:[#allocation8 + $0xc4] ss:$8 sps:$4 sm:$0xff]   ;;  %v6287_v21 = vld [vmem:[#allocation8 + $0xc0] ss:$8 sps:$4 sm:$0xff]  }
 0x270   :  { %4449 = vmatprep.subr.bf16.mxu1 %v6304_v41 }
 0x271   :  { %v3710_v30 = vpop.f32.mrf.mxu0  ;;  %3955 = vmatmul.mubr.bf16.vlgmr.msra.gmra.mxu0 %v6778_v27 }
 0x272   :  { %v3751_v31 = vpop.f32.mrf.mxu1  ;;  %3996 = vmatmul.mubr.bf16.vlgmr.msra.gmra.mxu1 %v6782_v28  ;;  %v3711_v16 = vadd.f32 %v3710_v30, %v779_v24  ;;  %4409 = vmatpush1.bf16.msra.mxu0 %v6254_v29  ;;  %v6265_v28 = vld [vmem:[#allocation8 + $0x44] ss:$8 sps:$4 sm:$0xff]   ;;  %v6290_v24 = vld [vmem:[#allocation8 + $0xb0] ss:$8 sps:$4 sm:$0xff]   ;;  %v6335_v30 = vld [vmem:[#allocation8 + $0x1c0] ss:$8 sps:$4 sm:$0xff]  }
 0x273   :  { %4440 = vmatprep.mubr.bf16.mxu0 %v4009_v12  ;;  %v3712_v34 = vpop.f32.mrf.mxu0  ;;  %4410 = vmatprep.subr.bf16.mxu0 %v6259_v9  ;;  %v6332_v29 = vld [vmem:[#allocation8 + $0x1d0] ss:$8 sps:$4 sm:$0xff]   ;;  %v6295_v9 = vld [vmem:[#allocation8 + $0xa4] ss:$8 sps:$4 sm:$0xff]  }
 0x274   :  { %v3753_v35 = vpop.f32.mrf.mxu1  ;;  %v6834_v58 = vadd.f32 %v3751_v31, %v3711_v16  ;;  %v3713_v60 = vadd.f32 %v3712_v34, %v783_v10  ;;  %4450 = vmatpush1.bf16.msra.mxu1 %v6302_v40  ;;  %v6337_v12 = vld [vmem:[#allocation8 + $0x1c4] ss:$8 sps:$4 sm:$0xff]   ;;  %v6293_v10 = vld [vmem:[#allocation8 + $0xa0] ss:$8 sps:$4 sm:$0xff]   ;;  %v6298_v31 = vld [vmem:[#allocation8 + $0x94] ss:$8 sps:$4 sm:$0xff]  }
 0x275   :  { %v3714_v37 = vpop.f32.mrf.mxu0  ;;  %4451 = vmatprep.subr.bf16.mxu1 %v6307_v42  ;;  %v6340_v16 = vld [vmem:[#allocation8 + $0x1b4] ss:$8 sps:$4 sm:$0xff]   ;;  %v6338_v34 = vld [vmem:[#allocation8 + $0x1b0] ss:$8 sps:$4 sm:$0xff]  }
 0x276   :  { %v3755_v53 = vpop.f32.mrf.mxu1  ;;  %v6836_v57 = vadd.f32 %v3753_v35, %v3713_v60  ;;  %4411 = vmatpush1.bf16.msra.mxu0 %v6257_v17  ;;  %v6296_v17 = vld [vmem:[#allocation8 + $0x90] ss:$8 sps:$4 sm:$0xff]   ;;  %v6301_v35 = vld [vmem:[#allocation8 + $0x84] ss:$8 sps:$4 sm:$0xff]   ;;  %v4004_v60 = vmax.f32 %v6823_v15, 0.0 }
 0x277   :  { %v3715_v27 = vpop.f32.mrf.mxu0  ;;  %4412 = vmatprep.subr.bf16.mxu0 %v6262_v36  ;;  %v6299_v36 = vld [vmem:[#allocation8 + $0x80] ss:$8 sps:$4 sm:$0xff]   ;;  %v6343_v53 = vld [vmem:[#allocation8 + $0x1a4] ss:$8 sps:$4 sm:$0xff]   ;;  %v6346_v42 = vld [vmem:[#allocation8 + $0x194] ss:$8 sps:$4 sm:$0xff]  }
 0x278   :  { %v3756_v59 = vpop.f32.mrf.mxu1  ;;  %4452 = vmatpush1.bf16.msra.mxu1 %v6305_v46  ;;  %v4008_v37 = vpack.c.bf16 %v4004_v60, %v4004_v60 }
 0x279   :  { %4453 = vmatprep.subr.bf16.mxu1 %v6310_v51 }
 0x27a   :  { %4413 = vmatpush1.bf16.msra.mxu0 %v6260_v38  ;;  %v6341_v38 = vld [vmem:[#allocation8 + $0x1a0] ss:$8 sps:$4 sm:$0xff]  }
 0x27b   :  { %4414 = vmatprep.subr.bf16.mxu0 %v6265_v28 }
 0x27c   :  { %4454 = vmatpush1.bf16.msra.mxu1 %v6308_v55 }
 0x27d   :  { %4455 = vmatprep.subr.bf16.mxu1 %v6313_v63  ;;  %v6349_v63 = vld [vmem:[#allocation8 + $0x184] ss:$8 sps:$4 sm:$0xff]  }
 0x27e   :  { %4415 = vmatpush1.bf16.msra.mxu0 %v6263_v45 }
 0x27f   :  { %4416 = vmatprep.subr.bf16.mxu0 %v6268_v50  ;;  %v6344_v50 = vld [vmem:[#allocation8 + $0x190] ss:$8 sps:$4 sm:$0xff]  }
 0x280   :  { %4456 = vmatpush1.bf16.msra.mxu1 %v6311_v33 }
 0x281   :  { %4457 = vmatprep.subr.bf16.mxu1 %v6316_v1 }
 0x282   :  { %4417 = vmatpush1.bf16.msra.mxu0 %v6266_v54 }
 0x283   :  { %4418 = vmatprep.subr.bf16.mxu0 %v6271_v56 }
 0x284   :  { %4458 = vmatpush1.bf16.msra.mxu1 %v6314_v5 }
 0x285   :  { %4459 = vmatprep.subr.bf16.mxu1 %v6319_v3 }
 0x286   :  { %4419 = vmatpush1.bf16.msra.mxu0 %v6269_v32  ;;  %v6347_v32 = vld [vmem:[#allocation8 + $0x180] ss:$8 sps:$4 sm:$0xff]  }
 0x287   :  { %4420 = vmatprep.subr.bf16.mxu0 %v6274_v0 }
 0x288   :  { %4460 = vmatpush1.bf16.msra.mxu1 %v6317_v48  ;;  %v6350_v48 = vld [vmem:[#allocation11 + $0x78] sm:$0xff]  }
 0x289   :  { %4461 = vmatprep.subr.bf16.mxu1 %v6322_v6  ;;  %v6352_v6 = vld [vmem:[#allocation11 + $0x70] sm:$0xff]  }
 0x28a   :  { %4421 = vmatpush1.bf16.msra.mxu0 %v6272_v2 }
 0x28b   :  { %4422 = vmatprep.subr.bf16.mxu0 %v6277_v62 }
 0x28c   :  { %4462 = vmatpush1.bf16.msra.mxu1 %v6320_v8  ;;  %v6354_v8 = vld [vmem:[#allocation11 + $0x68] sm:$0xff]  }
 0x28d   :  { %4463 = vmatprep.subr.bf16.mxu1 %v6325_v44  ;;  %v6356_v44 = vld [vmem:[#allocation11 + $0x60] sm:$0xff]  }
 0x28e   :  { %4423 = vmatpush1.bf16.msra.mxu0 %v6275_v47 }
 0x28f   :  { %4424 = vmatprep.subr.bf16.mxu0 %v6280_v52  ;;  %v6351_v52 = vld [vmem:[#allocation11 + $0x38] sm:$0xff]  }
 0x290   :  { %4464 = vmatpush1.bf16.msra.mxu1 %v6323_v14  ;;  %v6358_v14 = vld [vmem:[#allocation11 + $0x58] sm:$0xff]  }
 0x291   :  { %4465 = vmatprep.subr.bf16.mxu1 %v6328_v49  ;;  %v6360_v49 = vld [vmem:[#allocation11 + $0x50] sm:$0xff]  }
 0x292   :  { %4425 = vmatpush2.bf16.msra.mxu0 %v6278_v7  ;;  %v6353_v7 = vld [vmem:[#allocation11 + $0x30] sm:$0xff]  }
 0x293   :  { %4426 = vmatprep.subr.bf16.mxu0 %v6283_v39  ;;  %v6355_v39 = vld [vmem:[#allocation11 + $0x28] sm:$0xff]  }
 0x294   :  { %4466 = vmatpush2.bf16.msra.mxu1 %v6326_v18 }
 0x295   :  { %4467 = vmatprep.subr.bf16.mxu1 %v6331_v20 }
 0x296   :  { %4427 = vmatpush2.bf16.msra.mxu0 %v6281_v13  ;;  %v6357_v13 = vld [vmem:[#allocation11 + $0x20] sm:$0xff]  }
 0x297   :  { %4428 = vmatprep.subr.bf16.mxu0 %v6286_v4  ;;  %v6359_v4 = vld [vmem:[#allocation11 + $0x18] sm:$0xff]  }
 0x298   :  { %4468 = vmatpush2.bf16.msra.mxu1 %v6329_v25 }
 0x299   :  { %4469 = vmatprep.subr.bf16.mxu1 %v6334_v22 }
 0x29a   :  { %4429 = vmatpush2.bf16.msra.mxu0 %v6284_v61  ;;  %v6361_v61 = vld [vmem:[#allocation11 + $0x10] sm:$0xff]  }
 0x29b   :  { %4430 = vmatprep.subr.bf16.mxu0 %v6289_v19 }
 0x29c   :  { %4470 = vmatpush2.bf16.msra.mxu1 %v6332_v29 }
 0x29d   :  { %4471 = vmatprep.subr.bf16.mxu1 %v6337_v12 }
 0x29e   :  { %4431 = vmatpush2.bf16.msra.mxu0 %v6287_v21 }
 0x29f   :  { %4432 = vmatprep.subr.bf16.mxu0 %v6292_v11 }
 0x2a0   :  { %4472 = vmatpush2.bf16.msra.mxu1 %v6335_v30 }
 0x2a1   :  { %4473 = vmatprep.subr.bf16.mxu1 %v6340_v16 }
 0x2a2   :  { %4433 = vmatpush2.bf16.msra.mxu0 %v6290_v24 }
 0x2a3   :  { %4434 = vmatprep.subr.bf16.mxu0 %v6295_v9 }
 0x2a4   :  { %4474 = vmatpush2.bf16.msra.mxu1 %v6338_v34 }
 0x2a5   :  { %4475 = vmatprep.subr.bf16.mxu1 %v6343_v53 }
 0x2a6   :  { %4435 = vmatpush2.bf16.msra.mxu0 %v6293_v10 }
 0x2a7   :  { %4436 = vmatprep.subr.bf16.mxu0 %v6298_v31 }
 0x2a8   :  { %4476 = vmatpush2.bf16.msra.mxu1 %v6341_v38  ;;  %v6362_v38 = vld [vmem:[#allocation11 + $0x48] sm:$0xff]  }
 0x2a9   :  { %4477 = vmatprep.subr.bf16.mxu1 %v6346_v42  ;;  %v6367_v42 = vld [vmem:[#allocation14 + $0x30] sm:$0xff]  }
 0x2aa   :  { %4437 = vmatpush2.bf16.msra.mxu0 %v6296_v17 }
 0x2ab   :  { %4438 = vmatprep.subr.bf16.mxu0 %v6301_v35 }
 0x2ac   :  { %4478 = vmatpush2.bf16.msra.mxu1 %v6344_v50  ;;  %v6370_v50 = vld [vmem:[#allocation14 + $0x18] sm:$0xff]  }
 0x2ad   :  { %4479 = vmatprep.subr.bf16.mxu1 %v6349_v63 }
 0x2ae   :  { %4439 = vmatpush2.bf16.msra.mxu0 %v6299_v36 }
 0x2af   :  { %5412 = vmatprep.subr.bf16.mxu0 %v6350_v48 }
 0x2b0   :  { %4480 = vmatpush2.bf16.msra.mxu1 %v6347_v32 }
 0x2b1   :  { %v3792_v27 = vpop.f32.mrf.mxu0  ;;  %4441 = vmatmul.mubr.bf16.vlgmr.msra.gmra.mxu0 %v4008_v37 }
 0x2b2   :  { %v3833_v59 = vpop.f32.mrf.mxu1  ;;  %v3793_v28 = vadd.f32 %v3792_v27, %v6834_v58  ;;  %5413 = vmatpush3.bf16.msra.mxu0 %v6351_v52  ;;  %v6363_v27 = vld [vmem:[#allocation11 + $0x8] sm:$0xff]  }
 0x2b3   :  { %v3794_v40 = vpop.f32.mrf.mxu0  ;;  %5414 = vmatprep.subr.bf16.mxu0 %v6352_v6 }
 0x2b4   :  { %v3835_v41 = vpop.f32.mrf.mxu1  ;;  %v3834_v45 = vadd.f32 %v3833_v59, %v3793_v28  ;;  %v3795_v46 = vadd.f32 %v3794_v40, %v6836_v57  ;;  %v6364_v59 = vld [vmem:[#allocation11 + $0x40] sm:$0xff]  }
 0x2b5   :  { %v3796_v15 = vpop.f32.mrf.mxu0  ;;  %v6365_v28 = vld [vmem:[#allocation11] sm:$0xff]  }
 0x2b6   :  { %v3837_v51 = vpop.f32.mrf.mxu1  ;;  %v3836_v54 = vadd.f32 %v3835_v41, %v3795_v46  ;;  %5415 = vmatpush3.bf16.msra.mxu0 %v6353_v7  ;;  %v6366_v40 = vld [vmem:[#allocation14 + $0x38] sm:$0xff]   ;;  %v6607_v41 = vmov 0.0   ;;  %v6369_v46 = vld [vmem:[#allocation14 + $0x20] sm:$0xff]  }
 0x2b7   :  { %v3797_v55 = vpop.f32.mrf.mxu0  ;;  %5416 = vmatprep.subr.bf16.mxu0 %v6354_v8  ;;  %5443 = vmatprep.subr.bf16.mxu1 %v6607_v41  ;;  %v4076_v15 = vld [vmem:[#allocation10] sm:$0x3] }
 0x2b8   :  { %v3838_v56 = vpop.f32.mrf.mxu1  ;;  %v4081_v51 = vrot.slane %v4076_v15, %v770_v23  ;;  %v6372_v23 = vld [vmem:[#allocation14 + $0x8] sm:$0xff]  }
 0x2ba   :  { %5417 = vmatpush3.bf16.msra.mxu0 %v6355_v39 }
 0x2bb   :  { %5418 = vmatprep.subr.bf16.mxu0 %v6356_v44 }
 0x2be   :  { %5419 = vmatpush3.bf16.msra.mxu0 %v6357_v13  ;;  %v5402_v13 = vld [vmem:[#allocation16] ss:$0 sm:$0xff] }
 0x2bf   :  { %5420 = vmatprep.subr.bf16.mxu0 %v6358_v14 }
 0x2c2   :  { %5421 = vmatpush3.bf16.msra.mxu0 %v6359_v4 }
 0x2c3   :  { %5422 = vmatprep.subr.bf16.mxu0 %v6360_v49 }
 0x2c6   :  { %5423 = vmatpush3.bf16.msra.mxu0 %v6361_v61 }
 0x2c7   :  { %5424 = vmatprep.subr.bf16.mxu0 %v6362_v38 }
 0x2ca   :  { %5425 = vmatpush3.bf16.msra.mxu0 %v6363_v27 }
 0x2cb   :  { %5426 = vmatprep.subr.bf16.mxu0 %v6364_v59 }
 0x2ce   :  { %5427 = vmatpush3.bf16.msra.mxu0 %v6365_v28 }
 0x2f1   :  { %v3874_v58 = vpop.f32.mrf.mxu0 }
 0x2f2   :  { %v3915_v33 = vpop.f32.mrf.mxu1  ;;  %v3875_v0 = vadd.f32 %v3874_v58, %v3834_v45  ;;  %v6368_v45 = vld [vmem:[#allocation14 + $0x28] sm:$0xff]  }
 0x2f3   :  { %v3876_v1 = vpop.f32.mrf.mxu0 }
 0x2f4   :  { %v3917_v2 = vpop.f32.mrf.mxu1  ;;  %v3916_v5 = vadd.f32 %v3915_v33, %v3875_v0  ;;  %v3877_v18 = vadd.f32 %v3876_v1, %v3836_v54  ;;  %v4085_v54 = vrot.slane %v4076_v15, %v774_v26 }
 0x2f5   :  { %v3878_v62 = vpop.f32.mrf.mxu0 }
 0x2f6   :  { %v3919_v57 = vpop.f32.mrf.mxu1  ;;  %v3918_v21 = vadd.f32 %v3917_v2, %v3877_v18 }
 0x2f7   :  { %v3879_v3 = vpop.f32.mrf.mxu0 }
 0x2f8   :  { %v3920_v47 = vpop.f32.mrf.mxu1  ;;  %v6371_v3 = vld [vmem:[#allocation14 + $0x10] sm:$0xff]  }
 0x2f9   :  { %v5385_v47 = vld [vmem:[#allocation13] ss:$0 sm:$0xff] }
 0x331   :  { %v3956_v19 = vpop.f32.mrf.mxu0 }
 0x332   :  { %v3997_v20 = vpop.f32.mrf.mxu1  ;;  %v3957_v25 = vadd.f32 %v3956_v19, %v3916_v5 }
 0x333   :  { %v3958_v11 = vpop.f32.mrf.mxu0 }
 0x334   :  { %v3999_v22 = vpop.f32.mrf.mxu1  ;;  %v3998_v24 = vadd.f32 %v3997_v20, %v3957_v25  ;;  %v3959_v29 = vadd.f32 %v3958_v11, %v3918_v21 }
 0x335   :  { %v3960_v9 = vpop.f32.mrf.mxu0 }
 0x336   :  { %v4001_v12 = vpop.f32.mrf.mxu1  ;;  %v4000_v10 = vadd.f32 %v3999_v22, %v3959_v29  ;;  %v4006_v30 = vmax.f32 %v3998_v24, 0.0 }
 0x337   :  { %v3961_v31 = vpop.f32.mrf.mxu0 }
 0x338   :  { %v4002_v16 = vpop.f32.mrf.mxu1  ;;  %v4007_v17 = vmax.f32 %v4000_v10, 0.0  ;;  %v4010_v35 = vpack.c.bf16 %v4006_v30, %v4006_v30 }
 0x33a   :  { %v4011_v34 = vpack.c.bf16 %v4007_v17, %v4007_v17 }
 0x33c   :  { %4481 = vmatprep.mubr.bf16.mxu1 %v4011_v34 }
 0x33d   :  { %4482 = vmatmul.mubr.bf16.vlgmr.msra.gmra.mxu1 %v4010_v35 }
 0x33e   :  { %5444 = vmatpush3.bf16.msra.mxu1 %v6366_v40  ;;  %5459 = vmatprep.mubr.msk.bf16.mxu1 %vm6608_vm0, %v6607_v41 }
 0x33f   :  { %5445 = vmatprep.subr.bf16.mxu1 %v6607_v41 }
 0x342   :  { %5446 = vmatpush3.bf16.msra.mxu1 %v6367_v42 }
 0x343   :  { %5447 = vmatprep.subr.bf16.mxu1 %v6607_v41 }
 0x346   :  { %5448 = vmatpush3.bf16.msra.mxu1 %v6368_v45 }
 0x347   :  { %5449 = vmatprep.subr.bf16.mxu1 %v6607_v41 }
 0x34a   :  { %5450 = vmatpush3.bf16.msra.mxu1 %v6369_v46 }
 0x34b   :  { %5451 = vmatprep.subr.bf16.mxu1 %v6607_v41 }
 0x34e   :  { %5452 = vmatpush3.bf16.msra.mxu1 %v6370_v50 }
 0x34f   :  { %5453 = vmatprep.subr.bf16.mxu1 %v6607_v41 }
 0x352   :  { %5454 = vmatpush3.bf16.msra.mxu1 %v6371_v3 }
 0x353   :  { %5455 = vmatprep.subr.bf16.mxu1 %v6607_v41 }
 0x356   :  { %5456 = vmatpush3.bf16.msra.mxu1 %v6372_v23 }
 0x357   :  { %5457 = vmatprep.subr.bf16.mxu1 %v6607_v41 }
 0x35a   :  { %5458 = vmatpush3.bf16.msra.mxu1 %v6373_v43 }
 0x371   :  { %v4442_v36 = vpop.f32.mrf.mxu0 }
 0x372   :  { %v4443_v55 = vadd.f32 %v4442_v36, %v4081_v51 }
 0x373   :  { %v4444_v60 = vpop.f32.mrf.mxu0 }
 0x374   :  { %v4445_v63 = vadd.f32 %v4444_v60, %v4085_v54 }
 0x375   :  { %v4446_v37 = vpop.f32.mrf.mxu0 }
 0x377   :  { %v4447_v53 = vpop.f32.mrf.mxu0 }
 0x3fd   :  { %v4483_v56 = vpop.f32.mrf.mxu1 }
 0x3fe   :  { %v4484_v32 = vadd.f32 %v4483_v56, %v4443_v55 }
 0x3ff   :  { %v4485_v58 = vpop.f32.mrf.mxu1 }
 0x400   :  { %v4486_v33 = vadd.f32 %v4485_v58, %v4445_v63  ;;  %v4490_v0 = vmax.f32 %v4484_v32, 0.0 }
 0x401   :  { %v4487_v1 = vpop.f32.mrf.mxu1 }
 0x402   :  { %v4491_v2 = vmax.f32 %v4486_v33, 0.0  ;;  %v4492_v57 = vpack.c.bf16 %v4490_v0, %v4490_v0 }
 0x403   :  { %v4488_v5 = vpop.f32.mrf.mxu1 }
 0x404   :  { %v4493_v62 = vpack.c.bf16 %v4491_v2, %v4491_v2 }
 0x406   :  { %4661 = vmatprep.mubr.bf16.mxu0 %v4493_v62 }
 0x407   :  { %4662 = vmatmul.mubr.bf16.vlgmr.msra.gmra.mxu0 %v4492_v57 }
 0x4c7   :  { %v5428_v26 = vpop.f32.mrf.mxu0 }
 0x4c9   :  { %v5429_v48 = vpop.f32.mrf.mxu0 }
 0x4ca   :  { %v5430_v52 = vadd.f32 %v5429_v48, %v5428_v26 }
 0x4cb   :  { %v5431_v6 = vpop.f32.mrf.mxu0 }
 0x4cc   :  { %v4664_v7 = vadd.f32 %v5430_v52, %v5385_v47 }
 0x4cd   :  { %v5432_v8 = vpop.f32.mrf.mxu0 }
 0x4ce   :  { %v4669_v39 = vmax.f32 %v4664_v7, 0.0 }
 0x4d0   :  { %v4670_v44 = vpack.c.bf16 %v4669_v39, %v4669_v39 }
 0x4d2   :  { %5460 = vmatmul.mubr.bf16.vlgmr.msra.gmra.mxu1 %v4670_v44 }
 0x592   :  { %v4776_v14 = vpop.f32.mrf.mxu1 }
 0x593   :  { %v4777_v4 = vadd.f32 %v5402_v13, %v4776_v14 }
 0x594   :  { %v5461_v49 = vpop.f32.mrf.mxu1 }
 0x595   :  { %v5411_v61 = vmul.f32 -1.442695, %v4777_v4 }
 0x596   :  { %v4779_v18 = vpop.f32.mrf.mxu1 }
 0x597   :  { %6374 = vpow2.f32 %v5411_v61 }
 0x598   :  { %v5462_v19 = vpop.f32.mrf.mxu1 }
 0x5a4   :  { %v6375_v20 = vpop.eup %6374 }
 0x5a5   :  { %v4785_v21 = vadd.f32 1.0, %v6375_v20 }
 0x5a7   :  { %6376 = vrcp.f32 %v4785_v21 }
 0x5b4   :  { %v6377_v25 = vpop.eup %6376 }
 0x5b5   :  { %v4788_v11 = vpack.c.bf16 %v6377_v25, %v6377_v25 }
 0x5b7   :  { %4789 = vst [vmem:[#allocation17] sm:$0x1] %v4788_v11 }
 0x5b8   :  { %6570 = shalt.err (!%p6567_p7)
}
 0x5b9   :  { %4799 = dma.vmem_to_hbm [thread:$0]  %s4797_s8, 16, %s6857_s9, [#allocation4]  }
 0x5ba   :  { %6589 = dma.done.wait [#allocation4], 16  }
 0x5bb   :  { %6590 = vsyncadd [#allocation4], 4294967280 }
 0x5bc   :  { %4803 = vsyncpa [#allocation3], 1 }
 0x5bd   :  { %4804 = vsyncpa [#allocation6], 1 }
 0x5be   :  { %4805 = vsyncpa [#allocation9], 1 }
 0x5bf   :  { %4806 = vsyncpa [#allocation12], 1 }
 0x5c0   :  { %4807 = vsyncpa [#allocation15], 1 }
 0x5c1   :  { %4808 = vsyncpa [#allocation4], 1 }

</bundles_post_ra>
